<compile_context>
chip_gen: v6e
topology: v6e:2x2x1
jax: 0.10.0
libtpu: 0.0.40
codegen_flags: <defaults>
</compile_context>

<pallas_src>
import math
import jax
import jax.numpy as jnp
from jax.experimental import pallas as pl
from jax.experimental.pallas import tpu as pltpu

# small CLIP-like configuration
B, L, D, H, E, N_LAYERS = 2, 8, 32, 4, 32, 2
DH = D // H
MLP = 4 * D
NEG_INF = -1e9
LN_EPS = 1e-5


# ---------------------------------------------------------------- kernel ----

def _encoder_kernel(feat_ref, pos_ref, mask_ref,
                    wqkv_ref, bqkv_ref, wo_ref, bo_ref,
                    w1_ref, b1_ref, w2_ref, b2_ref,
                    proj_ref, bproj_ref,
                    o_ref):
    """Whole forward fused: pos-emb add, N_LAYERS causal residual attention blocks
    (static unroll), ln_final + last-token text projection.  LN affines / attention
    scale are pre-folded into the weights; attention is batched over (B*H)."""
    x = feat_ref[...].astype(jnp.float32) + pos_ref[...][None]          # (B, L, D)
    x2 = x.reshape(B * L, D)                                            # flat rows for matmuls
    mask = mask_ref[...]                                                # (L, L) causal additive mask

    def norm(v):                                                        # affine-free, one-pass LN
        mu = jnp.mean(v, axis=-1, keepdims=True)
        var = jnp.mean(v * v, axis=-1, keepdims=True) - mu * mu
        return (v - mu) * jax.lax.rsqrt(var + LN_EPS)

    def to_heads(t):                                                    # (B*L, D) -> (B*H, L, DH)
        return t.reshape(B, L, H, DH).transpose(0, 2, 1, 3).reshape(B * H, L, DH)

    for l in range(N_LAYERS):                                           # static unroll
        # --- multi-head causal self-attention (ln_1 folded into QKV weights) ---
        xn = norm(x2)                                                   # (B*L, D)
        # leading-axis Q/K/V split of the packed weights: no lane slicing, 3 small MXU dots
        q = jnp.dot(xn, wqkv_ref[l, 0], preferred_element_type=jnp.float32) + bqkv_ref[l, 0]
        k = jnp.dot(xn, wqkv_ref[l, 1], preferred_element_type=jnp.float32) + bqkv_ref[l, 1]
        v = jnp.dot(xn, wqkv_ref[l, 2], preferred_element_type=jnp.float32) + bqkv_ref[l, 2]
        qh, kh, vh = to_heads(q), to_heads(k), to_heads(v)              # (B*H, L, DH)

        # ONE batched score matmul + ONE batched value matmul per layer
        s = jnp.einsum('bqd,bkd->bqk', qh, kh,
                       preferred_element_type=jnp.float32)              # (B*H, L, L), scale pre-folded
        s = s + mask[None]
        s = s - jnp.max(s, axis=-1, keepdims=True)
        p = jnp.exp(s)
        p = p * pl.reciprocal(jnp.sum(p, axis=-1, keepdims=True), approx=False)
        o = jnp.einsum('bqk,bkd->bqd', p, vh,
                       preferred_element_type=jnp.float32)              # (B*H, L, DH)
        attn = o.reshape(B, H, L, DH).transpose(0, 2, 1, 3).reshape(B * L, D)
        x2 = x2 + jnp.dot(attn, wo_ref[l], preferred_element_type=jnp.float32) + bo_ref[l]

        # --- MLP with QuickGELU (x * sigmoid(1.702 x)); ln_2 folded into fc1 ---
        xn2 = norm(x2)
        hdn = jnp.dot(xn2, w1_ref[l], preferred_element_type=jnp.float32) + b1_ref[l]
        hdn = hdn * jax.nn.sigmoid(1.702 * hdn)
        x2 = x2 + jnp.dot(hdn, w2_ref[l], preferred_element_type=jnp.float32) + b2_ref[l]

    # --- ln_final on the last token (affine folded into projection) + projection ---
    last = x2.reshape(B, L, D)[:, L - 1, :]                             # == x[:, -1, :]
    lastn = norm(last)
    o_ref[...] = (jnp.dot(lastn, proj_ref[...], preferred_element_type=jnp.float32)
                  + bproj_ref[...]).astype(o_ref.dtype)
    # TODO(synk): at real CLIP sizes (D=512+, 12 layers) stream bf16 weights via a
    # grid=(N_LAYERS,) "arbitrary" axis with a persistent x2 VMEM scratch (and a parallel
    # batch axis for the 2 TCs on v7x) instead of keeping all layers VMEM-resident;
    # raise vmem_limit_bytes in CompilerParams if staying weight-resident on v5e/v6e.


# --------------------------------------------------------------- wrapper ----

def forward(text_feature_withprompt, pos, packed):
    """packed = stacked/fused/folded kernel parameters from pack_params()."""
    (wqkv, bqkv, wo, bo, w1, b1, w2, b2, proj, bproj) = packed
    # causal additive mask, precomputed once in the wrapper (layer-invariant)
    row = jnp.arange(L)[:, None]
    col = jnp.arange(L)[None, :]
    mask = jnp.where(col > row, NEG_INF, 0.0).astype(jnp.float32)

    n_in = 13
    return pl.pallas_call(
        _encoder_kernel,
        out_shape=jax.ShapeDtypeStruct((B, E), text_feature_withprompt.dtype),
        in_specs=[pl.BlockSpec(memory_space=pltpu.MemorySpace.VMEM)] * n_in,
        out_specs=pl.BlockSpec(memory_space=pltpu.MemorySpace.VMEM),
        compiler_params=pltpu.CompilerParams(),     # no grid: whole-array VMEM blocks
    )(text_feature_withprompt, pos, mask,
      wqkv, bqkv, wo, bo, w1, b1, w2, b2, proj, bproj)


# ------------------------------------------------------------------ params --

def init_params(key):
    kit = iter(jax.random.split(key, 16 * N_LAYERS + 8))

    def nrm(shape, scale=0.02):
        return (scale * jax.random.normal(next(kit), shape)).astype(jnp.float32)

    blocks = []
    for _ in range(N_LAYERS):
        blocks.append((
            1.0 + nrm((1, D), 0.1), nrm((1, D), 0.1),                    # ln1 g,b (non-trivial)
            nrm((D, D)), nrm((1, D)),                                    # wq, bq
            nrm((D, D)), nrm((1, D)),                                    # wk, bk
            nrm((D, D)), nrm((1, D)),                                    # wv, bv
            nrm((D, D)), nrm((1, D)),                                    # wo, bo
            1.0 + nrm((1, D), 0.1), nrm((1, D), 0.1),                    # ln2 g,b (non-trivial)
            nrm((D, MLP)), nrm((1, MLP)),                                # mlp fc1
            nrm((MLP, D)), nrm((1, D)),                                  # mlp fc2
        ))
    pos = nrm((L, D), 0.01)
    lnf_g = 1.0 + nrm((1, D), 0.1)
    lnf_b = nrm((1, D), 0.1)
    proj = nrm((D, E))
    return pos, blocks, lnf_g, lnf_b, proj


def pack_params(blocks, lnf_g, lnf_b, proj):
    """Stack per-layer params along a leading layer axis.

    Folds (free, at pack time):
      * ln_1 gamma/beta into the Q/K/V weights & biases,
      * 1/sqrt(DH) attention scale into the Q weights & bias,
      * ln_2 gamma/beta into the MLP fc1 weights & bias,
      * ln_final gamma/beta into the text projection (+ new additive bias).
    Q/K/V weights packed as (N_LAYERS, 3, D, D) so the split is on a leading axis.
    """
    scale = 1.0 / math.sqrt(DH)
    wqkv, bqkv, wo, bo, w1, b1, w2, b2 = [], [], [], [], [], [], [], []
    for blk in blocks:
        (g1, be1, wq, bq, wk, bk, wv, bv, wo_, bo_,
         g2, be2, w1_, b1_, w2_, b2_) = blk
        g1c, be1r = g1.reshape(D, 1), be1.reshape(1, D)
        wq_f = (g1c * wq) * scale
        bq_f = (be1r @ wq + bq) * scale
        wk_f = g1c * wk; bk_f = be1r @ wk + bk
        wv_f = g1c * wv; bv_f = be1r @ wv + bv
        wqkv.append(jnp.stack([wq_f, wk_f, wv_f]))                       # (3, D, D)
        bqkv.append(jnp.stack([bq_f, bk_f, bv_f]))                       # (3, 1, D)
        wo.append(wo_); bo.append(bo_)                                   # (D, D), (1, D)
        g2c, be2r = g2.reshape(D, 1), be2.reshape(1, D)
        w1.append(g2c * w1_); b1.append(be2r @ w1_ + b1_)                # (D, MLP), (1, MLP)
        w2.append(w2_); b2.append(b2_)                                   # (MLP, D), (1, D)
    proj_f = lnf_g.reshape(D, 1) * proj                                  # (D, E)
    bproj = lnf_b.reshape(1, D) @ proj                                   # (1, E)
    # TODO(synk): store stacked weights in bf16 at real CLIP sizes (MXU rate / VMEM footprint).
    return (jnp.stack(wqkv), jnp.stack(bqkv), jnp.stack(wo), jnp.stack(bo),
            jnp.stack(w1), jnp.stack(b1), jnp.stack(w2), jnp.stack(b2),
            proj_f, bproj)


# -------------------------------------------------------- pure-JAX reference -

def reference(feat, pos, blocks, lnf_g, lnf_b, proj):
    def ln(v, g, b):
        mu = v.mean(-1, keepdims=True)
        var = ((v - mu) ** 2).mean(-1, keepdims=True)
        return (v - mu) / jnp.sqrt(var + LN_EPS) * g + b

    x = feat + pos[None]
    rowi = jnp.arange(L)[:, None]
    coli = jnp.arange(L)[None, :]
    causal = jnp.where(coli > rowi, NEG_INF, 0.0)
    for p in blocks:
        (ln1_g, ln1_b, wq, bq, wk, bk, wv, bv, wo, bo,
         ln2_g, ln2_b, w1, b1, w2, b2) = p
        xn = ln(x, ln1_g, ln1_b)
        q = (xn @ wq + bq).reshape(B, L, H, DH).transpose(0, 2, 1, 3)
        k = (xn @ wk + bk).reshape(B, L, H, DH).transpose(0, 2, 1, 3)
        v = (xn @ wv + bv).reshape(B, L, H, DH).transpose(0, 2, 1, 3)
        s = jnp.einsum('bhqd,bhkd->bhqk', q, k) / math.sqrt(DH) + causal
        a = jax.nn.softmax(s, -1)
        o = jnp.einsum('bhqk,bhkd->bhqd', a, v).transpose(0, 2, 1, 3).reshape(B, L, D)
        x = x + o @ wo + bo
        xn2 = ln(x, ln2_g, ln2_b)
        hdn = xn2 @ w1 + b1
        hdn = hdn * jax.nn.sigmoid(1.702 * hdn)
        x = x + hdn @ w2 + b2
    x = ln(x, lnf_g, lnf_b)
    return x[:, -1, :] @ proj


# -------------------------------------------------------------------- main ---

if __name__ == "__main__":
    key = jax.random.PRNGKey(0)
    k_feat, k_params = jax.random.split(key)
    text_feature_withprompt = jax.random.normal(k_feat, (B, L, D), jnp.float32)
    pos, blocks, lnf_g, lnf_b, proj = init_params(k_params)
    packed = pack_params(blocks, lnf_g, lnf_b, proj)

    tf = forward(text_feature_withprompt, pos, packed)
    tf = jax.block_until_ready(tf)

    ref = reference(text_feature_withprompt, pos, blocks, lnf_g, lnf_b, proj)
    assert tf.shape == (B, E), tf.shape
    max_err = float(jnp.max(jnp.abs(tf - ref)))
    assert jnp.allclose(tf, ref, rtol=2e-3, atol=2e-3), max_err
    print("KERNEL_OK")
</pallas_src>

<mosaic_0001>
module attributes {stable_mosaic.version = 11 : i64} {
  func.func @_encoder_kernel(%arg0: memref<2x8x32xf32, #tpu.memory_space<vmem>>, %arg1: memref<8x32xf32, #tpu.memory_space<vmem>>, %arg2: memref<8x8xf32, #tpu.memory_space<vmem>>, %arg3: memref<2x3x32x32xf32, #tpu.memory_space<vmem>>, %arg4: memref<2x3x1x32xf32, #tpu.memory_space<vmem>>, %arg5: memref<2x32x32xf32, #tpu.memory_space<vmem>>, %arg6: memref<2x1x32xf32, #tpu.memory_space<vmem>>, %arg7: memref<2x32x128xf32, #tpu.memory_space<vmem>>, %arg8: memref<2x1x128xf32, #tpu.memory_space<vmem>>, %arg9: memref<2x128x32xf32, #tpu.memory_space<vmem>>, %arg10: memref<2x1x32xf32, #tpu.memory_space<vmem>>, %arg11: memref<32x32xf32, #tpu.memory_space<vmem>>, %arg12: memref<1x32xf32, #tpu.memory_space<vmem>>, %arg13: memref<2x32xf32, #tpu.memory_space<vmem>>) attributes {dimension_semantics = [], scalar_prefetch = 0 : i64, scratch_operands = 0 : i64, tpu.core_type = #tpu.core_type<tc>} {
    %c0 = arith.constant 0 : index
    %c0_0 = arith.constant 0 : index
    %c0_1 = arith.constant 0 : index
    %0 = vector.load %arg0[%c0, %c0_0, %c0_1] : memref<2x8x32xf32, #tpu.memory_space<vmem>>, vector<2x8x32xf32>
    %c0_2 = arith.constant 0 : index
    %c0_3 = arith.constant 0 : index
    %1 = vector.load %arg1[%c0_2, %c0_3] : memref<8x32xf32, #tpu.memory_space<vmem>>, vector<8x32xf32>
    %2 = vector.shape_cast %1 : vector<8x32xf32> to vector<1x8x32xf32>
    %3 = vector.broadcast %2 : vector<1x8x32xf32> to vector<2x8x32xf32>
    %4 = arith.addf %0, %3 : vector<2x8x32xf32>
    %5 = vector.shape_cast %4 : vector<2x8x32xf32> to vector<16x32xf32>
    %c0_4 = arith.constant 0 : index
    %c0_5 = arith.constant 0 : index
    %6 = vector.load %arg2[%c0_4, %c0_5] : memref<8x8xf32, #tpu.memory_space<vmem>>, vector<8x8xf32>
    %cst = arith.constant dense<0.000000e+00> : vector<16xf32>
    %7 = vector.multi_reduction <add>, %5, %cst [1] : vector<16x32xf32> to vector<16xf32>
    %8 = vector.shape_cast %7 : vector<16xf32> to vector<16x1xf32>
    %cst_6 = arith.constant 3.200000e+01 : f32
    %9 = vector.broadcast %cst_6 : f32 to vector<16x1xf32>
    %10 = arith.divf %8, %9 : vector<16x1xf32>
    %11 = arith.mulf %5, %5 : vector<16x32xf32>
    %cst_7 = arith.constant dense<0.000000e+00> : vector<16xf32>
    %12 = vector.multi_reduction <add>, %11, %cst_7 [1] : vector<16x32xf32> to vector<16xf32>
    %13 = vector.shape_cast %12 : vector<16xf32> to vector<16x1xf32>
    %cst_8 = arith.constant 3.200000e+01 : f32
    %14 = vector.broadcast %cst_8 : f32 to vector<16x1xf32>
    %15 = arith.divf %13, %14 : vector<16x1xf32>
    %16 = arith.mulf %10, %10 : vector<16x1xf32>
    %17 = arith.subf %15, %16 : vector<16x1xf32>
    %18 = vector.broadcast %10 : vector<16x1xf32> to vector<16x32xf32>
    %19 = arith.subf %5, %18 : vector<16x32xf32>
    %cst_9 = arith.constant 9.99999974E-6 : f32
    %20 = vector.broadcast %cst_9 : f32 to vector<16x1xf32>
    %21 = arith.addf %17, %20 : vector<16x1xf32>
    %22 = math.rsqrt %21 : vector<16x1xf32>
    %23 = vector.broadcast %22 : vector<16x1xf32> to vector<16x32xf32>
    %24 = arith.mulf %19, %23 : vector<16x32xf32>
    %c0_10 = arith.constant 0 : index
    %c0_11 = arith.constant 0 : index
    %c0_12 = arith.constant 0 : index
    %c0_13 = arith.constant 0 : index
    %25 = vector.load %arg3[%c0_10, %c0_11, %c0_12, %c0_13] : memref<2x3x32x32xf32, #tpu.memory_space<vmem>>, vector<1x1x32x32xf32>
    %26 = vector.shape_cast %25 : vector<1x1x32x32xf32> to vector<32x32xf32>
    %cst_14 = arith.constant dense<0.000000e+00> : vector<16x32xf32>
    %27 = tpu.matmul %24, %26, %cst_14 {dimension_numbers = #tpu.dot_dimension_numbers<[1], [0], [0], [1], [0, 0, 1, 1], [], []>} : vector<16x32xf32>, vector<32x32xf32>, vector<16x32xf32> -> vector<16x32xf32>
    %c0_15 = arith.constant 0 : index
    %c0_16 = arith.constant 0 : index
    %c0_17 = arith.constant 0 : index
    %c0_18 = arith.constant 0 : index
    %28 = vector.load %arg4[%c0_15, %c0_16, %c0_17, %c0_18] : memref<2x3x1x32xf32, #tpu.memory_space<vmem>>, vector<1x1x1x32xf32>
    %29 = vector.shape_cast %28 : vector<1x1x1x32xf32> to vector<1x32xf32>
    %30 = vector.broadcast %29 : vector<1x32xf32> to vector<16x32xf32>
    %31 = arith.addf %27, %30 : vector<16x32xf32>
    %c0_19 = arith.constant 0 : index
    %c1 = arith.constant 1 : index
    %c0_20 = arith.constant 0 : index
    %c0_21 = arith.constant 0 : index
    %32 = vector.load %arg3[%c0_19, %c1, %c0_20, %c0_21] : memref<2x3x32x32xf32, #tpu.memory_space<vmem>>, vector<1x1x32x32xf32>
    %33 = vector.shape_cast %32 : vector<1x1x32x32xf32> to vector<32x32xf32>
    %cst_22 = arith.constant dense<0.000000e+00> : vector<16x32xf32>
    %34 = tpu.matmul %24, %33, %cst_22 {dimension_numbers = #tpu.dot_dimension_numbers<[1], [0], [0], [1], [0, 0, 1, 1], [], []>} : vector<16x32xf32>, vector<32x32xf32>, vector<16x32xf32> -> vector<16x32xf32>
    %c0_23 = arith.constant 0 : index
    %c1_24 = arith.constant 1 : index
    %c0_25 = arith.constant 0 : index
    %c0_26 = arith.constant 0 : index
    %35 = vector.load %arg4[%c0_23, %c1_24, %c0_25, %c0_26] : memref<2x3x1x32xf32, #tpu.memory_space<vmem>>, vector<1x1x1x32xf32>
    %36 = vector.shape_cast %35 : vector<1x1x1x32xf32> to vector<1x32xf32>
    %37 = vector.broadcast %36 : vector<1x32xf32> to vector<16x32xf32>
    %38 = arith.addf %34, %37 : vector<16x32xf32>
    %c0_27 = arith.constant 0 : index
    %c2 = arith.constant 2 : index
    %c0_28 = arith.constant 0 : index
    %c0_29 = arith.constant 0 : index
    %39 = vector.load %arg3[%c0_27, %c2, %c0_28, %c0_29] : memref<2x3x32x32xf32, #tpu.memory_space<vmem>>, vector<1x1x32x32xf32>
    %40 = vector.shape_cast %39 : vector<1x1x32x32xf32> to vector<32x32xf32>
    %cst_30 = arith.constant dense<0.000000e+00> : vector<16x32xf32>
    %41 = tpu.matmul %24, %40, %cst_30 {dimension_numbers = #tpu.dot_dimension_numbers<[1], [0], [0], [1], [0, 0, 1, 1], [], []>} : vector<16x32xf32>, vector<32x32xf32>, vector<16x32xf32> -> vector<16x32xf32>
    %c0_31 = arith.constant 0 : index
    %c2_32 = arith.constant 2 : index
    %c0_33 = arith.constant 0 : index
    %c0_34 = arith.constant 0 : index
    %42 = vector.load %arg4[%c0_31, %c2_32, %c0_33, %c0_34] : memref<2x3x1x32xf32, #tpu.memory_space<vmem>>, vector<1x1x1x32xf32>
    %43 = vector.shape_cast %42 : vector<1x1x1x32xf32> to vector<1x32xf32>
    %44 = vector.broadcast %43 : vector<1x32xf32> to vector<16x32xf32>
    %45 = arith.addf %41, %44 : vector<16x32xf32>
    %46 = vector.shape_cast %31 : vector<16x32xf32> to vector<2x8x4x8xf32>
    %47 = tpu.transpose %46, [0, 2, 1, 3] : vector<2x8x4x8xf32> -> vector<2x4x8x8xf32>
    %48 = vector.shape_cast %47 : vector<2x4x8x8xf32> to vector<8x8x8xf32>
    %49 = vector.shape_cast %38 : vector<16x32xf32> to vector<2x8x4x8xf32>
    %50 = tpu.transpose %49, [0, 2, 1, 3] : vector<2x8x4x8xf32> -> vector<2x4x8x8xf32>
    %51 = vector.shape_cast %50 : vector<2x4x8x8xf32> to vector<8x8x8xf32>
    %52 = vector.shape_cast %45 : vector<16x32xf32> to vector<2x8x4x8xf32>
    %53 = tpu.transpose %52, [0, 2, 1, 3] : vector<2x8x4x8xf32> -> vector<2x4x8x8xf32>
    %54 = vector.shape_cast %53 : vector<2x4x8x8xf32> to vector<8x8x8xf32>
    "tpu.trace_start"() <{level = 10 : i32, message = "bqd,bkd->bqk"}> : () -> ()
    %cst_35 = arith.constant dense<0.000000e+00> : vector<8x8x8xf32>
    %55 = tpu.matmul %48, %51, %cst_35 {dimension_numbers = #tpu.dot_dimension_numbers<[2], [2], [1], [1], [0, 0, 0, 1, 1, 1], [0], [0]>} : vector<8x8x8xf32>, vector<8x8x8xf32>, vector<8x8x8xf32> -> vector<8x8x8xf32>
    "tpu.trace_stop"() : () -> ()
    %56 = vector.shape_cast %6 : vector<8x8xf32> to vector<1x8x8xf32>
    %57 = vector.broadcast %56 : vector<1x8x8xf32> to vector<8x8x8xf32>
    %58 = arith.addf %55, %57 : vector<8x8x8xf32>
    %cst_36 = arith.constant dense<0xFF800000> : vector<8x8xf32>
    %59 = vector.multi_reduction <maximumf>, %58, %cst_36 [2] : vector<8x8x8xf32> to vector<8x8xf32>
    %60 = vector.shape_cast %59 : vector<8x8xf32> to vector<8x8x1xf32>
    %61 = vector.broadcast %60 : vector<8x8x1xf32> to vector<8x8x8xf32>
    %62 = arith.subf %58, %61 : vector<8x8x8xf32>
    %63 = math.exp %62 : vector<8x8x8xf32>
    %cst_37 = arith.constant dense<0.000000e+00> : vector<8x8xf32>
    %64 = vector.multi_reduction <add>, %63, %cst_37 [2] : vector<8x8x8xf32> to vector<8x8xf32>
    %65 = vector.shape_cast %64 : vector<8x8xf32> to vector<8x8x1xf32>
    %66 = tpu.reciprocal %65 : vector<8x8x1xf32> -> vector<8x8x1xf32>
    %67 = vector.broadcast %66 : vector<8x8x1xf32> to vector<8x8x8xf32>
    %68 = arith.mulf %63, %67 : vector<8x8x8xf32>
    "tpu.trace_start"() <{level = 10 : i32, message = "bqk,bkd->bqd"}> : () -> ()
    %cst_38 = arith.constant dense<0.000000e+00> : vector<8x8x8xf32>
    %69 = tpu.matmul %68, %54, %cst_38 {dimension_numbers = #tpu.dot_dimension_numbers<[2], [1], [1], [2], [0, 0, 0, 1, 1, 2], [0], [0]>} : vector<8x8x8xf32>, vector<8x8x8xf32>, vector<8x8x8xf32> -> vector<8x8x8xf32>
    "tpu.trace_stop"() : () -> ()
    %70 = vector.shape_cast %69 : vector<8x8x8xf32> to vector<2x4x8x8xf32>
    %71 = tpu.transpose %70, [0, 2, 1, 3] : vector<2x4x8x8xf32> -> vector<2x8x4x8xf32>
    %72 = vector.shape_cast %71 : vector<2x8x4x8xf32> to vector<16x32xf32>
    %c0_39 = arith.constant 0 : index
    %c0_40 = arith.constant 0 : index
    %c0_41 = arith.constant 0 : index
    %73 = vector.load %arg5[%c0_39, %c0_40, %c0_41] : memref<2x32x32xf32, #tpu.memory_space<vmem>>, vector<1x32x32xf32>
    %74 = vector.shape_cast %73 : vector<1x32x32xf32> to vector<32x32xf32>
    %cst_42 = arith.constant dense<0.000000e+00> : vector<16x32xf32>
    %75 = tpu.matmul %72, %74, %cst_42 {dimension_numbers = #tpu.dot_dimension_numbers<[1], [0], [0], [1], [0, 0, 1, 1], [], []>} : vector<16x32xf32>, vector<32x32xf32>, vector<16x32xf32> -> vector<16x32xf32>
    %76 = arith.addf %5, %75 : vector<16x32xf32>
    %c0_43 = arith.constant 0 : index
    %c0_44 = arith.constant 0 : index
    %c0_45 = arith.constant 0 : index
    %77 = vector.load %arg6[%c0_43, %c0_44, %c0_45] : memref<2x1x32xf32, #tpu.memory_space<vmem>>, vector<1x1x32xf32>
    %78 = vector.shape_cast %77 : vector<1x1x32xf32> to vector<1x32xf32>
    %79 = vector.broadcast %78 : vector<1x32xf32> to vector<16x32xf32>
    %80 = arith.addf %76, %79 : vector<16x32xf32>
    %cst_46 = arith.constant dense<0.000000e+00> : vector<16xf32>
    %81 = vector.multi_reduction <add>, %80, %cst_46 [1] : vector<16x32xf32> to vector<16xf32>
    %82 = vector.shape_cast %81 : vector<16xf32> to vector<16x1xf32>
    %cst_47 = arith.constant 3.200000e+01 : f32
    %83 = vector.broadcast %cst_47 : f32 to vector<16x1xf32>
    %84 = arith.divf %82, %83 : vector<16x1xf32>
    %85 = arith.mulf %80, %80 : vector<16x32xf32>
    %cst_48 = arith.constant dense<0.000000e+00> : vector<16xf32>
    %86 = vector.multi_reduction <add>, %85, %cst_48 [1] : vector<16x32xf32> to vector<16xf32>
    %87 = vector.shape_cast %86 : vector<16xf32> to vector<16x1xf32>
    %cst_49 = arith.constant 3.200000e+01 : f32
    %88 = vector.broadcast %cst_49 : f32 to vector<16x1xf32>
    %89 = arith.divf %87, %88 : vector<16x1xf32>
    %90 = arith.mulf %84, %84 : vector<16x1xf32>
    %91 = arith.subf %89, %90 : vector<16x1xf32>
    %92 = vector.broadcast %84 : vector<16x1xf32> to vector<16x32xf32>
    %93 = arith.subf %80, %92 : vector<16x32xf32>
    %cst_50 = arith.constant 9.99999974E-6 : f32
    %94 = vector.broadcast %cst_50 : f32 to vector<16x1xf32>
    %95 = arith.addf %91, %94 : vector<16x1xf32>
    %96 = math.rsqrt %95 : vector<16x1xf32>
    %97 = vector.broadcast %96 : vector<16x1xf32> to vector<16x32xf32>
    %98 = arith.mulf %93, %97 : vector<16x32xf32>
    %c0_51 = arith.constant 0 : index
    %c0_52 = arith.constant 0 : index
    %c0_53 = arith.constant 0 : index
    %99 = vector.load %arg7[%c0_51, %c0_52, %c0_53] : memref<2x32x128xf32, #tpu.memory_space<vmem>>, vector<1x32x128xf32>
    %100 = vector.shape_cast %99 : vector<1x32x128xf32> to vector<32x128xf32>
    %cst_54 = arith.constant dense<0.000000e+00> : vector<16x128xf32>
    %101 = tpu.matmul %98, %100, %cst_54 {dimension_numbers = #tpu.dot_dimension_numbers<[1], [0], [0], [1], [0, 0, 1, 1], [], []>} : vector<16x32xf32>, vector<32x128xf32>, vector<16x128xf32> -> vector<16x128xf32>
    %c0_55 = arith.constant 0 : index
    %c0_56 = arith.constant 0 : index
    %c0_57 = arith.constant 0 : index
    %102 = vector.load %arg8[%c0_55, %c0_56, %c0_57] : memref<2x1x128xf32, #tpu.memory_space<vmem>>, vector<1x1x128xf32>
    %103 = vector.shape_cast %102 : vector<1x1x128xf32> to vector<1x128xf32>
    %104 = vector.broadcast %103 : vector<1x128xf32> to vector<16x128xf32>
    %105 = arith.addf %101, %104 : vector<16x128xf32>
    %cst_58 = arith.constant 1.702000e+00 : f32
    %106 = vector.broadcast %cst_58 : f32 to vector<16x128xf32>
    %107 = arith.mulf %106, %105 : vector<16x128xf32>
    %108 = arith.negf %107 : vector<16x128xf32>
    %109 = math.exp %108 : vector<16x128xf32>
    %cst_59 = arith.constant 1.000000e+00 : f32
    %110 = vector.broadcast %cst_59 : f32 to vector<16x128xf32>
    %111 = arith.addf %110, %109 : vector<16x128xf32>
    %112 = arith.divf %110, %111 : vector<16x128xf32>
    %113 = arith.mulf %105, %112 : vector<16x128xf32>
    %c0_60 = arith.constant 0 : index
    %c0_61 = arith.constant 0 : index
    %c0_62 = arith.constant 0 : index
    %114 = vector.load %arg9[%c0_60, %c0_61, %c0_62] : memref<2x128x32xf32, #tpu.memory_space<vmem>>, vector<1x128x32xf32>
    %115 = vector.shape_cast %114 : vector<1x128x32xf32> to vector<128x32xf32>
    %cst_63 = arith.constant dense<0.000000e+00> : vector<16x32xf32>
    %116 = tpu.matmul %113, %115, %cst_63 {dimension_numbers = #tpu.dot_dimension_numbers<[1], [0], [0], [1], [0, 0, 1, 1], [], []>} : vector<16x128xf32>, vector<128x32xf32>, vector<16x32xf32> -> vector<16x32xf32>
    %117 = arith.addf %80, %116 : vector<16x32xf32>
    %c0_64 = arith.constant 0 : index
    %c0_65 = arith.constant 0 : index
    %c0_66 = arith.constant 0 : index
    %118 = vector.load %arg10[%c0_64, %c0_65, %c0_66] : memref<2x1x32xf32, #tpu.memory_space<vmem>>, vector<1x1x32xf32>
    %119 = vector.shape_cast %118 : vector<1x1x32xf32> to vector<1x32xf32>
    %120 = vector.broadcast %119 : vector<1x32xf32> to vector<16x32xf32>
    %121 = arith.addf %117, %120 : vector<16x32xf32>
    %cst_67 = arith.constant dense<0.000000e+00> : vector<16xf32>
    %122 = vector.multi_reduction <add>, %121, %cst_67 [1] : vector<16x32xf32> to vector<16xf32>
    %123 = vector.shape_cast %122 : vector<16xf32> to vector<16x1xf32>
    %cst_68 = arith.constant 3.200000e+01 : f32
    %124 = vector.broadcast %cst_68 : f32 to vector<16x1xf32>
    %125 = arith.divf %123, %124 : vector<16x1xf32>
    %126 = arith.mulf %121, %121 : vector<16x32xf32>
    %cst_69 = arith.constant dense<0.000000e+00> : vector<16xf32>
    %127 = vector.multi_reduction <add>, %126, %cst_69 [1] : vector<16x32xf32> to vector<16xf32>
    %128 = vector.shape_cast %127 : vector<16xf32> to vector<16x1xf32>
    %cst_70 = arith.constant 3.200000e+01 : f32
    %129 = vector.broadcast %cst_70 : f32 to vector<16x1xf32>
    %130 = arith.divf %128, %129 : vector<16x1xf32>
    %131 = arith.mulf %125, %125 : vector<16x1xf32>
    %132 = arith.subf %130, %131 : vector<16x1xf32>
    %133 = vector.broadcast %125 : vector<16x1xf32> to vector<16x32xf32>
    %134 = arith.subf %121, %133 : vector<16x32xf32>
    %cst_71 = arith.constant 9.99999974E-6 : f32
    %135 = vector.broadcast %cst_71 : f32 to vector<16x1xf32>
    %136 = arith.addf %132, %135 : vector<16x1xf32>
    %137 = math.rsqrt %136 : vector<16x1xf32>
    %138 = vector.broadcast %137 : vector<16x1xf32> to vector<16x32xf32>
    %139 = arith.mulf %134, %138 : vector<16x32xf32>
    %c1_72 = arith.constant 1 : index
    %c0_73 = arith.constant 0 : index
    %c0_74 = arith.constant 0 : index
    %c0_75 = arith.constant 0 : index
    %140 = vector.load %arg3[%c1_72, %c0_73, %c0_74, %c0_75] : memref<2x3x32x32xf32, #tpu.memory_space<vmem>>, vector<1x1x32x32xf32>
    %141 = vector.shape_cast %140 : vector<1x1x32x32xf32> to vector<32x32xf32>
    %cst_76 = arith.constant dense<0.000000e+00> : vector<16x32xf32>
    %142 = tpu.matmul %139, %141, %cst_76 {dimension_numbers = #tpu.dot_dimension_numbers<[1], [0], [0], [1], [0, 0, 1, 1], [], []>} : vector<16x32xf32>, vector<32x32xf32>, vector<16x32xf32> -> vector<16x32xf32>
    %c1_77 = arith.constant 1 : index
    %c0_78 = arith.constant 0 : index
    %c0_79 = arith.constant 0 : index
    %c0_80 = arith.constant 0 : index
    %143 = vector.load %arg4[%c1_77, %c0_78, %c0_79, %c0_80] : memref<2x3x1x32xf32, #tpu.memory_space<vmem>>, vector<1x1x1x32xf32>
    %144 = vector.shape_cast %143 : vector<1x1x1x32xf32> to vector<1x32xf32>
    %145 = vector.broadcast %144 : vector<1x32xf32> to vector<16x32xf32>
    %146 = arith.addf %142, %145 : vector<16x32xf32>
    %c1_81 = arith.constant 1 : index
    %c1_82 = arith.constant 1 : index
    %c0_83 = arith.constant 0 : index
    %c0_84 = arith.constant 0 : index
    %147 = vector.load %arg3[%c1_81, %c1_82, %c0_83, %c0_84] : memref<2x3x32x32xf32, #tpu.memory_space<vmem>>, vector<1x1x32x32xf32>
    %148 = vector.shape_cast %147 : vector<1x1x32x32xf32> to vector<32x32xf32>
    %cst_85 = arith.constant dense<0.000000e+00> : vector<16x32xf32>
    %149 = tpu.matmul %139, %148, %cst_85 {dimension_numbers = #tpu.dot_dimension_numbers<[1], [0], [0], [1], [0, 0, 1, 1], [], []>} : vector<16x32xf32>, vector<32x32xf32>, vector<16x32xf32> -> vector<16x32xf32>
    %c1_86 = arith.constant 1 : index
    %c1_87 = arith.constant 1 : index
    %c0_88 = arith.constant 0 : index
    %c0_89 = arith.constant 0 : index
    %150 = vector.load %arg4[%c1_86, %c1_87, %c0_88, %c0_89] : memref<2x3x1x32xf32, #tpu.memory_space<vmem>>, vector<1x1x1x32xf32>
    %151 = vector.shape_cast %150 : vector<1x1x1x32xf32> to vector<1x32xf32>
    %152 = vector.broadcast %151 : vector<1x32xf32> to vector<16x32xf32>
    %153 = arith.addf %149, %152 : vector<16x32xf32>
    %c1_90 = arith.constant 1 : index
    %c2_91 = arith.constant 2 : index
    %c0_92 = arith.constant 0 : index
    %c0_93 = arith.constant 0 : index
    %154 = vector.load %arg3[%c1_90, %c2_91, %c0_92, %c0_93] : memref<2x3x32x32xf32, #tpu.memory_space<vmem>>, vector<1x1x32x32xf32>
    %155 = vector.shape_cast %154 : vector<1x1x32x32xf32> to vector<32x32xf32>
    %cst_94 = arith.constant dense<0.000000e+00> : vector<16x32xf32>
    %156 = tpu.matmul %139, %155, %cst_94 {dimension_numbers = #tpu.dot_dimension_numbers<[1], [0], [0], [1], [0, 0, 1, 1], [], []>} : vector<16x32xf32>, vector<32x32xf32>, vector<16x32xf32> -> vector<16x32xf32>
    %c1_95 = arith.constant 1 : index
    %c2_96 = arith.constant 2 : index
    %c0_97 = arith.constant 0 : index
    %c0_98 = arith.constant 0 : index
    %157 = vector.load %arg4[%c1_95, %c2_96, %c0_97, %c0_98] : memref<2x3x1x32xf32, #tpu.memory_space<vmem>>, vector<1x1x1x32xf32>
    %158 = vector.shape_cast %157 : vector<1x1x1x32xf32> to vector<1x32xf32>
    %159 = vector.broadcast %158 : vector<1x32xf32> to vector<16x32xf32>
    %160 = arith.addf %156, %159 : vector<16x32xf32>
    %161 = vector.shape_cast %146 : vector<16x32xf32> to vector<2x8x4x8xf32>
    %162 = tpu.transpose %161, [0, 2, 1, 3] : vector<2x8x4x8xf32> -> vector<2x4x8x8xf32>
    %163 = vector.shape_cast %162 : vector<2x4x8x8xf32> to vector<8x8x8xf32>
    %164 = vector.shape_cast %153 : vector<16x32xf32> to vector<2x8x4x8xf32>
    %165 = tpu.transpose %164, [0, 2, 1, 3] : vector<2x8x4x8xf32> -> vector<2x4x8x8xf32>
    %166 = vector.shape_cast %165 : vector<2x4x8x8xf32> to vector<8x8x8xf32>
    %167 = vector.shape_cast %160 : vector<16x32xf32> to vector<2x8x4x8xf32>
    %168 = tpu.transpose %167, [0, 2, 1, 3] : vector<2x8x4x8xf32> -> vector<2x4x8x8xf32>
    %169 = vector.shape_cast %168 : vector<2x4x8x8xf32> to vector<8x8x8xf32>
    "tpu.trace_start"() <{level = 10 : i32, message = "bqd,bkd->bqk"}> : () -> ()
    %cst_99 = arith.constant dense<0.000000e+00> : vector<8x8x8xf32>
    %170 = tpu.matmul %163, %166, %cst_99 {dimension_numbers = #tpu.dot_dimension_numbers<[2], [2], [1], [1], [0, 0, 0, 1, 1, 1], [0], [0]>} : vector<8x8x8xf32>, vector<8x8x8xf32>, vector<8x8x8xf32> -> vector<8x8x8xf32>
    "tpu.trace_stop"() : () -> ()
    %171 = vector.shape_cast %6 : vector<8x8xf32> to vector<1x8x8xf32>
    %172 = vector.broadcast %171 : vector<1x8x8xf32> to vector<8x8x8xf32>
    %173 = arith.addf %170, %172 : vector<8x8x8xf32>
    %cst_100 = arith.constant dense<0xFF800000> : vector<8x8xf32>
    %174 = vector.multi_reduction <maximumf>, %173, %cst_100 [2] : vector<8x8x8xf32> to vector<8x8xf32>
    %175 = vector.shape_cast %174 : vector<8x8xf32> to vector<8x8x1xf32>
    %176 = vector.broadcast %175 : vector<8x8x1xf32> to vector<8x8x8xf32>
    %177 = arith.subf %173, %176 : vector<8x8x8xf32>
    %178 = math.exp %177 : vector<8x8x8xf32>
    %cst_101 = arith.constant dense<0.000000e+00> : vector<8x8xf32>
    %179 = vector.multi_reduction <add>, %178, %cst_101 [2] : vector<8x8x8xf32> to vector<8x8xf32>
    %180 = vector.shape_cast %179 : vector<8x8xf32> to vector<8x8x1xf32>
    %181 = tpu.reciprocal %180 : vector<8x8x1xf32> -> vector<8x8x1xf32>
    %182 = vector.broadcast %181 : vector<8x8x1xf32> to vector<8x8x8xf32>
    %183 = arith.mulf %178, %182 : vector<8x8x8xf32>
    "tpu.trace_start"() <{level = 10 : i32, message = "bqk,bkd->bqd"}> : () -> ()
    %cst_102 = arith.constant dense<0.000000e+00> : vector<8x8x8xf32>
    %184 = tpu.matmul %183, %169, %cst_102 {dimension_numbers = #tpu.dot_dimension_numbers<[2], [1], [1], [2], [0, 0, 0, 1, 1, 2], [0], [0]>} : vector<8x8x8xf32>, vector<8x8x8xf32>, vector<8x8x8xf32> -> vector<8x8x8xf32>
    "tpu.trace_stop"() : () -> ()
    %185 = vector.shape_cast %184 : vector<8x8x8xf32> to vector<2x4x8x8xf32>
    %186 = tpu.transpose %185, [0, 2, 1, 3] : vector<2x4x8x8xf32> -> vector<2x8x4x8xf32>
    %187 = vector.shape_cast %186 : vector<2x8x4x8xf32> to vector<16x32xf32>
    %c1_103 = arith.constant 1 : index
    %c0_104 = arith.constant 0 : index
    %c0_105 = arith.constant 0 : index
    %188 = vector.load %arg5[%c1_103, %c0_104, %c0_105] : memref<2x32x32xf32, #tpu.memory_space<vmem>>, vector<1x32x32xf32>
    %189 = vector.shape_cast %188 : vector<1x32x32xf32> to vector<32x32xf32>
    %cst_106 = arith.constant dense<0.000000e+00> : vector<16x32xf32>
    %190 = tpu.matmul %187, %189, %cst_106 {dimension_numbers = #tpu.dot_dimension_numbers<[1], [0], [0], [1], [0, 0, 1, 1], [], []>} : vector<16x32xf32>, vector<32x32xf32>, vector<16x32xf32> -> vector<16x32xf32>
    %191 = arith.addf %121, %190 : vector<16x32xf32>
    %c1_107 = arith.constant 1 : index
    %c0_108 = arith.constant 0 : index
    %c0_109 = arith.constant 0 : index
    %192 = vector.load %arg6[%c1_107, %c0_108, %c0_109] : memref<2x1x32xf32, #tpu.memory_space<vmem>>, vector<1x1x32xf32>
    %193 = vector.shape_cast %192 : vector<1x1x32xf32> to vector<1x32xf32>
    %194 = vector.broadcast %193 : vector<1x32xf32> to vector<16x32xf32>
    %195 = arith.addf %191, %194 : vector<16x32xf32>
    %cst_110 = arith.constant dense<0.000000e+00> : vector<16xf32>
    %196 = vector.multi_reduction <add>, %195, %cst_110 [1] : vector<16x32xf32> to vector<16xf32>
    %197 = vector.shape_cast %196 : vector<16xf32> to vector<16x1xf32>
    %cst_111 = arith.constant 3.200000e+01 : f32
    %198 = vector.broadcast %cst_111 : f32 to vector<16x1xf32>
    %199 = arith.divf %197, %198 : vector<16x1xf32>
    %200 = arith.mulf %195, %195 : vector<16x32xf32>
    %cst_112 = arith.constant dense<0.000000e+00> : vector<16xf32>
    %201 = vector.multi_reduction <add>, %200, %cst_112 [1] : vector<16x32xf32> to vector<16xf32>
    %202 = vector.shape_cast %201 : vector<16xf32> to vector<16x1xf32>
    %cst_113 = arith.constant 3.200000e+01 : f32
    %203 = vector.broadcast %cst_113 : f32 to vector<16x1xf32>
    %204 = arith.divf %202, %203 : vector<16x1xf32>
    %205 = arith.mulf %199, %199 : vector<16x1xf32>
    %206 = arith.subf %204, %205 : vector<16x1xf32>
    %207 = vector.broadcast %199 : vector<16x1xf32> to vector<16x32xf32>
    %208 = arith.subf %195, %207 : vector<16x32xf32>
    %cst_114 = arith.constant 9.99999974E-6 : f32
    %209 = vector.broadcast %cst_114 : f32 to vector<16x1xf32>
    %210 = arith.addf %206, %209 : vector<16x1xf32>
    %211 = math.rsqrt %210 : vector<16x1xf32>
    %212 = vector.broadcast %211 : vector<16x1xf32> to vector<16x32xf32>
    %213 = arith.mulf %208, %212 : vector<16x32xf32>
    %c1_115 = arith.constant 1 : index
    %c0_116 = arith.constant 0 : index
    %c0_117 = arith.constant 0 : index
    %214 = vector.load %arg7[%c1_115, %c0_116, %c0_117] : memref<2x32x128xf32, #tpu.memory_space<vmem>>, vector<1x32x128xf32>
    %215 = vector.shape_cast %214 : vector<1x32x128xf32> to vector<32x128xf32>
    %cst_118 = arith.constant dense<0.000000e+00> : vector<16x128xf32>
    %216 = tpu.matmul %213, %215, %cst_118 {dimension_numbers = #tpu.dot_dimension_numbers<[1], [0], [0], [1], [0, 0, 1, 1], [], []>} : vector<16x32xf32>, vector<32x128xf32>, vector<16x128xf32> -> vector<16x128xf32>
    %c1_119 = arith.constant 1 : index
    %c0_120 = arith.constant 0 : index
    %c0_121 = arith.constant 0 : index
    %217 = vector.load %arg8[%c1_119, %c0_120, %c0_121] : memref<2x1x128xf32, #tpu.memory_space<vmem>>, vector<1x1x128xf32>
    %218 = vector.shape_cast %217 : vector<1x1x128xf32> to vector<1x128xf32>
    %219 = vector.broadcast %218 : vector<1x128xf32> to vector<16x128xf32>
    %220 = arith.addf %216, %219 : vector<16x128xf32>
    %cst_122 = arith.constant 1.702000e+00 : f32
    %221 = vector.broadcast %cst_122 : f32 to vector<16x128xf32>
    %222 = arith.mulf %221, %220 : vector<16x128xf32>
    %223 = arith.negf %222 : vector<16x128xf32>
    %224 = math.exp %223 : vector<16x128xf32>
    %cst_123 = arith.constant 1.000000e+00 : f32
    %225 = vector.broadcast %cst_123 : f32 to vector<16x128xf32>
    %226 = arith.addf %225, %224 : vector<16x128xf32>
    %227 = arith.divf %225, %226 : vector<16x128xf32>
    %228 = arith.mulf %220, %227 : vector<16x128xf32>
    %c1_124 = arith.constant 1 : index
    %c0_125 = arith.constant 0 : index
    %c0_126 = arith.constant 0 : index
    %229 = vector.load %arg9[%c1_124, %c0_125, %c0_126] : memref<2x128x32xf32, #tpu.memory_space<vmem>>, vector<1x128x32xf32>
    %230 = vector.shape_cast %229 : vector<1x128x32xf32> to vector<128x32xf32>
    %cst_127 = arith.constant dense<0.000000e+00> : vector<16x32xf32>
    %231 = tpu.matmul %228, %230, %cst_127 {dimension_numbers = #tpu.dot_dimension_numbers<[1], [0], [0], [1], [0, 0, 1, 1], [], []>} : vector<16x128xf32>, vector<128x32xf32>, vector<16x32xf32> -> vector<16x32xf32>
    %232 = arith.addf %195, %231 : vector<16x32xf32>
    %c1_128 = arith.constant 1 : index
    %c0_129 = arith.constant 0 : index
    %c0_130 = arith.constant 0 : index
    %233 = vector.load %arg10[%c1_128, %c0_129, %c0_130] : memref<2x1x32xf32, #tpu.memory_space<vmem>>, vector<1x1x32xf32>
    %234 = vector.shape_cast %233 : vector<1x1x32xf32> to vector<1x32xf32>
    %235 = vector.broadcast %234 : vector<1x32xf32> to vector<16x32xf32>
    %236 = arith.addf %232, %235 : vector<16x32xf32>
    %237 = vector.shape_cast %236 : vector<16x32xf32> to vector<2x8x32xf32>
    %238 = vector.extract_strided_slice %237 {offsets = [0, 7, 0], sizes = [2, 1, 32], strides = [1, 1, 1]} : vector<2x8x32xf32> to vector<2x1x32xf32>
    %239 = vector.shape_cast %238 : vector<2x1x32xf32> to vector<2x32xf32>
    %cst_131 = arith.constant dense<0.000000e+00> : vector<2xf32>
    %240 = vector.multi_reduction <add>, %239, %cst_131 [1] : vector<2x32xf32> to vector<2xf32>
    %241 = vector.shape_cast %240 : vector<2xf32> to vector<2x1xf32>
    %cst_132 = arith.constant 3.200000e+01 : f32
    %242 = vector.broadcast %cst_132 : f32 to vector<2x1xf32>
    %243 = arith.divf %241, %242 : vector<2x1xf32>
    %244 = arith.mulf %239, %239 : vector<2x32xf32>
    %cst_133 = arith.constant dense<0.000000e+00> : vector<2xf32>
    %245 = vector.multi_reduction <add>, %244, %cst_133 [1] : vector<2x32xf32> to vector<2xf32>
    %246 = vector.shape_cast %245 : vector<2xf32> to vector<2x1xf32>
    %cst_134 = arith.constant 3.200000e+01 : f32
    %247 = vector.broadcast %cst_134 : f32 to vector<2x1xf32>
    %248 = arith.divf %246, %247 : vector<2x1xf32>
    %249 = arith.mulf %243, %243 : vector<2x1xf32>
    %250 = arith.subf %248, %249 : vector<2x1xf32>
    %251 = vector.broadcast %243 : vector<2x1xf32> to vector<2x32xf32>
    %252 = arith.subf %239, %251 : vector<2x32xf32>
    %cst_135 = arith.constant 9.99999974E-6 : f32
    %253 = vector.broadcast %cst_135 : f32 to vector<2x1xf32>
    %254 = arith.addf %250, %253 : vector<2x1xf32>
    %255 = math.rsqrt %254 : vector<2x1xf32>
    %256 = vector.broadcast %255 : vector<2x1xf32> to vector<2x32xf32>
    %257 = arith.mulf %252, %256 : vector<2x32xf32>
    %c0_136 = arith.constant 0 : index
    %c0_137 = arith.constant 0 : index
    %258 = vector.load %arg11[%c0_136, %c0_137] : memref<32x32xf32, #tpu.memory_space<vmem>>, vector<32x32xf32>
    %cst_138 = arith.constant dense<0.000000e+00> : vector<2x32xf32>
    %259 = tpu.matmul %257, %258, %cst_138 {dimension_numbers = #tpu.dot_dimension_numbers<[1], [0], [0], [1], [0, 0, 1, 1], [], []>} : vector<2x32xf32>, vector<32x32xf32>, vector<2x32xf32> -> vector<2x32xf32>
    %c0_139 = arith.constant 0 : index
    %c0_140 = arith.constant 0 : index
    %260 = vector.load %arg12[%c0_139, %c0_140] : memref<1x32xf32, #tpu.memory_space<vmem>>, vector<1x32xf32>
    %261 = vector.broadcast %260 : vector<1x32xf32> to vector<2x32xf32>
    %262 = arith.addf %259, %261 : vector<2x32xf32>
    %c0_141 = arith.constant 0 : index
    %c0_142 = arith.constant 0 : index
    %263 = vector.load %arg13[%c0_141, %c0_142] : memref<2x32xf32, #tpu.memory_space<vmem>>, vector<2x32xf32>
    tpu.vector_store %arg13[%c0_141, %c0_142], %262 {strides = array<i32>} : memref<2x32xf32, #tpu.memory_space<vmem>>, vector<2x32xf32>,
    return
  }
}

</mosaic_0001>

<bundles_post_ra>
// kernel: tpu_custom_call.1
= control target key start
LH: loop header
LB: loop body
LE: loop exit
PB: predicated region body
PF: predicated region fallthrough
CT: control target
= control target key end

     0   :  { %18 = vsyncpa [#allocation3], 0  ;;  %s8550_s0 = inlined_call_operand.hbm [shape: f32[2,8,32], index: 0, kind: input, shape index: {}]   ;;  %s8551_s1 = inlined_call_operand.hbm [shape: f32[8,32], index: 1, kind: input, shape index: {}]   ;;  %s8552_s2 = inlined_call_operand.hbm [shape: f32[8,8], index: 2, kind: input, shape index: {}]   ;;  %s8553_s3 = inlined_call_operand.vmem [shape: f32[2,3,32,32], index: 3, kind: input, shape index: {}]   ;;  %s8554_s4 = inlined_call_operand.vmem [shape: f32[2,3,1,32], index: 4, kind: input, shape index: {}]   ;;  %s8555_s5 = inlined_call_operand.vmem [shape: f32[2,32,32], index: 5, kind: input, shape index: {}]   ;;  %s8556_s6 = inlined_call_operand.vmem [shape: f32[2,1,32], index: 6, kind: input, shape index: {}]   ;;  %s8557_s7 = inlined_call_operand.vmem [shape: f32[2,32,128], index: 7, kind: input, shape index: {}]   ;;  %s8558_s8 = inlined_call_operand.vmem [shape: f32[2,1,128], index: 8, kind: input, shape index: {}]   ;;  %s8559_s9 = inlined_call_operand.vmem [shape: f32[2,128,32], index: 9, kind: input, shape index: {}]   ;;  %s8560_s10 = inlined_call_operand.vmem [shape: f32[2,1,32], index: 10, kind: input, shape index: {}]   ;;  %s8561_s11 = inlined_call_operand.hbm [shape: f32[32,32], index: 11, kind: input, shape index: {}]   ;;  %s8562_s12 = inlined_call_operand.vmem [shape: f32[1,32], index: 12, kind: input, shape index: {}]   ;;  %s8563_s13 = inlined_call_operand.hbm [shape: f32[2,32], index: 13, kind: output, shape index: {}]  }
   0x1   :  { %19 = vsyncpa [#allocation6], 0 }
   0x2   :  { %20 = vsyncpa [#allocation9], 0 }
   0x3   :  { %21 = vsyncpa [#allocation4], 0  ;;  %s7370_s25 = smov [#allocation5]   ;;  %s7371_s27 = smov [#allocation2]  }
   0x4   :  { %s40_s26 = sshll.u32 %s7370_s25, 4  ;;  %s27_s28 = sshll.u32 %s7371_s27, 4  ;;  %s41_s26 = int_to_ptr.vmem [resolvable:$true] %s40_s26  ;;  %s28_s28 = int_to_ptr.vmem [resolvable:$true] %s27_s28 }
   0x5   :  { %s7270_s29 = scalar_lea.vmem %s41_s26, 128  ;;  %p7275_p1 = scmp.lt.s32.totalorder %s41_s26, %s41_s26 }
   0x6   :  { %p7271_p0 = scmp.ne.s32.totalorder %s41_s26, %s7270_s29  ;;  %p7276_p2 = scmp.lt.s32.totalorder %s7270_s29, %s7270_s29 }
   0x8   :  { %p7277_p3 = por %p7276_p2, %p7275_p1 }
   0xa   :  { %p7278_p4 = pnand %p7277_p3, %p7271_p0 }
   0xc   :  { %7281 = shalt.err (!%p7278_p4)
}
   0xd   :  { %43 = dma.hbm_to_vmem [thread:$0]  %s8551_s1, 128, %s41_s26, [#allocation6]  }
   0xe   :  { %s7290_s15 = scalar_lea.vmem %s28_s28, 256  ;;  %p7295_p6 = scmp.lt.s32.totalorder %s28_s28, %s28_s28 }
   0xf   :  { %p7291_p5 = scmp.ne.s32.totalorder %s28_s28, %s7290_s15  ;;  %p7296_p7 = scmp.lt.s32.totalorder %s7290_s15, %s7290_s15 }
  0x11   :  { %p7297_p8 = por %p7296_p7, %p7295_p6 }
  0x13   :  { %p7298_p9 = pnand %p7297_p8, %p7291_p5 }
  0x15   :  { %7301 = shalt.err (!%p7298_p9)
}
  0x16   :  { %s7372_s16 = smov 128   ;;  %s7373_s17 = smov 8  }
  0x17   :  { %33 = dma.hbm_to_vmem [thread:$0]  %s8550_s0, 256, %s28_s28, [#allocation3], %s7372_s16, %s7372_s16, %s7373_s17  }
  0x18   :  { %s7374_s20 = smov [#allocation7]   ;;  %s7375_s22 = smov [#allocation8]  }
  0x19   :  { %s50_s21 = sshll.u32 %s7374_s20, 4  ;;  %s75_s23 = sshll.u32 %s7375_s22, 4  ;;  %s51_s21 = int_to_ptr.vmem [resolvable:$true] %s50_s21  ;;  %s76_s23 = int_to_ptr.vmem [resolvable:$true] %s75_s23 }
  0x1a   :  { %s7310_s1 = scalar_lea.vmem %s51_s21, 128  ;;  %p7315_p11 = scmp.lt.s32.totalorder %s51_s21, %s51_s21 }
  0x1b   :  { %p7311_p10 = scmp.ne.s32.totalorder %s51_s21, %s7310_s1  ;;  %p7316_p12 = scmp.lt.s32.totalorder %s7310_s1, %s7310_s1 }
  0x1d   :  { %p7317_p13 = por %p7316_p12, %p7315_p11 }
  0x1f   :  { %p7318_p0 = pnand %p7317_p13, %p7311_p10 }
  0x21   :  { %7321 = shalt.err (!%p7318_p0)
}
  0x22   :  { %53 = dma.hbm_to_vmem [thread:$0]  %s8552_s2, 128, %s51_s21, [#allocation6]  }
  0x23   :  { %s7330_s26 = scalar_lea.vmem %s76_s23, 512  ;;  %p7335_p2 = scmp.lt.s32.totalorder %s76_s23, %s76_s23 }
  0x24   :  { %p7331_p1 = scmp.ne.s32.totalorder %s76_s23, %s7330_s26  ;;  %p7336_p3 = scmp.lt.s32.totalorder %s7330_s26, %s7330_s26 }
  0x26   :  { %p7337_p4 = por %p7336_p3, %p7335_p2 }
  0x28   :  { %p7338_p5 = pnand %p7337_p4, %p7331_p1 }
  0x2a   :  { %7341 = shalt.err (!%p7338_p5)
}
  0x2b   :  { %81 = dma.hbm_to_vmem [thread:$0]  %s8561_s11, 512, %s76_s23, [#allocation9], %s7372_s16, %s7372_s16, %s7373_s17  }
  0x2c   :  { %7362 = dma.done.wait [#allocation3], 256  }
  0x2d   :  { %7363 = vsyncadd [#allocation3], 4294967040 }
  0x2e   :  { %7364 = dma.done.wait [#allocation6], 256  }
  0x2f   :  { %7365 = vsyncadd [#allocation6], 4294967040 }
  0x30   :  { %7366 = dma.done.wait [#allocation9], 512  }
  0x31   :  { %7367 = vsyncadd [#allocation9], 4294966784  ;;  %v96_v0 = vld [vmem:[#allocation2] sm:$0xff]  ;;  %v98_v1 = vld [vmem:[#allocation5] sm:$0xff]  ;;  %vm102_vm0 = vcmask 261120   ;;  %s7376_s18 = smov 120   ;;  %v427_v59 = vlaneseq }
  0x32   :  { %v97_v2 = vld [vmem:[#allocation2 + $0x8] sm:$0xff]  ;;  %v7470_v3 = vadd.f32 %v98_v1, %v96_v0  ;;  %v137_v11 = vld [vmem:[%s8553_s3 + $0x18] sm:$0xff]  ;;  %v136_v13 = vld [vmem:[%s8553_s3 + $0x10] sm:$0xff]  ;;  %s7377_s21 = smov 112   ;;  %s7378_s22 = smov 104   ;;  %v7379_v56 = vmov 0.0  }
  0x33   :  { %v7472_v4 = vadd.f32 %v98_v1, %v97_v2  ;;  %v6473_v12 = vld [vmem:[%s8553_s3 + $0x58] sm:$0xff]  ;;  %6794 = vmatprep.subr.mxu1 %v137_v11  ;;  %v6472_v14 = vld [vmem:[%s8553_s3 + $0x50] sm:$0xff]  ;;  %v135_v15 = vld [vmem:[%s8553_s3 + $0x8] sm:$0xff]  ;;  %vm7380_vm1 = vmmov 0   ;;  %v7381_v57 = vmov 1983009808  }
  0x34   :  { %v103_v5 = vsel %vm102_vm0, %v7470_v3, 0.0  ;;  %v112_v6 = vmul.f32 %v7470_v3, %v7470_v3  ;;  %6816 = vmatprep.subr.mxu0 %v6473_v12  ;;  %6795 = vmatpush3.msra.mxu1 %v137_v11  ;;  %v6471_v16 = vld [vmem:[%s8553_s3 + $0x48] sm:$0xff]  ;;  %v134_v17 = vld [vmem:[%s8553_s3] sm:$0xff]  ;;  %v6465_v19 = vld [vmem:[%s8553_s3 + $0x38] sm:$0xff]  ;;  %v425_v58 = vunpack.c.l.s4 %v7381_v57  ;;  %v7382_v61 = vmov 1934713408  }
  0x35   :  { %v113_v7 = vmul.f32 %v7472_v4, %v7472_v4  ;;  %104 = vadd.xlane.f32.xlu0 %v103_v5  ;;  %v106_v9 = vsel %vm102_vm0, %v7472_v4, 0.0  ;;  %6817 = vmatpush3.msra.mxu0 %v6473_v12  ;;  %v6470_v18 = vld [vmem:[%s8553_s3 + $0x40] sm:$0xff]  ;;  %v6464_v40 = vld [vmem:[%s8553_s3 + $0x30] sm:$0xff]  ;;  %v6463_v41 = vld [vmem:[%s8553_s3 + $0x28] sm:$0xff]  ;;  %v457_v62 = vunpack.c.l.s4 %v7382_v61  ;;  %v428_v0 = vshrl.u32 %v427_v59, 7  ;;  %s7383_s23 = smov 16  }
  0x36   :  { %v114_v8 = vsel %vm102_vm0, %v112_v6, 0.0  ;;  %6796 = vmatprep.subr.mxu1 %v136_v13  ;;  %6818 = vmatprep.subr.mxu0 %v6472_v14  ;;  %v6462_v42 = vld [vmem:[%s8553_s3 + $0x20] sm:$0xff]  ;;  %v426_v63 = vunpack.c.0.s8 %v425_v58  ;;  %vm1278_vm2 = vcmask 64512   ;;  %s7384_s1 = smov 24   ;;  %vm2857_vm3 = vcmask 130048  }
  0x37   :  { %115 = vadd.xlane.f32.xlu1 %v114_v8  ;;  %v117_v10 = vsel %vm102_vm0, %v113_v7, 0.0  ;;  %6797 = vmatpush3.msra.mxu1 %v136_v13  ;;  %v7531_v43 = vld [vmem:[%s8554_s4 + $0x2] ss:$0 sm:$0xff]  ;;  %v6459_v47 = vld [vmem:[%s8554_s4] ss:$0 sm:$0xff]  ;;  %v458_v5 = vunpack.c.0.s8 %v457_v62  ;;  %vm2860_vm4 = vcmask 195584  }
  0x38   :  { %6819 = vmatpush3.msra.mxu0 %v6472_v14  ;;  %6798 = vmatprep.subr.mxu1 %v135_v15  ;;  %v6467_v51 = vld [vmem:[%s8554_s4 + $0x1] ss:$0 sm:$0xff]  ;;  %v7575_v6 = vsub.s32 %v426_v63, %v428_v0  ;;  %vm6308_vm5 = vcmask 253952   ;;  %vm6304_vm6 = vcmask 261127   ;;  %vm6366_vm7 = vcmask 1041409  }
  0x39   :  { %107 = vadd.xlane.f32.xlu0 %v106_v9  ;;  %6799 = vmatpush3.msra.mxu1 %v135_v15  ;;  %v7577_v13 = vsub.s32 %v458_v5, %v428_v0  ;;  %vm6440_vm8 = vcmask 254976  }
  0x3a   :  { %6820 = vmatprep.subr.mxu0 %v6471_v16  ;;  %6800 = vmatprep.subr.mxu1 %v134_v17 }
  0x3b   :  { %118 = vadd.xlane.f32.xlu1 %v117_v10  ;;  %6821 = vmatpush3.msra.mxu0 %v6471_v16 }
  0x3c   :  { %6801 = vmatpush3.msra.mxu1 %v134_v17  ;;  %6822 = vmatprep.subr.mxu0 %v6470_v18 }
  0x3d   :  { %6805 = vmatprep.subr.mxu1 %v6465_v19  ;;  %6823 = vmatpush3.msra.mxu0 %v6470_v18 }
  0x3e   :  { %6847 = vmatprep.subr.mxu0 %v7379_v56 }
  0xbe   :  { %v105_v20 = vpop.xlane.xlu0 %104 }
  0xbf   :  { %v110_v21 = vmul.f32 0.03125, %v105_v20 }
  0xc0   :  { %v116_v22 = vpop.xlane.xlu1 %115 }
  0xc1   :  { %v122_v23 = vmul.f32 %v110_v21, %v110_v21  ;;  %v120_v24 = vmul.f32 0.03125, %v116_v22  ;;  %v126_v34 = vsub.f32 %v7470_v3, %v110_v21 }
  0xc2   :  { %v108_v25 = vpop.xlane.xlu0 %107 }
  0xc3   :  { %v124_v26 = vsub.f32 %v120_v24, %v122_v23  ;;  %v111_v27 = vmul.f32 0.03125, %v108_v25 }
  0xc4   :  { %v119_v28 = vpop.xlane.xlu1 %118 }
  0xc5   :  { %v128_v29 = vadd.f32 1e-05, %v124_v26  ;;  %v123_v30 = vmul.f32 %v111_v27, %v111_v27  ;;  %v121_v31 = vmul.f32 0.03125, %v119_v28  ;;  %v127_v37 = vsub.f32 %v7472_v4, %v111_v27 }
  0xc7   :  { %7161 = vrsqrt.f32 %v128_v29  ;;  %v125_v32 = vsub.f32 %v121_v31, %v123_v30 }
  0xc9   :  { %v129_v33 = vadd.f32 1e-05, %v125_v32 }
  0xcb   :  { %7163 = vrsqrt.f32 %v129_v33 }
  0xd4   :  { %v7162_v35 = vpop.eup %7161 }
  0xd5   :  { %v132_v36 = vmul.f32 %v7162_v35, %v126_v34 }
  0xd7   :  { %6802 = vmatprep.mubr.msk.f32.mxu1 %vm102_vm0, %v132_v36  ;;  %6824 = vmatprep.mubr.msk.f32.mxu0 %vm102_vm0, %v132_v36 }
  0xd8   :  { %v7164_v38 = vpop.eup %7163 }
  0xd9   :  { %v133_v39 = vmul.f32 %v7164_v38, %v127_v37 }
  0xdb   :  { %6803 = vmatmul.mubr.msk.f32.vlgmr.msra.gmra.mxu1 %vm102_vm0, %v133_v39  ;;  %6825 = vmatmul.mubr.msk.f32.vlgmr.msra.gmra.mxu0 %vm102_vm0, %v133_v39 }
  0xdc   :  { %6806 = vmatpush3.msra.mxu1 %v6465_v19  ;;  %6813 = vmatprep.mubr.msk.f32.mxu1 %vm102_vm0, %v132_v36 }
  0xdd   :  { %6807 = vmatprep.subr.mxu1 %v6464_v40  ;;  %6849 = vmatprep.mubr.msk.f32.mxu0 %vm7380_vm1, %v7379_v56 }
  0xde   :  { %6808 = vmatpush3.msra.mxu1 %v6464_v40 }
  0xdf   :  { %6809 = vmatprep.subr.mxu1 %v6463_v41 }
  0xe0   :  { %6810 = vmatpush3.msra.mxu1 %v6463_v41 }
  0xe1   :  { %6811 = vmatprep.subr.mxu1 %v6462_v42 }
  0xe2   :  { %6812 = vmatpush3.msra.mxu1 %v6462_v42 }
  0xe3   :  { %6814 = vmatmul.mubr.msk.f32.vlgmr.msra.gmra.mxu1 %vm102_vm0, %v133_v39  ;;  %6827 = vmatprep.subr.mxu1 %v7379_v56 }
  0xe4   :  { %6829 = vmatprep.mubr.msk.f32.mxu1 %vm7380_vm1, %v7379_v56 }
 0x19b   :  { %v6804_v44 = vpop.f32.mrf.mxu1  ;;  %v6826_v45 = vpop.f32.mrf.mxu0 }
 0x19c   :  { %v7534_v46 = vadd.f32 %v6826_v45, %v7531_v43  ;;  %v7561_v55 = vadd.f32 %v6804_v44, %v6459_v47 }
 0x19d   :  { %v217_v48 = vpop.f32.mrf.mxu1 }
 0x19e   :  { %v7539_v49 = vadd.f32 %v6459_v47, %v217_v48 }
 0x1a0   :  { %404 = vrot.lane.b32.xlu1 %v7539_v49, %s7376_s18 }
 0x1a3   :  { %v6815_v50 = vpop.f32.mrf.mxu1 }
 0x1a4   :  { %v7551_v54 = vadd.f32 %v6815_v50, %v6467_v51 }
 0x1a5   :  { %v305_v52 = vpop.f32.mrf.mxu1 }
 0x1a6   :  { %v306_v53 = vadd.f32 %v6467_v51, %v305_v52 }
 0x1a8   :  { %696 = vrot.lane.b32.xlu0 %v306_v53, %s7376_s18  ;;  %702 = vrot.lane.b32.xlu1 %v306_v53, %s7377_s21 }
 0x1ac   :  { %410 = vrot.lane.b32.xlu0 %v7539_v49, %s7377_s21  ;;  %708 = vrot.lane.b32.xlu1 %v306_v53, %s7378_s22 }
 0x1b0   :  { %698 = vrot.lane.b32.xlu0 %v7551_v54, %s7376_s18  ;;  %416 = vrot.lane.b32.xlu1 %v7539_v49, %s7378_s22 }
 0x1b4   :  { %710 = vrot.lane.b32.xlu0 %v7551_v54, %s7378_s22  ;;  %704 = vrot.lane.b32.xlu1 %v7551_v54, %s7377_s21 }
 0x1b8   :  { %412 = vrot.lane.b32.xlu0 %v7561_v55, %s7377_s21  ;;  %406 = vrot.lane.b32.xlu1 %v7561_v55, %s7376_s18 }
 0x1bc   :  { %418 = vrot.lane.b32.xlu1 %v7561_v55, %s7378_s22 }
 0x212   :  { %v405_v60 = vpop.permute.xlu1 %404 }
 0x21a   :  { %v697_v1 = vpop.permute.xlu0 %696  ;;  %v703_v2 = vpop.permute.xlu1 %702 }
 0x21b   :  { %v714_v7 = vcombine.low %v306_v53, %v703_v2  ;;  %v715_v8 = vcombine.high %v306_v53, %v703_v2 }
 0x21d   :  { %v722_v14 = vrot.slane %v714_v7, %v7575_v6  ;;  %v729_v15 = vrot.slane %v715_v8, %v7575_v6 }
 0x21e   :  { %v411_v9 = vpop.permute.xlu0 %410  ;;  %v709_v10 = vpop.permute.xlu1 %708 }
 0x21f   :  { %v730_v11 = vcombine.low %v697_v1, %v709_v10  ;;  %v731_v12 = vcombine.high %v697_v1, %v709_v10  ;;  %v422_v18 = vcombine.low %v7539_v49, %v411_v9  ;;  %v423_v19 = vcombine.high %v7539_v49, %v411_v9 }
 0x221   :  { %v738_v16 = vrot.slane %v730_v11, %v7575_v6  ;;  %v745_v17 = vrot.slane %v731_v12, %v7575_v6  ;;  %v430_v32 = vrot.slane %v422_v18, %v7575_v6  ;;  %v437_v33 = vrot.slane %v423_v19, %v7575_v6 }
 0x222   :  { %v417_v20 = vpop.permute.xlu1 %416  ;;  %v699_v25 = vpop.permute.xlu0 %698 }
 0x223   :  { %v746_v21 = vcombine.low %v722_v14, %v738_v16  ;;  %v747_v22 = vcombine.high %v722_v14, %v738_v16  ;;  %v762_v23 = vcombine.low %v729_v15, %v745_v17  ;;  %v763_v24 = vcombine.high %v729_v15, %v745_v17 }
 0x224   :  { %v438_v26 = vcombine.low %v405_v60, %v417_v20  ;;  %v439_v27 = vcombine.high %v405_v60, %v417_v20 }
 0x225   :  { %v754_v28 = vrot.slane %v746_v21, %v7577_v13  ;;  %v761_v29 = vrot.slane %v747_v22, %v7577_v13  ;;  %v770_v30 = vrot.slane %v762_v23, %v7577_v13  ;;  %v777_v31 = vrot.slane %v763_v24, %v7577_v13 }
 0x226   :  { %v446_v34 = vrot.slane %v438_v26, %v7575_v6  ;;  %v453_v35 = vrot.slane %v439_v27, %v7575_v6  ;;  %v705_v36 = vpop.permute.xlu1 %704  ;;  %v711_v47 = vpop.permute.xlu0 %710 }
 0x227   :  { %v850_v37 = vcombine.low %v754_v28, %v761_v29  ;;  %v6482_v38 = vcombine.high %v754_v28, %v761_v29  ;;  %v866_v39 = vcombine.low %v770_v30, %v777_v31  ;;  %v6483_v40 = vcombine.high %v770_v30, %v777_v31 }
 0x228   :  { %v454_v41 = vcombine.low %v430_v32, %v446_v34  ;;  %v455_v42 = vcombine.high %v430_v32, %v446_v34  ;;  %v470_v44 = vcombine.low %v437_v33, %v453_v35  ;;  %v471_v45 = vcombine.high %v437_v33, %v453_v35 }
 0x229   :  { %v7598_v53 = vrot.slane %v850_v37, %v7575_v6  ;;  %v7601_v57 = vrot.slane %v6482_v38, %v7575_v6  ;;  %v7604_v58 = vrot.slane %v866_v39, %v7575_v6  ;;  %v7607_v59 = vrot.slane %v6483_v40, %v7575_v6 }
 0x22a   :  { %v462_v48 = vrot.slane %v454_v41, %v7577_v13  ;;  %v469_v49 = vrot.slane %v455_v42, %v7577_v13  ;;  %v478_v50 = vrot.slane %v470_v44, %v7577_v13  ;;  %v485_v51 = vrot.slane %v471_v45, %v7577_v13  ;;  %v407_v52 = vpop.permute.xlu1 %406  ;;  %v413_v15 = vpop.permute.xlu0 %412 }
 0x22b   :  { %v798_v0 = vcombine.low %v699_v25, %v711_v47  ;;  %v799_v1 = vcombine.high %v699_v25, %v711_v47  ;;  %v782_v2 = vcombine.low %v7551_v54, %v705_v36  ;;  %v783_v5 = vcombine.high %v7551_v54, %v705_v36 }
 0x22c   :  { %v558_v60 = vcombine.low %v462_v48, %v469_v49  ;;  %v6478_v61 = vcombine.high %v462_v48, %v469_v49  ;;  %v574_v62 = vcombine.low %v478_v50, %v485_v51  ;;  %v6479_v63 = vcombine.high %v478_v50, %v485_v51 }
 0x22d   :  { %v806_v11 = vrot.slane %v798_v0, %v7575_v6  ;;  %v813_v12 = vrot.slane %v799_v1, %v7575_v6  ;;  %v790_v14 = vrot.slane %v782_v2, %v7575_v6  ;;  %v797_v54 = vrot.slane %v783_v5, %v7575_v6 }
 0x22e   :  { %v7612_v7 = vrot.slane %v558_v60, %v7575_v6  ;;  %v7615_v8 = vrot.slane %v6478_v61, %v7575_v6  ;;  %v7618_v9 = vrot.slane %v574_v62, %v7575_v6  ;;  %v7621_v10 = vrot.slane %v6479_v63, %v7575_v6  ;;  %v419_v16 = vpop.permute.xlu1 %418 }
 0x22f   :  { %v882_v17 = vcombine.low %v7598_v53, %v7601_v57  ;;  %v898_v18 = vcombine.low %v7604_v58, %v7607_v59  ;;  %v814_v21 = vcombine.low %v790_v14, %v806_v11  ;;  %v815_v22 = vcombine.high %v790_v14, %v806_v11 }
 0x230   :  { %v590_v19 = vcombine.low %v7612_v7, %v7615_v8  ;;  %v606_v20 = vcombine.low %v7618_v9, %v7621_v10  ;;  %v830_v23 = vcombine.low %v797_v54, %v813_v12  ;;  %v831_v24 = vcombine.high %v797_v54, %v813_v12 }
 0x231   :  { %v490_v25 = vcombine.low %v7561_v55, %v413_v15  ;;  %v491_v26 = vcombine.high %v7561_v55, %v413_v15  ;;  %v506_v27 = vcombine.low %v407_v52, %v419_v16  ;;  %v507_v28 = vcombine.high %v407_v52, %v419_v16 }
 0x232   :  { %v822_v29 = vrot.slane %v814_v21, %v7577_v13  ;;  %v829_v30 = vrot.slane %v815_v22, %v7577_v13  ;;  %v838_v31 = vrot.slane %v830_v23, %v7577_v13  ;;  %v845_v32 = vrot.slane %v831_v24, %v7577_v13 }
 0x233   :  { %v498_v33 = vrot.slane %v490_v25, %v7575_v6  ;;  %v505_v34 = vrot.slane %v491_v26, %v7575_v6  ;;  %v514_v35 = vrot.slane %v506_v27, %v7575_v6  ;;  %v521_v36 = vrot.slane %v507_v28, %v7575_v6 }
 0x234   :  { %v918_v37 = vcombine.low %v822_v29, %v829_v30  ;;  %v6484_v55 = vcombine.high %v822_v29, %v829_v30  ;;  %v934_v38 = vcombine.low %v838_v31, %v845_v32  ;;  %v6485_v39 = vcombine.high %v838_v31, %v845_v32 }
 0x235   :  { %v522_v40 = vcombine.low %v498_v33, %v514_v35  ;;  %v523_v41 = vcombine.high %v498_v33, %v514_v35  ;;  %v538_v42 = vcombine.low %v505_v34, %v521_v36  ;;  %v539_v44 = vcombine.high %v505_v34, %v521_v36 }
 0x236   :  { %v925_v45 = vrot.slane %v918_v37, %v7575_v6  ;;  %v933_v47 = vrot.slane %v6484_v55, %v7575_v6  ;;  %v941_v48 = vrot.slane %v934_v38, %v7575_v6  ;;  %v949_v49 = vrot.slane %v6485_v39, %v7575_v6 }
 0x237   :  { %v530_v50 = vrot.slane %v522_v40, %v7577_v13  ;;  %v537_v51 = vrot.slane %v523_v41, %v7577_v13  ;;  %v546_v52 = vrot.slane %v538_v42, %v7577_v13  ;;  %v553_v60 = vrot.slane %v539_v44, %v7577_v13 }
 0x238   :  { %v950_v61 = vcombine.low %v925_v45, %v933_v47  ;;  %v966_v62 = vcombine.low %v941_v48, %v949_v49  ;;  %v890_v5 = vrot.slane %v882_v17, %v7577_v13  ;;  %v906_v11 = vrot.slane %v898_v18, %v7577_v13 }
 0x239   :  { %v626_v63 = vcombine.low %v530_v50, %v537_v51  ;;  %v6480_v0 = vcombine.high %v530_v50, %v537_v51  ;;  %v642_v1 = vcombine.low %v546_v52, %v553_v60  ;;  %v6481_v2 = vcombine.high %v546_v52, %v553_v60 }
 0x23a   :  { %v598_v12 = vrot.slane %v590_v19, %v7577_v13  ;;  %v614_v14 = vrot.slane %v606_v20, %v7577_v13  ;;  %v883_v22 = vcombine.high %v7598_v53, %v7601_v57  ;;  %v899_v17 = vcombine.high %v7604_v58, %v7607_v59 }
 0x23b   :  { %v633_v54 = vrot.slane %v626_v63, %v7575_v6  ;;  %v641_v15 = vrot.slane %v6480_v0, %v7575_v6  ;;  %v649_v16 = vrot.slane %v642_v1, %v7575_v6  ;;  %v657_v21 = vrot.slane %v6481_v2, %v7575_v6 }
 0x23c   :  { %v914_v23 = vcombine.low %v890_v5, %v906_v11  ;;  %v622_v19 = vcombine.low %v598_v12, %v614_v14  ;;  %v951_v25 = vcombine.high %v925_v45, %v933_v47  ;;  %v967_v20 = vcombine.high %v941_v48, %v949_v49  ;;  %v101_v49 = vld [vmem:[#allocation7] sm:$0xff] }
 0x23d   :  { %v658_v18 = vcombine.low %v633_v54, %v641_v15  ;;  %v674_v24 = vcombine.low %v649_v16, %v657_v21  ;;  %v958_v26 = vrot.slane %v950_v61, %v7577_v13  ;;  %v974_v27 = vrot.slane %v966_v62, %v7577_v13  ;;  %v393_v61 = vpop.f32.mrf.mxu0 }
 0x23e   :  { %6828 = vmatpush3.xpose.msk.msra.mxu1 %vm1278_vm2, %v914_v23  ;;  %v591_v28 = vcombine.high %v7612_v7, %v7615_v8  ;;  %v607_v53 = vcombine.high %v7618_v9, %v7621_v10  ;;  %v915_v59 = vcombine.high %v890_v5, %v906_v11  ;;  %v897_v29 = vrot.slane %v883_v22, %v7577_v13 }
 0x23f   :  { %6832 = vmatprep.subr.mxu1 %v7379_v56  ;;  %v666_v57 = vrot.slane %v658_v18, %v7577_v13  ;;  %v682_v58 = vrot.slane %v674_v24, %v7577_v13  ;;  %v913_v30 = vrot.slane %v899_v17, %v7577_v13  ;;  %v982_v31 = vcombine.low %v958_v26, %v974_v27 }
 0x240   :  { %v659_v32 = vcombine.high %v633_v54, %v641_v15  ;;  %v675_v33 = vcombine.high %v649_v16, %v657_v21  ;;  %v623_v7 = vcombine.high %v598_v12, %v614_v14  ;;  %v965_v8 = vrot.slane %v951_v25, %v7577_v13 }
 0x241   :  { %6830 = vmatmul.mubr.msk.f32.vlgmr.msra.gmra.mxu1 %vm1278_vm2, %v622_v19  ;;  %v981_v9 = vrot.slane %v967_v20, %v7577_v13  ;;  %6848 = vmatpush3.xpose.msk.msra.mxu0 %vm1278_vm2, %v982_v31  ;;  %v605_v10 = vrot.slane %v591_v28, %v7577_v13  ;;  %v621_v34 = vrot.slane %v607_v53, %v7577_v13 }
 0x242   :  { %6833 = vmatpush3.xpose.msk.msra.mxu1 %vm1278_vm2, %v915_v59  ;;  %6834 = vmatprep.mubr.msk.f32.mxu1 %vm7380_vm1, %v7379_v56  ;;  %v690_v35 = vcombine.low %v666_v57, %v682_v58  ;;  %v916_v36 = vcombine.low %v897_v29, %v913_v30  ;;  %v673_v37 = vrot.slane %v659_v32, %v7577_v13 }
 0x243   :  { %6837 = vmatprep.subr.mxu1 %v7379_v56  ;;  %6857 = vmatprep.subr.mxu0 %v7379_v56  ;;  %v689_v55 = vrot.slane %v675_v33, %v7577_v13  ;;  %v984_v38 = vcombine.low %v965_v8, %v981_v9  ;;  %v624_v39 = vcombine.low %v605_v10, %v621_v34 }
 0x244   :  { %6850 = vmatmul.mubr.msk.f32.vlgmr.msra.gmra.mxu0 %vm1278_vm2, %v690_v35  ;;  %v917_v40 = vcombine.high %v897_v29, %v913_v30  ;;  %v625_v42 = vcombine.high %v605_v10, %v621_v34  ;;  %v983_v44 = vcombine.high %v958_v26, %v974_v27  ;;  %v691_v45 = vcombine.high %v666_v57, %v682_v58 }
 0x245   :  { %6835 = vmatmul.mubr.msk.f32.vlgmr.msra.gmra.mxu1 %vm1278_vm2, %v623_v7  ;;  %6858 = vmatpush3.xpose.msk.msra.mxu0 %vm1278_vm2, %v984_v38  ;;  %v692_v41 = vcombine.low %v673_v37, %v689_v55  ;;  %v985_v47 = vcombine.high %v965_v8, %v981_v9  ;;  %v693_v48 = vcombine.high %v673_v37, %v689_v55 }
 0x246   :  { %6838 = vmatpush3.xpose.msk.msra.mxu1 %vm1278_vm2, %v916_v36  ;;  %6839 = vmatprep.mubr.msk.f32.mxu1 %vm7380_vm1, %v7379_v56  ;;  %v7727_v28 = vadd.f32 %v7531_v43, %v393_v61 }
 0x247   :  { %6842 = vmatprep.subr.mxu1 %v7379_v56  ;;  %6859 = vmatprep.mubr.msk.f32.mxu0 %vm7380_vm1, %v7379_v56 }
 0x248   :  { %6867 = vmatprep.subr.mxu0 %v7379_v56  ;;  %6860 = vmatmul.mubr.msk.f32.vlgmr.msra.gmra.mxu0 %vm1278_vm2, %v692_v41 }
 0x249   :  { %6840 = vmatmul.mubr.msk.f32.vlgmr.msra.gmra.mxu1 %vm1278_vm2, %v624_v39  ;;  %6869 = vmatprep.mubr.msk.f32.mxu0 %vm7380_vm1, %v7379_v56 }
 0x24a   :  { %6843 = vmatpush3.xpose.msk.msra.mxu1 %vm1278_vm2, %v917_v40  ;;  %6844 = vmatprep.mubr.msk.f32.mxu1 %vm7380_vm1, %v7379_v56 }
 0x24b   :  { %6852 = vmatprep.subr.mxu1 %v7379_v56 }
 0x24d   :  { %6845 = vmatmul.mubr.msk.f32.vlgmr.msra.gmra.mxu1 %vm1278_vm2, %v625_v42 }
 0x24e   :  { %6853 = vmatpush3.xpose.msk.msra.mxu1 %vm1278_vm2, %v983_v44  ;;  %6854 = vmatprep.mubr.msk.f32.mxu1 %vm7380_vm1, %v7379_v56 }
 0x24f   :  { %6862 = vmatprep.subr.mxu1 %v7379_v56 }
 0x251   :  { %6855 = vmatmul.mubr.msk.f32.vlgmr.msra.gmra.mxu1 %vm1278_vm2, %v691_v45 }
 0x252   :  { %6863 = vmatpush3.xpose.msk.msra.mxu1 %vm1278_vm2, %v985_v47  ;;  %6864 = vmatprep.mubr.msk.f32.mxu1 %vm7380_vm1, %v7379_v56 }
 0x253   :  { %6872 = vmatprep.subr.mxu1 %v7379_v56 }
 0x255   :  { %6865 = vmatmul.mubr.msk.f32.vlgmr.msra.gmra.mxu1 %vm1278_vm2, %v693_v48 }
 0x256   :  { %6874 = vmatprep.mubr.msk.f32.mxu1 %vm7380_vm1, %v7379_v56 }
 0x301   :  { %v1351_v50 = vpop.f32.mrf.mxu1 }
 0x302   :  { %v1352_v51 = vadd.f32 %v1351_v50, %v101_v49 }
 0x303   :  { %v6831_v52 = vpop.f32.mrf.mxu1 }
 0x304   :  { %v1887_v60 = vsel %vm1278_vm2, %v1352_v51, -inf  ;;  %v1655_v1 = vpop.f32.mrf.mxu0 }
 0x305   :  { %1888 = vmax.xlane.f32.xlu0 %v1887_v60  ;;  %v1427_v62 = vpop.f32.mrf.mxu1  ;;  %v1656_v23 = vadd.f32 %v1655_v1, %v101_v49 }
 0x306   :  { %v1428_v63 = vadd.f32 %v1427_v62, %v101_v49  ;;  %v6851_v11 = vpop.f32.mrf.mxu0 }
 0x307   :  { %v6836_v0 = vpop.f32.mrf.mxu1  ;;  %v1899_v20 = vsel %vm1278_vm2, %v1656_v23, -inf }
 0x308   :  { %v1890_v2 = vsel %vm1278_vm2, %v1428_v63, -inf  ;;  %v1807_v54 = vpop.f32.mrf.mxu0 }
 0x309   :  { %1891 = vmax.xlane.f32.xlu1 %v1890_v2  ;;  %v1503_v5 = vpop.f32.mrf.mxu1  ;;  %v1808_v25 = vadd.f32 %v1807_v54, %v101_v49 }
 0x30a   :  { %v1504_v12 = vadd.f32 %v1503_v5, %v101_v49  ;;  %v6861_v21 = vpop.f32.mrf.mxu0 }
 0x30b   :  { %v6841_v14 = vpop.f32.mrf.mxu1  ;;  %v1905_v53 = vsel %vm1278_vm2, %v1808_v25, -inf }
 0x30c   :  { %v1893_v15 = vsel %vm1278_vm2, %v1504_v12, -inf }
 0x30d   :  { %1894 = vmax.xlane.f32.xlu0 %v1893_v15  ;;  %v1579_v16 = vpop.f32.mrf.mxu1 }
 0x30e   :  { %v1580_v22 = vadd.f32 %v1579_v16, %v101_v49 }
 0x30f   :  { %v6846_v17 = vpop.f32.mrf.mxu1 }
 0x310   :  { %v1896_v18 = vsel %vm1278_vm2, %v1580_v22, -inf }
 0x311   :  { %1897 = vmax.xlane.f32.xlu0 %v1896_v18  ;;  %v1731_v24 = vpop.f32.mrf.mxu1 }
 0x312   :  { %v1732_v57 = vadd.f32 %v1731_v24, %v101_v49 }
 0x313   :  { %v6856_v19 = vpop.f32.mrf.mxu1 }
 0x314   :  { %v1902_v59 = vsel %vm1278_vm2, %v1732_v57, -inf }
 0x315   :  { %v1883_v26 = vpop.f32.mrf.mxu1  ;;  %1900 = vmax.xlane.f32.xlu0 %v1899_v20 }
 0x316   :  { %v1884_v58 = vadd.f32 %v1883_v26, %v101_v49 }
 0x317   :  { %v6866_v27 = vpop.f32.mrf.mxu1 }
 0x318   :  { %v1908_v29 = vsel %vm1278_vm2, %v1884_v58, -inf }
 0x319   :  { %1906 = vmax.xlane.f32.xlu0 %v1905_v53 }
 0x31a   :  { %994 = vrot.lane.b32.xlu1 %v7727_v28, %s7377_s21 }
 0x32f   :  { %988 = vrot.lane.b32.xlu0 %v7727_v28, %s7376_s18 }
 0x33e   :  { %1903 = vmax.xlane.f32.xlu1 %v1902_v59 }
 0x342   :  { %1909 = vmax.xlane.f32.xlu1 %v1908_v29 }
 0x353   :  { %1000 = vrot.lane.b32.xlu1 %v7727_v28, %s7378_s22 }
 0x38e   :  { %v1889_v43 = vpop.xlane.xlu0 %1888 }
 0x38f   :  { %v1911_v32 = vsub.f32 %v1352_v51, %v1889_v43 }
 0x391   :  { %v1919_v10 = vmul.f32 1.442695, %v1911_v32 }
 0x392   :  { %v1892_v33 = vpop.xlane.xlu1 %1891 }
 0x393   :  { %v1912_v9 = vsub.f32 %v1428_v63, %v1892_v33 }
 0x395   :  { %v1921_v55 = vmul.f32 1.442695, %v1912_v9 }
 0x396   :  { %v1895_v30 = vpop.xlane.xlu0 %1894  ;;  %v995_v63 = vpop.permute.xlu1 %994 }
 0x397   :  { %v1913_v34 = vsub.f32 %v1504_v12, %v1895_v30  ;;  %v1006_v12 = vcombine.low %v7727_v28, %v995_v63  ;;  %v1007_v14 = vcombine.high %v7727_v28, %v995_v63 }
 0x399   :  { %v1923_v38 = vmul.f32 1.442695, %v1913_v34  ;;  %v1014_v17 = vrot.slane %v1006_v12, %v7575_v6 }
 0x39a   :  { %v1898_v31 = vpop.xlane.xlu0 %1897 }
 0x39b   :  { %v1914_v39 = vsub.f32 %v1580_v22, %v1898_v31 }
 0x39d   :  { %v1925_v41 = vmul.f32 1.442695, %v1914_v39 }
 0x39e   :  { %v1901_v7 = vpop.xlane.xlu0 %1900 }
 0x39f   :  { %v1915_v8 = vsub.f32 %v1656_v23, %v1901_v7  ;;  %v1021_v23 = vrot.slane %v1007_v14, %v7575_v6 }
 0x3a1   :  { %v1927_v35 = vmul.f32 1.442695, %v1915_v8 }
 0x3a2   :  { %v1907_v36 = vpop.xlane.xlu0 %1906 }
 0x3a3   :  { %7165 = vpow2.f32 %v1927_v35  ;;  %v1917_v37 = vsub.f32 %v1808_v25, %v1907_v36 }
 0x3a4   :  { %7167 = vpow2.f32 %v1919_v10 }
 0x3a5   :  { %v1931_v40 = vmul.f32 1.442695, %v1917_v37 }
 0x3a6   :  { %v989_v15 = vpop.permute.xlu0 %988 }
 0x3a7   :  { %7169 = vpow2.f32 %v1931_v40 }
 0x3a8   :  { %7171 = vpow2.f32 %v1921_v55 }
 0x3a9   :  { %7173 = vpow2.f32 %v1923_v38 }
 0x3aa   :  { %7175 = vpow2.f32 %v1925_v41 }
 0x3b0   :  { %v7738_v42 = vpop.eup %7165 }
 0x3b1   :  { %v1947_v44 = vsel %vm1278_vm2, %v7738_v42, 0.0  ;;  %v7742_v45 = vpop.eup %7167 }
 0x3b2   :  { %1948 = vadd.xlane.f32.xlu0 %v1947_v44  ;;  %v1935_v49 = vsel %vm1278_vm2, %v7742_v45, 0.0 }
 0x3b4   :  { %v7744_v47 = vpop.eup %7169 }
 0x3b5   :  { %v7746_v48 = vpop.eup %7171  ;;  %v1953_v50 = vsel %vm1278_vm2, %v7744_v47, 0.0 }
 0x3b6   :  { %v7752_v51 = vpop.eup %7173  ;;  %1936 = vadd.xlane.f32.xlu0 %v1935_v49  ;;  %1954 = vadd.xlane.f32.xlu1 %v1953_v50  ;;  %v1938_v60 = vsel %vm1278_vm2, %v7746_v48, 0.0 }
 0x3b7   :  { %v1941_v52 = vsel %vm1278_vm2, %v7752_v51, 0.0  ;;  %v7758_v61 = vpop.eup %7175 }
 0x3b8   :  { %v1944_v62 = vsel %vm1278_vm2, %v7758_v61, 0.0 }
 0x3ba   :  { %1942 = vadd.xlane.f32.xlu0 %v1941_v52  ;;  %1939 = vadd.xlane.f32.xlu1 %v1938_v60 }
 0x3be   :  { %1945 = vadd.xlane.f32.xlu1 %v1944_v62 }
 0x3c7   :  { %v1904_v0 = vpop.xlane.xlu1 %1903 }
 0x3c8   :  { %v1916_v1 = vsub.f32 %v1732_v57, %v1904_v0 }
 0x3ca   :  { %v1929_v2 = vmul.f32 1.442695, %v1916_v1 }
 0x3cb   :  { %v1910_v5 = vpop.xlane.xlu1 %1909 }
 0x3cc   :  { %7177 = vpow2.f32 %v1929_v2  ;;  %v1918_v11 = vsub.f32 %v1884_v58, %v1910_v5 }
 0x3ce   :  { %v1933_v54 = vmul.f32 1.442695, %v1918_v11 }
 0x3cf   :  { %v1001_v16 = vpop.permute.xlu1 %1000 }
 0x3d0   :  { %7179 = vpow2.f32 %v1933_v54  ;;  %v1022_v21 = vcombine.low %v989_v15, %v1001_v16  ;;  %v1023_v22 = vcombine.high %v989_v15, %v1001_v16 }
 0x3d2   :  { %v1030_v18 = vrot.slane %v1022_v21, %v7575_v6  ;;  %v1037_v24 = vrot.slane %v1023_v22, %v7575_v6 }
 0x3d4   :  { %v1038_v19 = vcombine.low %v1014_v17, %v1030_v18  ;;  %v1039_v25 = vcombine.high %v1014_v17, %v1030_v18  ;;  %v1054_v20 = vcombine.low %v1021_v23, %v1037_v24  ;;  %v1055_v26 = vcombine.high %v1021_v23, %v1037_v24 }
 0x3d6   :  { %v1046_v27 = vrot.slane %v1038_v19, %v7577_v13  ;;  %v1053_v28 = vrot.slane %v1039_v25, %v7577_v13  ;;  %v1062_v53 = vrot.slane %v1054_v20, %v7577_v13  ;;  %v1069_v57 = vrot.slane %v1055_v26, %v7577_v13 }
 0x3d8   :  { %v1142_v58 = vcombine.low %v1046_v27, %v1053_v28  ;;  %v6486_v59 = vcombine.high %v1046_v27, %v1053_v28  ;;  %v1158_v29 = vcombine.low %v1062_v53, %v1069_v57  ;;  %v6487_v43 = vcombine.high %v1062_v53, %v1069_v57 }
 0x3d9   :  { %v7772_v30 = vpop.eup %7177 }
 0x3da   :  { %v1149_v31 = vrot.slane %v1142_v58, %v7575_v6  ;;  %v1157_v32 = vrot.slane %v6486_v59, %v7575_v6  ;;  %v1165_v33 = vrot.slane %v1158_v29, %v7575_v6  ;;  %v1173_v7 = vrot.slane %v6487_v43, %v7575_v6 }
 0x3db   :  { %v1950_v8 = vsel %vm1278_vm2, %v7772_v30, 0.0 }
 0x3dc   :  { %1951 = vadd.xlane.f32.xlu1 %v1950_v8  ;;  %v1174_v9 = vcombine.low %v1149_v31, %v1157_v32  ;;  %v1190_v10 = vcombine.low %v1165_v33, %v1173_v7  ;;  %v1175_v34 = vcombine.high %v1149_v31, %v1157_v32  ;;  %v1191_v35 = vcombine.high %v1165_v33, %v1173_v7 }
 0x3dd   :  { %v7780_v36 = vpop.eup %7179 }
 0x3de   :  { %v1956_v37 = vsel %vm1278_vm2, %v7780_v36, 0.0  ;;  %v1182_v55 = vrot.slane %v1174_v9, %v7577_v13  ;;  %v1198_v38 = vrot.slane %v1190_v10, %v7577_v13  ;;  %v1189_v39 = vrot.slane %v1175_v34, %v7577_v13 }
 0x3df   :  { %1957 = vadd.xlane.f32.xlu0 %v1956_v37  ;;  %v1205_v40 = vrot.slane %v1191_v35, %v7577_v13 }
 0x3e0   :  { %v1206_v41 = vcombine.low %v1182_v55, %v1198_v38  ;;  %v1207_v44 = vcombine.high %v1182_v55, %v1198_v38 }
 0x3e1   :  { %v1208_v49 = vcombine.low %v1189_v39, %v1205_v40  ;;  %v1209_v50 = vcombine.high %v1189_v39, %v1205_v40 }
 0x3e2   :  { %6868 = vmatpush3.msra.mxu0 %v1206_v41  ;;  %6873 = vmatpush3.msra.mxu1 %v1207_v44 }
 0x3e3   :  { %6877 = vmatprep.subr.mxu0 %v7379_v56  ;;  %6882 = vmatprep.subr.mxu1 %v7379_v56 }
 0x3ed   :  { %996 = vrot.lane.b32.xlu1 %v7534_v46, %s7377_s21 }
 0x3f1   :  { %1002 = vrot.lane.b32.xlu1 %v7534_v46, %s7378_s22 }
 0x3f5   :  { %990 = vrot.lane.b32.xlu0 %v7534_v46, %s7376_s18 }
 0x43b   :  { %v1949_v52 = vpop.xlane.xlu0 %1948 }
 0x43f   :  { %v1937_v60 = vpop.xlane.xlu0 %1936  ;;  %v1955_v62 = vpop.xlane.xlu1 %1954 }
 0x440   :  { %7181 = vrcp.f32 %v1937_v60 }
 0x443   :  { %v1943_v63 = vpop.xlane.xlu0 %1942  ;;  %v1940_v0 = vpop.xlane.xlu1 %1939 }
 0x444   :  { %7183 = vrcp.f32 %v1943_v63 }
 0x445   :  { %7185 = vrcp.f32 %v1940_v0 }
 0x447   :  { %v1946_v1 = vpop.xlane.xlu1 %1945 }
 0x448   :  { %7187 = vrcp.f32 %v1946_v1 }
 0x449   :  { %7189 = vrcp.f32 %v1949_v52 }
 0x44d   :  { %v7182_v2 = vpop.eup %7181 }
 0x44e   :  { %v1967_v5 = vmul.f32 %v7182_v2, %v7742_v45 }
 0x450   :  { %6870 = vmatmul.mubr.msk.f32.vlgmr.msra.gmra.mxu0 %vm1278_vm2, %v1967_v5 }
 0x451   :  { %v7184_v11 = vpop.eup %7183  ;;  %6878 = vmatpush3.msra.mxu0 %v1208_v49  ;;  %6879 = vmatprep.mubr.msk.f32.mxu0 %vm7380_vm1, %v7379_v56 }
 0x452   :  { %v7186_v12 = vpop.eup %7185  ;;  %v1969_v14 = vmul.f32 %v7184_v11, %v7752_v51  ;;  %6887 = vmatprep.subr.mxu0 %v7379_v56 }
 0x453   :  { %v1968_v54 = vmul.f32 %v7186_v12, %v7746_v48 }
 0x454   :  { %6880 = vmatmul.mubr.msk.f32.vlgmr.msra.gmra.mxu0 %vm1278_vm2, %v1969_v14 }
 0x455   :  { %v7188_v15 = vpop.eup %7187  ;;  %6875 = vmatmul.mubr.msk.f32.vlgmr.msra.gmra.mxu1 %vm1278_vm2, %v1968_v54  ;;  %6889 = vmatprep.mubr.msk.f32.mxu0 %vm7380_vm1, %v7379_v56 }
 0x456   :  { %6883 = vmatpush3.msra.mxu1 %v1209_v50  ;;  %6884 = vmatprep.mubr.msk.f32.mxu1 %vm7380_vm1, %v7379_v56  ;;  %v1970_v45 = vmul.f32 %v7188_v15, %v7758_v61  ;;  %v7190_v55 = vpop.eup %7189 }
 0x457   :  { %6892 = vmatprep.subr.mxu1 %v7379_v56  ;;  %v1971_v60 = vmul.f32 %v7190_v55, %v7738_v42 }
 0x459   :  { %6885 = vmatmul.mubr.msk.f32.vlgmr.msra.gmra.mxu1 %vm1278_vm2, %v1970_v45 }
 0x45a   :  { %6894 = vmatprep.mubr.msk.f32.mxu1 %vm7380_vm1, %v7379_v56 }
 0x465   :  { %v1952_v48 = vpop.xlane.xlu1 %1951 }
 0x466   :  { %7191 = vrcp.f32 %v1952_v48 }
 0x467   :  { %7193 = vrcp.f32 %v1955_v62 }
 0x468   :  { %v1958_v51 = vpop.xlane.xlu0 %1957 }
 0x469   :  { %v997_v16 = vpop.permute.xlu1 %996  ;;  %7195 = vrcp.f32 %v1958_v51 }
 0x46a   :  { %v1074_v21 = vcombine.low %v7534_v46, %v997_v16  ;;  %v1075_v22 = vcombine.high %v7534_v46, %v997_v16 }
 0x46c   :  { %v991_v17 = vpop.permute.xlu0 %990  ;;  %v1082_v61 = vrot.slane %v1074_v21, %v7575_v6  ;;  %v1089_v19 = vrot.slane %v1075_v22, %v7575_v6 }
 0x46d   :  { %v1003_v23 = vpop.permute.xlu1 %1002 }
 0x46e   :  { %v1090_v18 = vcombine.low %v991_v17, %v1003_v23  ;;  %v1091_v24 = vcombine.high %v991_v17, %v1003_v23 }
 0x470   :  { %v1098_v25 = vrot.slane %v1090_v18, %v7575_v6  ;;  %v1105_v20 = vrot.slane %v1091_v24, %v7575_v6 }
 0x472   :  { %v1106_v26 = vcombine.low %v1082_v61, %v1098_v25  ;;  %v1107_v27 = vcombine.high %v1082_v61, %v1098_v25  ;;  %v1122_v28 = vcombine.low %v1089_v19, %v1105_v20  ;;  %v1123_v53 = vcombine.high %v1089_v19, %v1105_v20 }
 0x473   :  { %v7192_v38 = vpop.eup %7191 }
 0x474   :  { %v1114_v46 = vrot.slane %v1106_v26, %v7577_v13  ;;  %v1121_v57 = vrot.slane %v1107_v27, %v7577_v13  ;;  %v1130_v58 = vrot.slane %v1122_v28, %v7577_v13  ;;  %v1137_v59 = vrot.slane %v1123_v53, %v7577_v13  ;;  %v7194_v49 = vpop.eup %7193 }
 0x475   :  { %v1972_v62 = vmul.f32 %v7192_v38, %v7772_v30  ;;  %v1973_v2 = vmul.f32 %v7194_v49, %v7744_v47 }
 0x476   :  { %v1210_v29 = vcombine.low %v1114_v46, %v1121_v57  ;;  %v6488_v43 = vcombine.high %v1114_v46, %v1121_v57  ;;  %v1226_v31 = vcombine.low %v1130_v58, %v1137_v59  ;;  %v6489_v32 = vcombine.high %v1130_v58, %v1137_v59  ;;  %v7196_v63 = vpop.eup %7195 }
 0x477   :  { %v1974_v42 = vmul.f32 %v7196_v63, %v7780_v36 }
 0x478   :  { %v1217_v33 = vrot.slane %v1210_v29, %v7575_v6  ;;  %v1225_v7 = vrot.slane %v6488_v43, %v7575_v6  ;;  %v1233_v8 = vrot.slane %v1226_v31, %v7575_v6  ;;  %v1241_v9 = vrot.slane %v6489_v32, %v7575_v6 }
 0x47a   :  { %v1242_v10 = vcombine.low %v1217_v33, %v1225_v7  ;;  %v1258_v34 = vcombine.low %v1233_v8, %v1241_v9  ;;  %v1243_v35 = vcombine.high %v1217_v33, %v1225_v7  ;;  %v1259_v37 = vcombine.high %v1233_v8, %v1241_v9 }
 0x47c   :  { %v1250_v39 = vrot.slane %v1242_v10, %v7577_v13  ;;  %v1266_v40 = vrot.slane %v1258_v34, %v7577_v13  ;;  %v1257_v41 = vrot.slane %v1243_v35, %v7577_v13  ;;  %v1273_v44 = vrot.slane %v1259_v37, %v7577_v13 }
 0x47e   :  { %v1274_v50 = vcombine.low %v1250_v39, %v1266_v40  ;;  %v1275_v52 = vcombine.high %v1250_v39, %v1266_v40  ;;  %v1276_v0 = vcombine.low %v1257_v41, %v1273_v44  ;;  %v1277_v1 = vcombine.high %v1257_v41, %v1273_v44 }
 0x480   :  { %6888 = vmatpush3.msra.mxu0 %v1274_v50  ;;  %6893 = vmatpush3.msra.mxu1 %v1275_v52 }
 0x481   :  { %6890 = vmatmul.mubr.msk.f32.vlgmr.msra.gmra.mxu0 %vm1278_vm2, %v1971_v60  ;;  %6895 = vmatmul.mubr.msk.f32.vlgmr.msra.gmra.mxu1 %vm1278_vm2, %v1972_v62 }
 0x482   :  { %6897 = vmatprep.subr.mxu0 %v7379_v56  ;;  %6902 = vmatprep.subr.mxu1 %v7379_v56 }
 0x483   :  { %6898 = vmatpush3.msra.mxu0 %v1276_v0  ;;  %6903 = vmatpush3.msra.mxu1 %v1277_v1 }
 0x484   :  { %6899 = vmatprep.mubr.msk.f32.mxu0 %vm7380_vm1, %v7379_v56  ;;  %6904 = vmatprep.mubr.msk.f32.mxu1 %vm7380_vm1, %v7379_v56 }
 0x485   :  { %6900 = vmatmul.mubr.msk.f32.vlgmr.msra.gmra.mxu0 %vm1278_vm2, %v1973_v2  ;;  %6905 = vmatmul.mubr.msk.f32.vlgmr.msra.gmra.mxu1 %vm1278_vm2, %v1974_v42 }
 0x510   :  { %v2044_v30 = vpop.f32.mrf.mxu0 }
 0x512   :  { %v6871_v5 = vpop.f32.mrf.mxu0 }
 0x514   :  { %v2190_v11 = vpop.f32.mrf.mxu0 }
 0x515   :  { %v2117_v12 = vpop.f32.mrf.mxu1  ;;  %v2559_v15 = vcombine.low %v2044_v30, %v2190_v11  ;;  %v2560_v47 = vcombine.high %v2044_v30, %v2190_v11 }
 0x516   :  { %v6881_v14 = vpop.f32.mrf.mxu0 }
 0x517   :  { %v6876_v54 = vpop.f32.mrf.mxu1  ;;  %v2567_v16 = vrot.slane %v2559_v15, %v7575_v6  ;;  %v2574_v21 = vrot.slane %v2560_v47, %v7575_v6  ;;  %v2865_v15 = vld [vmem:[%s8555_s5 + $0x10] sm:$0xff] }
 0x518   :  { %v2866_v54 = vld [vmem:[%s8555_s5 + $0x18] sm:$0xff] }
 0x519   :  { %v2263_v45 = vpop.f32.mrf.mxu1  ;;  %6907 = vmatprep.subr.mxu0 %v2866_v54 }
 0x51a   :  { %v2575_v36 = vcombine.low %v2117_v12, %v2263_v45  ;;  %v2576_v48 = vcombine.high %v2117_v12, %v2263_v45  ;;  %6908 = vmatpush3.msra.mxu0 %v2866_v54 }
 0x51b   :  { %v6886_v51 = vpop.f32.mrf.mxu1  ;;  %6909 = vmatprep.subr.mxu0 %v2865_v15 }
 0x51c   :  { %v2583_v22 = vrot.slane %v2575_v36, %v7575_v6  ;;  %v2590_v17 = vrot.slane %v2576_v48, %v7575_v6  ;;  %6910 = vmatpush3.msra.mxu0 %v2865_v15 }
 0x51e   :  { %v2591_v23 = vcombine.low %v2567_v16, %v2583_v22  ;;  %v2592_v18 = vcombine.high %v2567_v16, %v2583_v22  ;;  %v2607_v24 = vcombine.low %v2574_v21, %v2590_v17  ;;  %v2608_v61 = vcombine.high %v2574_v21, %v2590_v17  ;;  %v2864_v17 = vld [vmem:[%s8555_s5 + $0x8] sm:$0xff] }
 0x51f   :  { %6911 = vmatprep.subr.mxu0 %v2864_v17 }
 0x520   :  { %v2599_v19 = vrot.slane %v2591_v23, %v7577_v13  ;;  %v2606_v25 = vrot.slane %v2592_v18, %v7577_v13  ;;  %v2615_v20 = vrot.slane %v2607_v24, %v7577_v13  ;;  %v2622_v26 = vrot.slane %v2608_v61, %v7577_v13  ;;  %v2863_v23 = vld [vmem:[%s8555_s5] sm:$0xff]  ;;  %6912 = vmatpush3.msra.mxu0 %v2864_v17 }
 0x521   :  { %6913 = vmatprep.subr.mxu0 %v2863_v23 }
 0x522   :  { %v2695_v27 = vcombine.low %v2599_v19, %v2606_v25  ;;  %v6514_v28 = vcombine.high %v2599_v19, %v2606_v25  ;;  %v2711_v53 = vcombine.low %v2615_v20, %v2622_v26  ;;  %v6515_v46 = vcombine.high %v2615_v20, %v2622_v26  ;;  %6914 = vmatpush3.msra.mxu0 %v2863_v23 }
 0x524   :  { %v2702_v57 = vrot.slane %v2695_v27, %v7575_v6  ;;  %v2710_v58 = vrot.slane %v6514_v28, %v7575_v6  ;;  %v2718_v59 = vrot.slane %v2711_v53, %v7575_v6  ;;  %v2726_v29 = vrot.slane %v6515_v46, %v7575_v6 }
 0x526   :  { %v2727_v43 = vcombine.low %v2702_v57, %v2710_v58  ;;  %v2743_v31 = vcombine.low %v2718_v59, %v2726_v29  ;;  %v2728_v32 = vcombine.high %v2702_v57, %v2710_v58  ;;  %v2744_v33 = vcombine.high %v2718_v59, %v2726_v29 }
 0x528   :  { %v7859_v7 = vrot.slane %v2727_v43, %v7577_v13  ;;  %v7862_v8 = vrot.slane %v2743_v31, %v7577_v13  ;;  %v2742_v34 = vrot.slane %v2728_v32, %v7577_v13  ;;  %v2758_v35 = vrot.slane %v2744_v33, %v7577_v13 }
 0x52a   :  { %v2760_v9 = vcombine.high %v7859_v7, %v7862_v8  ;;  %v2759_v10 = vcombine.low %v7859_v7, %v7862_v8  ;;  %v2761_v37 = vcombine.low %v2742_v34, %v2758_v35  ;;  %v2762_v55 = vcombine.high %v2742_v34, %v2758_v35  ;;  %v6520_v8 = vld [vmem:[%s8556_s6] ss:$0 sm:$0xff] }
 0x52c   :  { %2833 = vrot.lane.b32.xlu0 %v2760_v9, %s7373_s17 }
 0x530   :  { %2841 = vrot.lane.b32.xlu0 %v2761_v37, %s7383_s23 }
 0x534   :  { %2849 = vrot.lane.b32.xlu0 %v2762_v55, %s7384_s1 }
 0x541   :  { %v2336_v38 = vpop.f32.mrf.mxu0  ;;  %v2409_v39 = vpop.f32.mrf.mxu1 }
 0x543   :  { %v6891_v40 = vpop.f32.mrf.mxu0  ;;  %v6896_v41 = vpop.f32.mrf.mxu1 }
 0x545   :  { %v2482_v44 = vpop.f32.mrf.mxu0  ;;  %v2555_v49 = vpop.f32.mrf.mxu1 }
 0x546   :  { %v2627_v50 = vcombine.low %v2336_v38, %v2482_v44  ;;  %v2628_v52 = vcombine.high %v2336_v38, %v2482_v44  ;;  %v2643_v60 = vcombine.low %v2409_v39, %v2555_v49  ;;  %v2644_v62 = vcombine.high %v2409_v39, %v2555_v49 }
 0x547   :  { %v6901_v63 = vpop.f32.mrf.mxu0  ;;  %v6906_v0 = vpop.f32.mrf.mxu1 }
 0x548   :  { %v2635_v1 = vrot.slane %v2627_v50, %v7575_v6  ;;  %v2642_v2 = vrot.slane %v2628_v52, %v7575_v6  ;;  %v2651_v42 = vrot.slane %v2643_v60, %v7575_v6  ;;  %v2658_v30 = vrot.slane %v2644_v62, %v7575_v6 }
 0x54a   :  { %v2659_v5 = vcombine.low %v2635_v1, %v2651_v42  ;;  %v2660_v11 = vcombine.high %v2635_v1, %v2651_v42  ;;  %v2675_v12 = vcombine.low %v2642_v2, %v2658_v30  ;;  %v2676_v14 = vcombine.high %v2642_v2, %v2658_v30  ;;  %v2992_v1 = vld [vmem:[%s8557_s7 + $0x18] sm:$0xff]  ;;  %v2991_v2 = vld [vmem:[%s8557_s7 + $0x10] sm:$0xff]  ;;  %v2990_v42 = vld [vmem:[%s8557_s7 + $0x8] sm:$0xff] }
 0x54b   :  { %6918 = vmatprep.subr.mxu1 %v2992_v1  ;;  %v2989_v30 = vld [vmem:[%s8557_s7] sm:$0xff] }
 0x54c   :  { %v2667_v47 = vrot.slane %v2659_v5, %v7577_v13  ;;  %v2674_v45 = vrot.slane %v2660_v11, %v7577_v13  ;;  %v2683_v36 = vrot.slane %v2675_v12, %v7577_v13  ;;  %v2690_v48 = vrot.slane %v2676_v14, %v7577_v13  ;;  %6919 = vmatpush3.msra.mxu1 %v2992_v1 }
 0x54d   :  { %6920 = vmatprep.subr.mxu1 %v2991_v2 }
 0x54e   :  { %v2763_v51 = vcombine.low %v2667_v47, %v2674_v45  ;;  %v6516_v16 = vcombine.high %v2667_v47, %v2674_v45  ;;  %v2779_v21 = vcombine.low %v2683_v36, %v2690_v48  ;;  %v6517_v22 = vcombine.high %v2683_v36, %v2690_v48  ;;  %6921 = vmatpush3.msra.mxu1 %v2991_v2 }
 0x54f   :  { %6922 = vmatprep.subr.mxu1 %v2990_v42 }
 0x550   :  { %v2770_v18 = vrot.slane %v2763_v51, %v7575_v6  ;;  %v2778_v24 = vrot.slane %v6516_v16, %v7575_v6  ;;  %v2786_v61 = vrot.slane %v2779_v21, %v7575_v6  ;;  %v2794_v19 = vrot.slane %v6517_v22, %v7575_v6  ;;  %6923 = vmatpush3.msra.mxu1 %v2990_v42 }
 0x551   :  { %6924 = vmatprep.subr.mxu1 %v2989_v30 }
 0x552   :  { %v2795_v25 = vcombine.low %v2770_v18, %v2778_v24  ;;  %v2811_v20 = vcombine.low %v2786_v61, %v2794_v19  ;;  %v2796_v26 = vcombine.high %v2770_v18, %v2778_v24  ;;  %v2812_v27 = vcombine.high %v2786_v61, %v2794_v19  ;;  %6925 = vmatpush3.msra.mxu1 %v2989_v30 }
 0x554   :  { %v2803_v28 = vrot.slane %v2795_v25, %v7577_v13  ;;  %v2819_v53 = vrot.slane %v2811_v20, %v7577_v13  ;;  %v2810_v58 = vrot.slane %v2796_v26, %v7577_v13  ;;  %v2826_v59 = vrot.slane %v2812_v27, %v7577_v13  ;;  %v3112_v25 = vld [vmem:[%s8559_s9 + $0x78] sm:$0xff]  ;;  %v3111_v20 = vld [vmem:[%s8559_s9 + $0x70] sm:$0xff]  ;;  %v3110_v26 = vld [vmem:[%s8559_s9 + $0x68] sm:$0xff] }
 0x555   :  { %6929 = vmatprep.subr.mxu0 %v3112_v25  ;;  %v3109_v27 = vld [vmem:[%s8559_s9 + $0x60] sm:$0xff] }
 0x556   :  { %v2828_v46 = vcombine.high %v2803_v28, %v2819_v53  ;;  %v2827_v57 = vcombine.low %v2803_v28, %v2819_v53  ;;  %v2829_v29 = vcombine.low %v2810_v58, %v2826_v59  ;;  %v2830_v43 = vcombine.high %v2810_v58, %v2826_v59  ;;  %v3108_v28 = vld [vmem:[%s8559_s9 + $0x58] sm:$0xff]  ;;  %v3107_v53 = vld [vmem:[%s8559_s9 + $0x50] sm:$0xff] }
 0x557   :  { %v3104_v58 = vld [vmem:[%s8559_s9 + $0x38] sm:$0xff]  ;;  %v3103_v59 = vld [vmem:[%s8559_s9 + $0x30] sm:$0xff] }
 0x558   :  { %2835 = vrot.lane.b32.xlu1 %v2828_v46, %s7373_s17  ;;  %v3106_v46 = vld [vmem:[%s8559_s9 + $0x48] sm:$0xff] }
 0x55c   :  { %2843 = vrot.lane.b32.xlu1 %v2829_v29, %s7383_s23  ;;  %v3102_v29 = vld [vmem:[%s8559_s9 + $0x28] sm:$0xff] }
 0x560   :  { %2851 = vrot.lane.b32.xlu1 %v2830_v43, %s7384_s1  ;;  %v3101_v43 = vld [vmem:[%s8559_s9 + $0x20] sm:$0xff] }
 0x59e   :  { %v2834_v31 = vpop.permute.xlu0 %2833 }
 0x59f   :  { %v2855_v33 = vsel %vm1278_vm2, %v2759_v10, %v2834_v31  ;;  %v3100_v31 = vld [vmem:[%s8559_s9 + $0x18] sm:$0xff] }
 0x5a2   :  { %v2842_v32 = vpop.permute.xlu0 %2841 }
 0x5a3   :  { %v2858_v9 = vsel %vm2857_vm3, %v2855_v33, %v2842_v32  ;;  %v3099_v32 = vld [vmem:[%s8559_s9 + $0x10] sm:$0xff]  ;;  %v3098_v33 = vld [vmem:[%s8559_s9 + $0x8] sm:$0xff] }
 0x5a6   :  { %v2850_v34 = vpop.permute.xlu0 %2849 }
 0x5a7   :  { %v2861_v35 = vsel %vm2860_vm4, %v2858_v9, %v2850_v34  ;;  %v3097_v9 = vld [vmem:[%s8559_s9] sm:$0xff] }
 0x5a8   :  { %6915 = vmatprep.mubr.msk.f32.mxu0 %vm102_vm0, %v2861_v35  ;;  %v6521_v34 = vld [vmem:[%s8558_s8] ss:$0 sm:$0xff] }
 0x5ca   :  { %v2836_v37 = vpop.permute.xlu1 %2835 }
 0x5cb   :  { %v2856_v38 = vsel %vm1278_vm2, %v2827_v57, %v2836_v37  ;;  %v3105_v57 = vld [vmem:[%s8559_s9 + $0x40] sm:$0xff] }
 0x5ce   :  { %v2844_v55 = vpop.permute.xlu1 %2843 }
 0x5cf   :  { %v2859_v39 = vsel %vm2857_vm3, %v2856_v38, %v2844_v55 }
 0x5d2   :  { %v2852_v40 = vpop.permute.xlu1 %2851 }
 0x5d3   :  { %v2862_v41 = vsel %vm2860_vm4, %v2859_v39, %v2852_v40 }
 0x5d4   :  { %6916 = vmatmul.mubr.msk.f32.vlgmr.msra.gmra.mxu0 %vm102_vm0, %v2862_v41 }
 0x5d5   :  { %6930 = vmatpush3.msra.mxu0 %v3112_v25 }
 0x5d6   :  { %6931 = vmatprep.subr.mxu0 %v3111_v20 }
 0x5d7   :  { %6932 = vmatpush3.msra.mxu0 %v3111_v20 }
 0x5d8   :  { %6933 = vmatprep.subr.mxu0 %v3110_v26 }
 0x5d9   :  { %6934 = vmatpush3.msra.mxu0 %v3110_v26 }
 0x5da   :  { %6935 = vmatprep.subr.mxu0 %v3109_v27 }
 0x5db   :  { %6936 = vmatpush3.msra.mxu0 %v3109_v27 }
 0x5dc   :  { %6937 = vmatprep.subr.mxu0 %v3108_v28 }
 0x5dd   :  { %6938 = vmatpush3.msra.mxu0 %v3108_v28 }
 0x5de   :  { %6939 = vmatprep.subr.mxu0 %v3107_v53 }
 0x5df   :  { %6940 = vmatpush3.msra.mxu0 %v3107_v53 }
 0x5e0   :  { %6941 = vmatprep.subr.mxu0 %v3106_v46 }
 0x5e1   :  { %6942 = vmatpush3.msra.mxu0 %v3106_v46 }
 0x5e2   :  { %6943 = vmatprep.subr.mxu0 %v3105_v57 }
 0x5e3   :  { %6944 = vmatpush3.msra.mxu0 %v3105_v57 }
 0x5e4   :  { %6945 = vmatprep.subr.mxu0 %v3104_v58 }
 0x5e5   :  { %6946 = vmatpush3.msra.mxu0 %v3104_v58 }
 0x5e6   :  { %6947 = vmatprep.subr.mxu0 %v3103_v59 }
 0x5e7   :  { %6948 = vmatpush3.msra.mxu0 %v3103_v59 }
 0x5e8   :  { %6949 = vmatprep.subr.mxu0 %v3102_v29 }
 0x5e9   :  { %6950 = vmatpush3.msra.mxu0 %v3102_v29  ;;  %v6537_v29 = vld [vmem:[%s8553_s3 + $0x90] sm:$0xff] }
 0x5ea   :  { %6951 = vmatprep.subr.mxu0 %v3101_v43 }
 0x5eb   :  { %6952 = vmatpush3.msra.mxu0 %v3101_v43  ;;  %v6536_v43 = vld [vmem:[%s8553_s3 + $0x88] sm:$0xff] }
 0x5ec   :  { %6953 = vmatprep.subr.mxu0 %v3100_v31 }
 0x5ed   :  { %6954 = vmatpush3.msra.mxu0 %v3100_v31  ;;  %v6535_v31 = vld [vmem:[%s8553_s3 + $0x80] sm:$0xff] }
 0x5ee   :  { %6955 = vmatprep.subr.mxu0 %v3099_v32 }
 0x5ef   :  { %6956 = vmatpush3.msra.mxu0 %v3099_v32  ;;  %v6546_v32 = vld [vmem:[%s8553_s3 + $0xb8] sm:$0xff] }
 0x5f0   :  { %6957 = vmatprep.subr.mxu0 %v3098_v33 }
 0x5f1   :  { %6958 = vmatpush3.msra.mxu0 %v3098_v33  ;;  %v6545_v33 = vld [vmem:[%s8553_s3 + $0xb0] sm:$0xff] }
 0x5f2   :  { %6959 = vmatprep.subr.mxu0 %v3097_v9 }
 0x5f3   :  { %6960 = vmatpush3.msra.mxu0 %v3097_v9  ;;  %v6544_v9 = vld [vmem:[%s8553_s3 + $0xa8] sm:$0xff] }
 0x5f4   :  { %7007 = vmatprep.subr.mxu0 %v7379_v56 }
 0x694   :  { %v6917_v7 = vpop.f32.mrf.mxu0 }
 0x695   :  { %v2949_v10 = vadd.f32 %v6917_v7, %v7472_v4 }
 0x696   :  { %v2939_v44 = vpop.f32.mrf.mxu0 }
 0x697   :  { %v7919_v49 = vadd.f32 %v6520_v8, %v2949_v10  ;;  %v2948_v50 = vadd.f32 %v2939_v44, %v7470_v3 }
 0x699   :  { %v7922_v52 = vadd.f32 %v6520_v8, %v2948_v50  ;;  %v2962_v60 = vsel %vm102_vm0, %v7919_v49, 0.0  ;;  %v2968_v0 = vmul.f32 %v7919_v49, %v7919_v49 }
 0x69a   :  { %2963 = vadd.xlane.f32.xlu1 %v2962_v60 }
 0x69b   :  { %v2959_v62 = vsel %vm102_vm0, %v7922_v52, 0.0  ;;  %v2967_v63 = vmul.f32 %v7922_v52, %v7922_v52  ;;  %v2972_v3 = vsel %vm102_vm0, %v2968_v0, 0.0 }
 0x69c   :  { %2960 = vadd.xlane.f32.xlu0 %v2959_v62 }
 0x69d   :  { %v2969_v4 = vsel %vm102_vm0, %v2967_v63, 0.0 }
 0x6a0   :  { %2970 = vadd.xlane.f32.xlu0 %v2969_v4 }
 0x6a4   :  { %2973 = vadd.xlane.f32.xlu0 %v2972_v3  ;;  %v6526_v3 = vld [vmem:[%s8560_s10] ss:$0 sm:$0xff] }
 0x723   :  { %v2964_v12 = vpop.xlane.xlu1 %2963 }
 0x724   :  { %v2966_v54 = vmul.f32 0.03125, %v2964_v12 }
 0x725   :  { %v2961_v5 = vpop.xlane.xlu0 %2960 }
 0x726   :  { %v2965_v11 = vmul.f32 0.03125, %v2961_v5  ;;  %v2978_v48 = vmul.f32 %v2966_v54, %v2966_v54  ;;  %v2982_v24 = vsub.f32 %v7919_v49, %v2966_v54 }
 0x728   :  { %v2977_v15 = vmul.f32 %v2965_v11, %v2965_v11  ;;  %v2981_v17 = vsub.f32 %v7922_v52, %v2965_v11 }
 0x729   :  { %v2971_v14 = vpop.xlane.xlu0 %2970 }
 0x72a   :  { %v2975_v47 = vmul.f32 0.03125, %v2971_v14 }
 0x72c   :  { %v2979_v45 = vsub.f32 %v2975_v47, %v2977_v15  ;;  %v6530_v15 = vld [vmem:[%s8553_s3 + $0x78] sm:$0xff]  ;;  %v6529_v47 = vld [vmem:[%s8553_s3 + $0x70] sm:$0xff] }
 0x72d   :  { %v2974_v36 = vpop.xlane.xlu0 %2973  ;;  %6964 = vmatprep.subr.mxu1 %v6530_v15 }
 0x72e   :  { %v2983_v51 = vadd.f32 1e-05, %v2979_v45  ;;  %v2976_v16 = vmul.f32 0.03125, %v2974_v36  ;;  %v6528_v45 = vld [vmem:[%s8553_s3 + $0x68] sm:$0xff]  ;;  %v6527_v36 = vld [vmem:[%s8553_s3 + $0x60] sm:$0xff] }
 0x730   :  { %7197 = vrsqrt.f32 %v2983_v51  ;;  %v2980_v21 = vsub.f32 %v2976_v16, %v2978_v48  ;;  %v6538_v48 = vld [vmem:[%s8553_s3 + $0x98] sm:$0xff] }
 0x732   :  { %v2984_v22 = vadd.f32 1e-05, %v2980_v21 }
 0x734   :  { %7199 = vrsqrt.f32 %v2984_v22 }
 0x73d   :  { %v7198_v23 = vpop.eup %7197 }
 0x73e   :  { %v2987_v18 = vmul.f32 %v7198_v23, %v2981_v17 }
 0x740   :  { %6926 = vmatprep.mubr.msk.f32.mxu1 %vm102_vm0, %v2987_v18 }
 0x741   :  { %v7200_v61 = vpop.eup %7199 }
 0x742   :  { %v2988_v19 = vmul.f32 %v7200_v61, %v2982_v24 }
 0x744   :  { %6927 = vmatmul.mubr.msk.f32.vlgmr.msra.gmra.mxu1 %vm102_vm0, %v2988_v19 }
 0x745   :  { %6965 = vmatpush3.msra.mxu1 %v6530_v15 }
 0x746   :  { %6966 = vmatprep.subr.mxu1 %v6529_v47 }
 0x747   :  { %6967 = vmatpush3.msra.mxu1 %v6529_v47 }
 0x748   :  { %6968 = vmatprep.subr.mxu1 %v6528_v45 }
 0x749   :  { %6969 = vmatpush3.msra.mxu1 %v6528_v45 }
 0x74a   :  { %6970 = vmatprep.subr.mxu1 %v6527_v36 }
 0x74b   :  { %6971 = vmatpush3.msra.mxu1 %v6527_v36 }
 0x74c   :  { %6975 = vmatprep.subr.mxu1 %v6538_v48 }
 0x804   :  { %v6928_v35 = vpop.f32.mrf.mxu1 }
 0x805   :  { %v3078_v37 = vadd.f32 %v6928_v35, %v6521_v34 }
 0x806   :  { %v3072_v55 = vpop.f32.mrf.mxu1 }
 0x807   :  { %v6525_v38 = vmul.f32 -1.702, %v3078_v37  ;;  %v3073_v39 = vadd.f32 %v6521_v34, %v3072_v55  ;;  %v6543_v34 = vld [vmem:[%s8553_s3 + $0xa0] sm:$0xff] }
 0x809   :  { %v3087_v40 = vmul.f32 1.442695, %v6525_v38  ;;  %v6524_v41 = vmul.f32 -1.702, %v3073_v39 }
 0x80b   :  { %7201 = vpow2.f32 %v3087_v40  ;;  %v3085_v7 = vmul.f32 1.442695, %v6524_v41  ;;  %v6540_v40 = vld [vmem:[%s8554_s4 + $0x4] ss:$0 sm:$0xff] }
 0x80d   :  { %7203 = vpow2.f32 %v3085_v7 }
 0x818   :  { %v7202_v8 = vpop.eup %7201 }
 0x819   :  { %v3090_v10 = vadd.f32 1.0, %v7202_v8  ;;  %v8082_v8 = vld [vmem:[%s8554_s4 + $0x5] ss:$0 sm:$0xff] }
 0x81a   :  { %v7204_v44 = vpop.eup %7203 }
 0x81b   :  { %v3089_v50 = vadd.f32 1.0, %v7204_v44  ;;  %7205 = vrcp.f32 %v3090_v10 }
 0x81d   :  { %7207 = vrcp.f32 %v3089_v50 }
 0x828   :  { %v7206_v60 = vpop.eup %7205 }
 0x829   :  { %v3096_v4 = vmul.f32 %v7206_v60, %v3078_v37  ;;  %v6532_v37 = vld [vmem:[%s8554_s4 + $0x3] ss:$0 sm:$0xff] }
 0x82a   :  { %v7208_v62 = vpop.eup %7207 }
 0x82b   :  { %v3095_v63 = vmul.f32 %v7208_v62, %v3073_v39 }
 0x82d   :  { %6961 = vmatprep.mubr.f32.mxu0 %v3095_v63 }
 0x82e   :  { %6962 = vmatmul.mubr.f32.vlgmr.msra.gmra.mxu0 %v3096_v4 }
 0x82f   :  { %7009 = vmatprep.mubr.msk.f32.mxu0 %vm7380_vm1, %v7379_v56 }
 0x8ee   :  { %v6963_v0 = vpop.f32.mrf.mxu0 }
 0x8ef   :  { %v3189_v1 = vadd.f32 %v6963_v0, %v7919_v49 }
 0x8f0   :  { %v3179_v2 = vpop.f32.mrf.mxu0 }
 0x8f1   :  { %v8008_v42 = vadd.f32 %v6526_v3, %v3189_v1  ;;  %v3188_v30 = vadd.f32 %v3179_v2, %v7922_v52 }
 0x8f3   :  { %v8011_v5 = vadd.f32 %v6526_v3, %v3188_v30  ;;  %v3202_v11 = vsel %vm102_vm0, %v8008_v42, 0.0  ;;  %v3208_v12 = vmul.f32 %v8008_v42, %v8008_v42 }
 0x8f4   :  { %3203 = vadd.xlane.f32.xlu1 %v3202_v11 }
 0x8f5   :  { %v3199_v14 = vsel %vm102_vm0, %v8011_v5, 0.0  ;;  %v3207_v49 = vmul.f32 %v8011_v5, %v8011_v5  ;;  %v3212_v54 = vsel %vm102_vm0, %v3208_v12, 0.0 }
 0x8f6   :  { %3200 = vadd.xlane.f32.xlu0 %v3199_v14 }
 0x8f7   :  { %v3209_v52 = vsel %vm102_vm0, %v3207_v49, 0.0 }
 0x8f8   :  { %3213 = vadd.xlane.f32.xlu1 %v3212_v54 }
 0x8fa   :  { %3210 = vadd.xlane.f32.xlu0 %v3209_v52 }
 0x97d   :  { %v3204_v51 = vpop.xlane.xlu1 %3203 }
 0x97e   :  { %v3206_v16 = vmul.f32 0.03125, %v3204_v51 }
 0x97f   :  { %v3201_v21 = vpop.xlane.xlu0 %3200 }
 0x980   :  { %v3205_v22 = vmul.f32 0.03125, %v3201_v21  ;;  %v3218_v23 = vmul.f32 %v3206_v16, %v3206_v16  ;;  %v3222_v57 = vsub.f32 %v8008_v42, %v3206_v16 }
 0x981   :  { %v3214_v17 = vpop.xlane.xlu1 %3213 }
 0x982   :  { %v3216_v18 = vmul.f32 0.03125, %v3214_v17  ;;  %v3217_v61 = vmul.f32 %v3205_v22, %v3205_v22  ;;  %v3221_v53 = vsub.f32 %v8011_v5, %v3205_v22 }
 0x983   :  { %v3211_v24 = vpop.xlane.xlu0 %3210 }
 0x984   :  { %v3220_v19 = vsub.f32 %v3216_v18, %v3218_v23  ;;  %v3215_v25 = vmul.f32 0.03125, %v3211_v24 }
 0x986   :  { %v3224_v20 = vadd.f32 1e-05, %v3220_v19  ;;  %v3219_v26 = vsub.f32 %v3215_v25, %v3217_v61 }
 0x988   :  { %v3223_v27 = vadd.f32 1e-05, %v3219_v26  ;;  %7209 = vrsqrt.f32 %v3224_v20 }
 0x98a   :  { %7211 = vrsqrt.f32 %v3223_v27 }
 0x995   :  { %v7210_v28 = vpop.eup %7209 }
 0x996   :  { %v3228_v59 = vmul.f32 %v7210_v28, %v3222_v57 }
 0x997   :  { %v7212_v46 = vpop.eup %7211 }
 0x998   :  { %v3227_v58 = vmul.f32 %v7212_v46, %v3221_v53 }
 0x99a   :  { %6972 = vmatprep.mubr.msk.f32.mxu1 %vm102_vm0, %v3227_v58 }
 0x99b   :  { %6973 = vmatmul.mubr.msk.f32.vlgmr.msra.gmra.mxu1 %vm102_vm0, %v3228_v59 }
 0x99c   :  { %6976 = vmatpush3.msra.mxu1 %v6538_v48  ;;  %6983 = vmatprep.mubr.msk.f32.mxu1 %vm102_vm0, %v3227_v58 }
 0x99d   :  { %6977 = vmatprep.subr.mxu1 %v6537_v29 }
 0x99e   :  { %6978 = vmatpush3.msra.mxu1 %v6537_v29 }
 0x99f   :  { %6979 = vmatprep.subr.mxu1 %v6536_v43 }
 0x9a0   :  { %6980 = vmatpush3.msra.mxu1 %v6536_v43 }
 0x9a1   :  { %6981 = vmatprep.subr.mxu1 %v6535_v31 }
 0x9a2   :  { %6982 = vmatpush3.msra.mxu1 %v6535_v31 }
 0x9a3   :  { %6984 = vmatmul.mubr.msk.f32.vlgmr.msra.gmra.mxu1 %vm102_vm0, %v3228_v59  ;;  %6986 = vmatprep.subr.mxu1 %v6546_v32 }
 0x9a4   :  { %6987 = vmatpush3.msra.mxu1 %v6546_v32  ;;  %6994 = vmatprep.mubr.msk.f32.mxu1 %vm102_vm0, %v3227_v58 }
 0x9a5   :  { %6988 = vmatprep.subr.mxu1 %v6545_v33 }
 0x9a6   :  { %6989 = vmatpush3.msra.mxu1 %v6545_v33 }
 0x9a7   :  { %6990 = vmatprep.subr.mxu1 %v6544_v9 }
 0x9a8   :  { %6991 = vmatpush3.msra.mxu1 %v6544_v9 }
 0x9a9   :  { %6992 = vmatprep.subr.mxu1 %v6543_v34 }
 0x9aa   :  { %6993 = vmatpush3.msra.mxu1 %v6543_v34 }
 0x9ab   :  { %6995 = vmatmul.mubr.msk.f32.vlgmr.msra.gmra.mxu1 %vm102_vm0, %v3228_v59  ;;  %6997 = vmatprep.subr.mxu1 %v7379_v56 }
 0x9ac   :  { %6999 = vmatprep.mubr.msk.f32.mxu1 %vm7380_vm1, %v7379_v56 }
 0xa5b   :  { %v6974_v35 = vpop.f32.mrf.mxu1 }
 0xa5c   :  { %v8098_v60 = vadd.f32 %v6974_v35, %v6532_v37 }
 0xa5d   :  { %v3314_v55 = vpop.f32.mrf.mxu1 }
 0xa5e   :  { %v3315_v38 = vadd.f32 %v6532_v37, %v3314_v55 }
 0xa60   :  { %3501 = vrot.lane.b32.xlu1 %v3315_v38, %s7376_s18 }
 0xa63   :  { %v6985_v39 = vpop.f32.mrf.mxu1 }
 0xa64   :  { %v8089_v50 = vadd.f32 %v6985_v39, %v6540_v40 }
 0xa65   :  { %v3402_v41 = vpop.f32.mrf.mxu1 }
 0xa66   :  { %v3403_v7 = vadd.f32 %v6540_v40, %v3402_v41 }
 0xa68   :  { %3793 = vrot.lane.b32.xlu0 %v3403_v7, %s7376_s18  ;;  %3799 = vrot.lane.b32.xlu1 %v3403_v7, %s7377_s21 }
 0xa6b   :  { %v6996_v10 = vpop.f32.mrf.mxu1 }
 0xa6c   :  { %v8085_v44 = vadd.f32 %v6996_v10, %v8082_v8  ;;  %3507 = vrot.lane.b32.xlu0 %v3315_v38, %s7377_s21  ;;  %3805 = vrot.lane.b32.xlu1 %v3403_v7, %s7378_s22 }
 0xa70   :  { %3795 = vrot.lane.b32.xlu0 %v8089_v50, %s7376_s18  ;;  %3513 = vrot.lane.b32.xlu1 %v3315_v38, %s7378_s22 }
 0xa74   :  { %3807 = vrot.lane.b32.xlu0 %v8089_v50, %s7378_s22  ;;  %3801 = vrot.lane.b32.xlu1 %v8089_v50, %s7377_s21 }
 0xa78   :  { %3509 = vrot.lane.b32.xlu0 %v8098_v60, %s7377_s21  ;;  %3503 = vrot.lane.b32.xlu1 %v8098_v60, %s7376_s18 }
 0xa7c   :  { %3515 = vrot.lane.b32.xlu1 %v8098_v60, %s7378_s22 }
 0xad2   :  { %v3502_v62 = vpop.permute.xlu1 %3501 }
 0xada   :  { %v3794_v63 = vpop.permute.xlu0 %3793  ;;  %v3800_v4 = vpop.permute.xlu1 %3799 }
 0xadb   :  { %v3811_v0 = vcombine.low %v3403_v7, %v3800_v4  ;;  %v3812_v3 = vcombine.high %v3403_v7, %v3800_v4 }
 0xadd   :  { %v3819_v12 = vrot.slane %v3811_v0, %v7575_v6  ;;  %v3826_v14 = vrot.slane %v3812_v3, %v7575_v6 }
 0xade   :  { %v3508_v1 = vpop.permute.xlu0 %3507  ;;  %v3806_v2 = vpop.permute.xlu1 %3805 }
 0xadf   :  { %v3827_v30 = vcombine.low %v3794_v63, %v3806_v2  ;;  %v3828_v11 = vcombine.high %v3794_v63, %v3806_v2  ;;  %v3519_v52 = vcombine.low %v3315_v38, %v3508_v1  ;;  %v3520_v15 = vcombine.high %v3315_v38, %v3508_v1 }
 0xae1   :  { %v3835_v49 = vrot.slane %v3827_v30, %v7575_v6  ;;  %v3842_v54 = vrot.slane %v3828_v11, %v7575_v6  ;;  %v3527_v61 = vrot.slane %v3519_v52, %v7575_v6  ;;  %v3534_v19 = vrot.slane %v3520_v15, %v7575_v6 }
 0xae2   :  { %v3514_v47 = vpop.permute.xlu1 %3513  ;;  %v3796_v16 = vpop.permute.xlu0 %3795 }
 0xae3   :  { %v3843_v45 = vcombine.low %v3819_v12, %v3835_v49  ;;  %v3844_v36 = vcombine.high %v3819_v12, %v3835_v49  ;;  %v3859_v48 = vcombine.low %v3826_v14, %v3842_v54  ;;  %v3860_v51 = vcombine.high %v3826_v14, %v3842_v54 }
 0xae4   :  { %v3535_v21 = vcombine.low %v3502_v62, %v3514_v47  ;;  %v3536_v22 = vcombine.high %v3502_v62, %v3514_v47 }
 0xae5   :  { %v3851_v17 = vrot.slane %v3843_v45, %v7577_v13  ;;  %v3858_v23 = vrot.slane %v3844_v36, %v7577_v13  ;;  %v3867_v18 = vrot.slane %v3859_v48, %v7577_v13  ;;  %v3874_v24 = vrot.slane %v3860_v51, %v7577_v13 }
 0xae6   :  { %v3543_v25 = vrot.slane %v3535_v21, %v7575_v6  ;;  %v3550_v20 = vrot.slane %v3536_v22, %v7575_v6  ;;  %v3802_v26 = vpop.permute.xlu1 %3801  ;;  %v3808_v9 = vpop.permute.xlu0 %3807 }
 0xae7   :  { %v3947_v27 = vcombine.low %v3851_v17, %v3858_v23  ;;  %v6555_v28 = vcombine.high %v3851_v17, %v3858_v23  ;;  %v3963_v53 = vcombine.low %v3867_v18, %v3874_v24  ;;  %v6556_v46 = vcombine.high %v3867_v18, %v3874_v24 }
 0xae8   :  { %v3551_v57 = vcombine.low %v3527_v61, %v3543_v25  ;;  %v3552_v58 = vcombine.high %v3527_v61, %v3543_v25  ;;  %v3567_v59 = vcombine.low %v3534_v19, %v3550_v20  ;;  %v3568_v29 = vcombine.high %v3534_v19, %v3550_v20 }
 0xae9   :  { %v8119_v43 = vrot.slane %v3947_v27, %v7575_v6  ;;  %v8122_v31 = vrot.slane %v6555_v28, %v7575_v6  ;;  %v8125_v32 = vrot.slane %v3963_v53, %v7575_v6  ;;  %v8128_v33 = vrot.slane %v6556_v46, %v7575_v6 }
 0xaea   :  { %v3559_v34 = vrot.slane %v3551_v57, %v7577_v13  ;;  %v3566_v35 = vrot.slane %v3552_v58, %v7577_v13  ;;  %v3575_v37 = vrot.slane %v3567_v59, %v7577_v13  ;;  %v3582_v55 = vrot.slane %v3568_v29, %v7577_v13  ;;  %v3504_v38 = vpop.permute.xlu1 %3503  ;;  %v3510_v54 = vpop.permute.xlu0 %3509 }
 0xaeb   :  { %v3979_v39 = vcombine.low %v8119_v43, %v8122_v31  ;;  %v3980_v40 = vcombine.high %v8119_v43, %v8122_v31  ;;  %v3895_v63 = vcombine.low %v3796_v16, %v3808_v9  ;;  %v3896_v4 = vcombine.high %v3796_v16, %v3808_v9 }
 0xaec   :  { %v3655_v41 = vcombine.low %v3559_v34, %v3566_v35  ;;  %v6551_v7 = vcombine.high %v3559_v34, %v3566_v35  ;;  %v3671_v10 = vcombine.low %v3575_v37, %v3582_v55  ;;  %v6552_v62 = vcombine.high %v3575_v37, %v3582_v55 }
 0xaed   :  { %v3879_v0 = vcombine.low %v8089_v50, %v3802_v26  ;;  %v3880_v3 = vcombine.high %v8089_v50, %v3802_v26  ;;  %v3995_v1 = vcombine.low %v8125_v32, %v8128_v33  ;;  %v3996_v2 = vcombine.high %v8125_v32, %v8128_v33 }
 0xaee   :  { %v8145_v30 = vrot.slane %v3655_v41, %v7575_v6  ;;  %v8148_v11 = vrot.slane %v6551_v7, %v7575_v6  ;;  %v3903_v12 = vrot.slane %v3895_v63, %v7575_v6  ;;  %v3910_v14 = vrot.slane %v3896_v4, %v7575_v6  ;;  %v3516_v52 = vpop.permute.xlu1 %3515 }
 0xaef   :  { %v3887_v49 = vrot.slane %v3879_v0, %v7575_v6  ;;  %v3894_v50 = vrot.slane %v3880_v3, %v7575_v6  ;;  %v8155_v15 = vrot.slane %v3671_v10, %v7575_v6  ;;  %v8158_v47 = vrot.slane %v6552_v62, %v7575_v6 }
 0xaf0   :  { %v3687_v45 = vcombine.low %v8145_v30, %v8148_v11  ;;  %v3688_v36 = vcombine.high %v8145_v30, %v8148_v11  ;;  %v3587_v22 = vcombine.low %v8098_v60, %v3510_v54  ;;  %v3588_v17 = vcombine.high %v8098_v60, %v3510_v54 }
 0xaf1   :  { %v3911_v48 = vcombine.low %v3887_v49, %v3903_v12  ;;  %v3912_v51 = vcombine.high %v3887_v49, %v3903_v12  ;;  %v3927_v16 = vcombine.low %v3894_v50, %v3910_v14  ;;  %v3928_v21 = vcombine.high %v3894_v50, %v3910_v14 }
 0xaf2   :  { %v3603_v23 = vcombine.low %v3504_v38, %v3516_v52  ;;  %v3604_v18 = vcombine.high %v3504_v38, %v3516_v52  ;;  %v3595_v20 = vrot.slane %v3587_v22, %v7575_v6  ;;  %v3602_v26 = vrot.slane %v3588_v17, %v7575_v6 }
 0xaf3   :  { %v3919_v24 = vrot.slane %v3911_v48, %v7577_v13  ;;  %v3926_v61 = vrot.slane %v3912_v51, %v7577_v13  ;;  %v3935_v19 = vrot.slane %v3927_v16, %v7577_v13  ;;  %v3942_v25 = vrot.slane %v3928_v21, %v7577_v13 }
 0xaf4   :  { %v3611_v27 = vrot.slane %v3603_v23, %v7575_v6  ;;  %v3618_v28 = vrot.slane %v3604_v18, %v7575_v6  ;;  %v3703_v7 = vcombine.low %v8155_v15, %v8158_v47  ;;  %v3704_v10 = vcombine.high %v8155_v15, %v8158_v47 }
 0xaf5   :  { %v4015_v53 = vcombine.low %v3919_v24, %v3926_v61  ;;  %v6557_v60 = vcombine.high %v3919_v24, %v3926_v61  ;;  %v4031_v46 = vcombine.low %v3935_v19, %v3942_v25  ;;  %v6558_v57 = vcombine.high %v3935_v19, %v3942_v25 }
 0xaf6   :  { %v3619_v58 = vcombine.low %v3595_v20, %v3611_v27  ;;  %v3620_v59 = vcombine.high %v3595_v20, %v3611_v27  ;;  %v3635_v29 = vcombine.low %v3602_v26, %v3618_v28  ;;  %v3636_v32 = vcombine.high %v3602_v26, %v3618_v28 }
 0xaf7   :  { %v4022_v33 = vrot.slane %v4015_v53, %v7575_v6  ;;  %v4030_v9 = vrot.slane %v6557_v60, %v7575_v6  ;;  %v4038_v34 = vrot.slane %v4031_v46, %v7575_v6  ;;  %v4046_v35 = vrot.slane %v6558_v57, %v7575_v6 }
 0xaf8   :  { %v3627_v37 = vrot.slane %v3619_v58, %v7577_v13  ;;  %v3634_v55 = vrot.slane %v3620_v59, %v7577_v13  ;;  %v3643_v38 = vrot.slane %v3635_v29, %v7577_v13  ;;  %v3650_v41 = vrot.slane %v3636_v32, %v7577_v13 }
 0xaf9   :  { %v4047_v62 = vcombine.low %v4022_v33, %v4030_v9  ;;  %v4063_v63 = vcombine.low %v4038_v34, %v4046_v35  ;;  %v3987_v11 = vrot.slane %v3979_v39, %v7577_v13  ;;  %v4003_v12 = vrot.slane %v3995_v1, %v7577_v13 }
 0xafa   :  { %v3723_v4 = vcombine.low %v3627_v37, %v3634_v55  ;;  %v6553_v0 = vcombine.high %v3627_v37, %v3634_v55  ;;  %v3739_v3 = vcombine.low %v3643_v38, %v3650_v41  ;;  %v6554_v30 = vcombine.high %v3643_v38, %v3650_v41 }
 0xafb   :  { %v3994_v14 = vrot.slane %v3980_v40, %v7577_v13  ;;  %v4010_v49 = vrot.slane %v3996_v2, %v7577_v13  ;;  %v4011_v47 = vcombine.low %v3987_v11, %v4003_v12  ;;  %v3695_v39 = vrot.slane %v3687_v45, %v7577_v13 }
 0xafc   :  { %v3730_v50 = vrot.slane %v3723_v4, %v7575_v6  ;;  %v3738_v54 = vrot.slane %v6553_v0, %v7575_v6  ;;  %v3746_v52 = vrot.slane %v3739_v3, %v7575_v6  ;;  %v3754_v15 = vrot.slane %v6554_v30, %v7575_v6 }
 0xafd   :  { %v4013_v48 = vcombine.low %v3994_v14, %v4010_v49  ;;  %v3711_v1 = vrot.slane %v3703_v7, %v7577_v13  ;;  %v4048_v51 = vcombine.high %v4022_v33, %v4030_v9  ;;  %v4064_v31 = vcombine.high %v4038_v34, %v4046_v35  ;;  %6998 = vmatpush3.xpose.msk.msra.mxu1 %vm1278_vm2, %v4011_v47  ;;  %v3490_v9 = vpop.f32.mrf.mxu1  ;;  %v7261_v35 = vld [vmem:[#allocation7] sm:$0xff] }
 0xafe   :  { %v3755_v16 = vcombine.low %v3730_v50, %v3738_v54  ;;  %v3771_v43 = vcombine.low %v3746_v52, %v3754_v15  ;;  %v3702_v2 = vrot.slane %v3688_v36, %v7577_v13  ;;  %7002 = vmatprep.subr.mxu1 %v7379_v56  ;;  %v4012_v21 = vcombine.high %v3987_v11, %v4003_v12 }
 0xaff   :  { %7008 = vmatpush3.xpose.msk.msra.mxu0 %vm1278_vm2, %v4013_v48  ;;  %v3719_v40 = vcombine.low %v3695_v39, %v3711_v1  ;;  %v3718_v22 = vrot.slane %v3704_v10, %v7577_v13  ;;  %v4055_v45 = vrot.slane %v4047_v62, %v7577_v13  ;;  %v4071_v17 = vrot.slane %v4063_v63, %v7577_v13 }
 0xb00   :  { %7017 = vmatprep.subr.mxu0 %v7379_v56  ;;  %v3763_v23 = vrot.slane %v3755_v16, %v7577_v13  ;;  %v3779_v18 = vrot.slane %v3771_v43, %v7577_v13  ;;  %v3756_v24 = vcombine.high %v3730_v50, %v3738_v54  ;;  %v3772_v61 = vcombine.high %v3746_v52, %v3754_v15 }
 0xb01   :  { %7000 = vmatmul.mubr.msk.f32.vlgmr.msra.gmra.mxu1 %vm1278_vm2, %v3719_v40  ;;  %v3721_v36 = vcombine.low %v3702_v2, %v3718_v22  ;;  %v4079_v19 = vcombine.low %v4055_v45, %v4071_v17  ;;  %v4062_v25 = vrot.slane %v4048_v51, %v7577_v13  ;;  %v4078_v20 = vrot.slane %v4064_v31, %v7577_v13 }
 0xb02   :  { %7003 = vmatpush3.xpose.msk.msra.mxu1 %vm1278_vm2, %v4012_v21  ;;  %7004 = vmatprep.mubr.msk.f32.mxu1 %vm7380_vm1, %v7379_v56  ;;  %v3720_v26 = vcombine.high %v3695_v39, %v3711_v1  ;;  %v3787_v27 = vcombine.low %v3763_v23, %v3779_v18  ;;  %v4014_v28 = vcombine.high %v3994_v14, %v4010_v49 }
 0xb03   :  { %7010 = vmatmul.mubr.msk.f32.vlgmr.msra.gmra.mxu0 %vm1278_vm2, %v3721_v36  ;;  %7012 = vmatprep.subr.mxu1 %v7379_v56  ;;  %v3770_v53 = vrot.slane %v3756_v24, %v7577_v13  ;;  %v3786_v60 = vrot.slane %v3772_v61, %v7577_v13  ;;  %v4081_v46 = vcombine.low %v4062_v25, %v4078_v20 }
 0xb04   :  { %7018 = vmatpush3.xpose.msk.msra.mxu0 %vm1278_vm2, %v4079_v19  ;;  %7019 = vmatprep.mubr.msk.f32.mxu0 %vm7380_vm1, %v7379_v56  ;;  %v3722_v57 = vcombine.high %v3702_v2, %v3718_v22  ;;  %v4080_v58 = vcombine.high %v4055_v45, %v4071_v17  ;;  %v3788_v59 = vcombine.high %v3763_v23, %v3779_v18 }
 0xb05   :  { %7005 = vmatmul.mubr.msk.f32.vlgmr.msra.gmra.mxu1 %vm1278_vm2, %v3720_v26  ;;  %7027 = vmatprep.subr.mxu0 %v7379_v56  ;;  %v3789_v29 = vcombine.low %v3770_v53, %v3786_v60  ;;  %v4082_v32 = vcombine.high %v4062_v25, %v4078_v20  ;;  %v3790_v33 = vcombine.high %v3770_v53, %v3786_v60 }
 0xb06   :  { %7013 = vmatpush3.xpose.msk.msra.mxu1 %vm1278_vm2, %v4014_v28  ;;  %7014 = vmatprep.mubr.msk.f32.mxu1 %vm7380_vm1, %v7379_v56  ;;  %v8259_v31 = vadd.f32 %v8082_v8, %v3490_v9 }
 0xb07   :  { %7022 = vmatprep.subr.mxu1 %v7379_v56  ;;  %7020 = vmatmul.mubr.msk.f32.vlgmr.msra.gmra.mxu0 %vm1278_vm2, %v3787_v27 }
 0xb08   :  { %7028 = vmatpush3.xpose.msk.msra.mxu0 %vm1278_vm2, %v4081_v46  ;;  %7029 = vmatprep.mubr.msk.f32.mxu0 %vm7380_vm1, %v7379_v56 }
 0xb09   :  { %7015 = vmatmul.mubr.msk.f32.vlgmr.msra.gmra.mxu1 %vm1278_vm2, %v3722_v57  ;;  %7037 = vmatprep.subr.mxu0 %v7379_v56 }
 0xb0a   :  { %7023 = vmatpush3.xpose.msk.msra.mxu1 %vm1278_vm2, %v4080_v58  ;;  %7024 = vmatprep.mubr.msk.f32.mxu1 %vm7380_vm1, %v7379_v56 }
 0xb0b   :  { %7032 = vmatprep.subr.mxu1 %v7379_v56  ;;  %7030 = vmatmul.mubr.msk.f32.vlgmr.msra.gmra.mxu0 %vm1278_vm2, %v3789_v29 }
 0xb0c   :  { %7039 = vmatprep.mubr.msk.f32.mxu0 %vm7380_vm1, %v7379_v56 }
 0xb0d   :  { %7025 = vmatmul.mubr.msk.f32.vlgmr.msra.gmra.mxu1 %vm1278_vm2, %v3788_v59 }
 0xb0e   :  { %7033 = vmatpush3.xpose.msk.msra.mxu1 %vm1278_vm2, %v4082_v32  ;;  %7034 = vmatprep.mubr.msk.f32.mxu1 %vm7380_vm1, %v7379_v56 }
 0xb0f   :  { %7042 = vmatprep.subr.mxu1 %v7379_v56 }
 0xb11   :  { %7035 = vmatmul.mubr.msk.f32.vlgmr.msra.gmra.mxu1 %vm1278_vm2, %v3790_v33 }
 0xb12   :  { %7044 = vmatprep.mubr.msk.f32.mxu1 %vm7380_vm1, %v7379_v56 }
 0xbc1   :  { %v4447_v34 = vpop.f32.mrf.mxu1 }
 0xbc2   :  { %v4448_v37 = vadd.f32 %v7261_v35, %v4447_v34 }
 0xbc3   :  { %v4599_v55 = vpop.f32.mrf.mxu0  ;;  %v7001_v38 = vpop.f32.mrf.mxu1 }
 0xbc4   :  { %v4600_v41 = vadd.f32 %v7261_v35, %v4599_v55  ;;  %v4983_v7 = vsel %vm1278_vm2, %v4448_v37, -inf }
 0xbc5   :  { %v7011_v10 = vpop.f32.mrf.mxu0  ;;  %4984 = vmax.xlane.f32.xlu0 %v4983_v7  ;;  %v4523_v62 = vpop.f32.mrf.mxu1 }
 0xbc6   :  { %v4524_v63 = vadd.f32 %v7261_v35, %v4523_v62  ;;  %v4989_v3 = vsel %vm1278_vm2, %v4600_v41, -inf }
 0xbc7   :  { %v7006_v4 = vpop.f32.mrf.mxu1  ;;  %v4751_v0 = vpop.f32.mrf.mxu0 }
 0xbc8   :  { %v4986_v30 = vsel %vm1278_vm2, %v4524_v63, -inf  ;;  %v4752_v49 = vadd.f32 %v7261_v35, %v4751_v0 }
 0xbc9   :  { %4990 = vmax.xlane.f32.xlu0 %v4989_v3  ;;  %4987 = vmax.xlane.f32.xlu1 %v4986_v30  ;;  %v4675_v11 = vpop.f32.mrf.mxu1  ;;  %v7021_v12 = vpop.f32.mrf.mxu0 }
 0xbca   :  { %v4676_v14 = vadd.f32 %v7261_v35, %v4675_v11  ;;  %v4995_v48 = vsel %vm1278_vm2, %v4752_v49, -inf }
 0xbcb   :  { %v7016_v50 = vpop.f32.mrf.mxu1  ;;  %v4903_v54 = vpop.f32.mrf.mxu0 }
 0xbcc   :  { %v4992_v52 = vsel %vm1278_vm2, %v4676_v14, -inf  ;;  %v4904_v39 = vadd.f32 %v7261_v35, %v4903_v54 }
 0xbcd   :  { %4993 = vmax.xlane.f32.xlu0 %v4992_v52  ;;  %v4827_v15 = vpop.f32.mrf.mxu1  ;;  %v7031_v47 = vpop.f32.mrf.mxu0 }
 0xbce   :  { %v5001_v16 = vsel %vm1278_vm2, %v4904_v39, -inf  ;;  %v4828_v40 = vadd.f32 %v7261_v35, %v4827_v15 }
 0xbcf   :  { %v7026_v1 = vpop.f32.mrf.mxu1 }
 0xbd0   :  { %v4998_v21 = vsel %vm1278_vm2, %v4828_v40, -inf }
 0xbd1   :  { %v4979_v51 = vpop.f32.mrf.mxu1  ;;  %4996 = vmax.xlane.f32.xlu0 %v4995_v48 }
 0xbd2   :  { %v4980_v2 = vadd.f32 %v7261_v35, %v4979_v51 }
 0xbd3   :  { %v7036_v43 = vpop.f32.mrf.mxu1 }
 0xbd4   :  { %v5004_v22 = vsel %vm1278_vm2, %v4980_v2, -inf }
 0xbd5   :  { %5002 = vmax.xlane.f32.xlu0 %v5001_v16 }
 0xbda   :  { %4091 = vrot.lane.b32.xlu1 %v8259_v31, %s7377_s21 }
 0xbeb   :  { %4085 = vrot.lane.b32.xlu0 %v8259_v31, %s7376_s18 }
 0xbfe   :  { %4999 = vmax.xlane.f32.xlu1 %v4998_v21 }
 0xc02   :  { %5005 = vmax.xlane.f32.xlu1 %v5004_v22 }
 0xc13   :  { %4097 = vrot.lane.b32.xlu1 %v8259_v31, %s7378_s22 }
 0xc4e   :  { %v4985_v45 = vpop.xlane.xlu0 %4984 }
 0xc4f   :  { %v5007_v8 = vsub.f32 %v4448_v37, %v4985_v45 }
 0xc51   :  { %v5015_v17 = vmul.f32 1.442695, %v5007_v8 }
 0xc52   :  { %v4991_v23 = vpop.xlane.xlu0 %4990  ;;  %v4988_v18 = vpop.xlane.xlu1 %4987 }
 0xc53   :  { %7213 = vpow2.f32 %v5015_v17  ;;  %v5009_v24 = vsub.f32 %v4600_v41, %v4991_v23  ;;  %v5008_v61 = vsub.f32 %v4524_v63, %v4988_v18 }
 0xc55   :  { %v5019_v36 = vmul.f32 1.442695, %v5009_v24  ;;  %v5017_v19 = vmul.f32 1.442695, %v5008_v61 }
 0xc56   :  { %v4994_v25 = vpop.xlane.xlu0 %4993  ;;  %v4092_v7 = vpop.permute.xlu1 %4091 }
 0xc57   :  { %7215 = vpow2.f32 %v5019_v36  ;;  %v5010_v20 = vsub.f32 %v4676_v14, %v4994_v25  ;;  %v4103_v3 = vcombine.low %v8259_v31, %v4092_v7  ;;  %v4104_v30 = vcombine.high %v8259_v31, %v4092_v7 }
 0xc58   :  { %7217 = vpow2.f32 %v5017_v19 }
 0xc59   :  { %v5021_v26 = vmul.f32 1.442695, %v5010_v20  ;;  %v4111_v54 = vrot.slane %v4103_v3, %v7575_v6  ;;  %v4118_v52 = vrot.slane %v4104_v30, %v7575_v6 }
 0xc5a   :  { %v4997_v27 = vpop.xlane.xlu0 %4996 }
 0xc5b   :  { %7219 = vpow2.f32 %v5021_v26  ;;  %v5011_v28 = vsub.f32 %v4752_v49, %v4997_v27 }
 0xc5d   :  { %v5023_v53 = vmul.f32 1.442695, %v5011_v28 }
 0xc5e   :  { %v5003_v60 = vpop.xlane.xlu0 %5002 }
 0xc5f   :  { %7221 = vpow2.f32 %v5023_v53  ;;  %v5013_v46 = vsub.f32 %v4904_v39, %v5003_v60 }
 0xc60   :  { %v8269_v57 = vpop.eup %7213 }
 0xc61   :  { %v5027_v58 = vmul.f32 1.442695, %v5013_v46  ;;  %v5031_v59 = vsel %vm1278_vm2, %v8269_v57, 0.0 }
 0xc62   :  { %5032 = vadd.xlane.f32.xlu0 %v5031_v59  ;;  %v4086_v12 = vpop.permute.xlu0 %4085 }
 0xc63   :  { %7223 = vpow2.f32 %v5027_v58 }
 0xc64   :  { %v8273_v29 = vpop.eup %7215 }
 0xc65   :  { %v8275_v32 = vpop.eup %7217  ;;  %v5037_v33 = vsel %vm1278_vm2, %v8273_v29, 0.0 }
 0xc66   :  { %5038 = vadd.xlane.f32.xlu0 %v5037_v33  ;;  %v5034_v9 = vsel %vm1278_vm2, %v8275_v32, 0.0 }
 0xc67   :  { %5035 = vadd.xlane.f32.xlu1 %v5034_v9 }
 0xc68   :  { %v8281_v34 = vpop.eup %7219 }
 0xc69   :  { %v5040_v35 = vsel %vm1278_vm2, %v8281_v34, 0.0 }
 0xc6b   :  { %5041 = vadd.xlane.f32.xlu1 %v5040_v35 }
 0xc6c   :  { %v8285_v37 = vpop.eup %7221 }
 0xc6d   :  { %v5043_v55 = vsel %vm1278_vm2, %v8285_v37, 0.0 }
 0xc6e   :  { %5044 = vadd.xlane.f32.xlu0 %v5043_v55 }
 0xc70   :  { %v8289_v38 = vpop.eup %7223 }
 0xc71   :  { %v5049_v41 = vsel %vm1278_vm2, %v8289_v38, 0.0 }
 0xc72   :  { %5050 = vadd.xlane.f32.xlu1 %v5049_v41 }
 0xc87   :  { %v5000_v10 = vpop.xlane.xlu1 %4999 }
 0xc88   :  { %v5012_v62 = vsub.f32 %v4828_v40, %v5000_v10 }
 0xc8a   :  { %v5025_v63 = vmul.f32 1.442695, %v5012_v62 }
 0xc8b   :  { %v5006_v4 = vpop.xlane.xlu1 %5005 }
 0xc8c   :  { %7225 = vpow2.f32 %v5025_v63  ;;  %v5014_v0 = vsub.f32 %v4980_v2, %v5006_v4 }
 0xc8e   :  { %v5029_v11 = vmul.f32 1.442695, %v5014_v0 }
 0xc8f   :  { %v4098_v14 = vpop.permute.xlu1 %4097 }
 0xc90   :  { %7227 = vpow2.f32 %v5029_v11  ;;  %v4119_v49 = vcombine.low %v4086_v12, %v4098_v14  ;;  %v4120_v50 = vcombine.high %v4086_v12, %v4098_v14 }
 0xc92   :  { %v4127_v15 = vrot.slane %v4119_v49, %v7575_v6  ;;  %v4134_v47 = vrot.slane %v4120_v50, %v7575_v6 }
 0xc94   :  { %v4135_v48 = vcombine.low %v4111_v54, %v4127_v15  ;;  %v4136_v39 = vcombine.high %v4111_v54, %v4127_v15  ;;  %v4151_v1 = vcombine.low %v4118_v52, %v4134_v47  ;;  %v4152_v51 = vcombine.high %v4118_v52, %v4134_v47 }
 0xc96   :  { %v4143_v16 = vrot.slane %v4135_v48, %v7577_v13  ;;  %v4150_v43 = vrot.slane %v4136_v39, %v7577_v13  ;;  %v4159_v31 = vrot.slane %v4151_v1, %v7577_v13  ;;  %v4166_v40 = vrot.slane %v4152_v51, %v7577_v13 }
 0xc98   :  { %v4239_v2 = vcombine.low %v4143_v16, %v4150_v43  ;;  %v6559_v21 = vcombine.high %v4143_v16, %v4150_v43  ;;  %v4255_v22 = vcombine.low %v4159_v31, %v4166_v40  ;;  %v6560_v45 = vcombine.high %v4159_v31, %v4166_v40 }
 0xc99   :  { %v8303_v8 = vpop.eup %7225 }
 0xc9a   :  { %v4246_v17 = vrot.slane %v4239_v2, %v7575_v6  ;;  %v4254_v23 = vrot.slane %v6559_v21, %v7575_v6  ;;  %v4262_v18 = vrot.slane %v4255_v22, %v7575_v6  ;;  %v4270_v24 = vrot.slane %v6560_v45, %v7575_v6 }
 0xc9b   :  { %v5046_v61 = vsel %vm1278_vm2, %v8303_v8, 0.0 }
 0xc9c   :  { %5047 = vadd.xlane.f32.xlu1 %v5046_v61  ;;  %v4271_v36 = vcombine.low %v4246_v17, %v4254_v23  ;;  %v4287_v19 = vcombine.low %v4262_v18, %v4270_v24  ;;  %v4272_v25 = vcombine.high %v4246_v17, %v4254_v23  ;;  %v4288_v20 = vcombine.high %v4262_v18, %v4270_v24 }
 0xc9d   :  { %v8311_v26 = vpop.eup %7227 }
 0xc9e   :  { %v5052_v27 = vsel %vm1278_vm2, %v8311_v26, 0.0  ;;  %v4279_v28 = vrot.slane %v4271_v36, %v7577_v13  ;;  %v4295_v53 = vrot.slane %v4287_v19, %v7577_v13  ;;  %v4286_v60 = vrot.slane %v4272_v25, %v7577_v13 }
 0xc9f   :  { %5053 = vadd.xlane.f32.xlu0 %v5052_v27  ;;  %v4302_v46 = vrot.slane %v4288_v20, %v7577_v13 }
 0xca0   :  { %v4303_v58 = vcombine.low %v4279_v28, %v4295_v53  ;;  %v4304_v59 = vcombine.high %v4279_v28, %v4295_v53 }
 0xca1   :  { %v4305_v33 = vcombine.low %v4286_v60, %v4302_v46  ;;  %v4306_v9 = vcombine.high %v4286_v60, %v4302_v46 }
 0xca2   :  { %7038 = vmatpush3.msra.mxu0 %v4303_v58  ;;  %7043 = vmatpush3.msra.mxu1 %v4304_v59 }
 0xca3   :  { %7047 = vmatprep.subr.mxu0 %v7379_v56  ;;  %7052 = vmatprep.subr.mxu1 %v7379_v56 }
 0xcad   :  { %4093 = vrot.lane.b32.xlu1 %v8085_v44, %s7377_s21 }
 0xcb1   :  { %4099 = vrot.lane.b32.xlu1 %v8085_v44, %s7378_s22 }
 0xcb5   :  { %4087 = vrot.lane.b32.xlu0 %v8085_v44, %s7376_s18  ;;  %s7385_s18 = smov [#allocation10]  }
 0xcb6   :  { %s6448_s21 = sshll.u32 %s7385_s18, 4  ;;  %s6449_s21 = int_to_ptr.vmem [resolvable:$true] %s6448_s21 }
 0xcb7   :  { %s7342_s22 = scalar_lea.vmem %s6449_s21, 32  ;;  %p7347_p7 = scmp.lt.s32.totalorder %s6449_s21, %s6449_s21 }
 0xcb8   :  { %p7343_p6 = scmp.ne.s32.totalorder %s6449_s21, %s7342_s22  ;;  %p7348_p8 = scmp.lt.s32.totalorder %s7342_s22, %s7342_s22 }
 0xcba   :  { %p7349_p9 = por %p7348_p8, %p7347_p7 }
 0xcbc   :  { %p7350_p10 = pnand %p7349_p9, %p7343_p6 }
 0xceb   :  { %v5033_v35 = vpop.xlane.xlu0 %5032 }
 0xcec   :  { %7229 = vrcp.f32 %v5033_v35 }
 0xcef   :  { %v5039_v55 = vpop.xlane.xlu0 %5038 }
 0xcf0   :  { %7231 = vrcp.f32 %v5039_v55  ;;  %v5036_v41 = vpop.xlane.xlu1 %5035 }
 0xcf1   :  { %7233 = vrcp.f32 %v5036_v41 }
 0xcf4   :  { %v5042_v7 = vpop.xlane.xlu1 %5041 }
 0xcf5   :  { %7235 = vrcp.f32 %v5042_v7 }
 0xcf9   :  { %v7230_v10 = vpop.eup %7229 }
 0xcfa   :  { %v5063_v62 = vmul.f32 %v7230_v10, %v8269_v57 }
 0xcfc   :  { %7040 = vmatmul.mubr.msk.f32.vlgmr.msra.gmra.mxu0 %vm1278_vm2, %v5063_v62 }
 0xcfd   :  { %v7232_v63 = vpop.eup %7231  ;;  %7048 = vmatpush3.msra.mxu0 %v4305_v33  ;;  %7049 = vmatprep.mubr.msk.f32.mxu0 %vm7380_vm1, %v7379_v56 }
 0xcfe   :  { %v7234_v4 = vpop.eup %7233  ;;  %v5065_v0 = vmul.f32 %v7232_v63, %v8273_v29  ;;  %7057 = vmatprep.subr.mxu0 %v7379_v56  ;;  %v5051_v29 = vpop.xlane.xlu1 %5050 }
 0xcff   :  { %v5064_v3 = vmul.f32 %v7234_v4, %v8275_v32  ;;  %v5045_v32 = vpop.xlane.xlu0 %5044 }
 0xd00   :  { %7050 = vmatmul.mubr.msk.f32.vlgmr.msra.gmra.mxu0 %vm1278_vm2, %v5065_v0  ;;  %7237 = vrcp.f32 %v5045_v32 }
 0xd01   :  { %7045 = vmatmul.mubr.msk.f32.vlgmr.msra.gmra.mxu1 %vm1278_vm2, %v5064_v3  ;;  %7059 = vmatprep.mubr.msk.f32.mxu0 %vm7380_vm1, %v7379_v56 }
 0xd02   :  { %v7236_v57 = vpop.eup %7235  ;;  %7053 = vmatpush3.msra.mxu1 %v4306_v9  ;;  %7054 = vmatprep.mubr.msk.f32.mxu1 %vm7380_vm1, %v7379_v56 }
 0xd03   :  { %v5066_v30 = vmul.f32 %v7236_v57, %v8281_v34  ;;  %7062 = vmatprep.subr.mxu1 %v7379_v56 }
 0xd05   :  { %7055 = vmatmul.mubr.msk.f32.vlgmr.msra.gmra.mxu1 %vm1278_vm2, %v5066_v30 }
 0xd06   :  { %7064 = vmatprep.mubr.msk.f32.mxu1 %vm7380_vm1, %v7379_v56 }
 0xd0d   :  { %v7238_v28 = vpop.eup %7237 }
 0xd0e   :  { %v5067_v55 = vmul.f32 %v7238_v28, %v8285_v37 }
 0xd25   :  { %v5048_v11 = vpop.xlane.xlu1 %5047 }
 0xd26   :  { %7239 = vrcp.f32 %v5048_v11 }
 0xd27   :  { %7241 = vrcp.f32 %v5051_v29 }
 0xd28   :  { %v5054_v12 = vpop.xlane.xlu0 %5053 }
 0xd29   :  { %v4094_v14 = vpop.permute.xlu1 %4093  ;;  %7243 = vrcp.f32 %v5054_v12 }
 0xd2a   :  { %v4171_v49 = vcombine.low %v8085_v44, %v4094_v14  ;;  %v4172_v50 = vcombine.high %v8085_v44, %v4094_v14 }
 0xd2c   :  { %v4088_v54 = vpop.permute.xlu0 %4087  ;;  %v4179_v47 = vrot.slane %v4171_v49, %v7575_v6  ;;  %v4186_v48 = vrot.slane %v4172_v50, %v7575_v6 }
 0xd2d   :  { %v4100_v52 = vpop.permute.xlu1 %4099 }
 0xd2e   :  { %v4187_v34 = vcombine.low %v4088_v54, %v4100_v52  ;;  %v4188_v15 = vcombine.high %v4088_v54, %v4100_v52 }
 0xd30   :  { %v4195_v39 = vrot.slane %v4187_v34, %v7575_v6  ;;  %v4202_v1 = vrot.slane %v4188_v15, %v7575_v6 }
 0xd32   :  { %v4203_v51 = vcombine.low %v4179_v47, %v4195_v39  ;;  %v4204_v16 = vcombine.high %v4179_v47, %v4195_v39  ;;  %v4219_v43 = vcombine.low %v4186_v48, %v4202_v1  ;;  %v4220_v31 = vcombine.high %v4186_v48, %v4202_v1 }
 0xd33   :  { %v7240_v53 = vpop.eup %7239 }
 0xd34   :  { %v4211_v44 = vrot.slane %v4203_v51, %v7577_v13  ;;  %v4218_v40 = vrot.slane %v4204_v16, %v7577_v13  ;;  %v4227_v2 = vrot.slane %v4219_v43, %v7577_v13  ;;  %v4234_v21 = vrot.slane %v4220_v31, %v7577_v13  ;;  %v7242_v33 = vpop.eup %7241 }
 0xd35   :  { %v5068_v41 = vmul.f32 %v7240_v53, %v8303_v8  ;;  %v5069_v63 = vmul.f32 %v7242_v33, %v8289_v38 }
 0xd36   :  { %v4307_v22 = vcombine.low %v4211_v44, %v4218_v40  ;;  %v6561_v45 = vcombine.high %v4211_v44, %v4218_v40  ;;  %v4323_v17 = vcombine.low %v4227_v2, %v4234_v21  ;;  %v6562_v23 = vcombine.high %v4227_v2, %v4234_v21  ;;  %v7244_v7 = vpop.eup %7243 }
 0xd37   :  { %v5070_v37 = vmul.f32 %v7244_v7, %v8311_v26 }
 0xd38   :  { %v4314_v18 = vrot.slane %v4307_v22, %v7575_v6  ;;  %v4322_v24 = vrot.slane %v6561_v45, %v7575_v6  ;;  %v4330_v61 = vrot.slane %v4323_v17, %v7575_v6  ;;  %v4338_v36 = vrot.slane %v6562_v23, %v7575_v6 }
 0xd3a   :  { %v4339_v19 = vcombine.low %v4314_v18, %v4322_v24  ;;  %v4355_v25 = vcombine.low %v4330_v61, %v4338_v36  ;;  %v4340_v20 = vcombine.high %v4314_v18, %v4322_v24  ;;  %v4356_v27 = vcombine.high %v4330_v61, %v4338_v36 }
 0xd3c   :  { %v4347_v60 = vrot.slane %v4339_v19, %v7577_v13  ;;  %v4363_v46 = vrot.slane %v4355_v25, %v7577_v13  ;;  %v4354_v58 = vrot.slane %v4340_v20, %v7577_v13  ;;  %v4370_v59 = vrot.slane %v4356_v27, %v7577_v13 }
 0xd3e   :  { %v4371_v9 = vcombine.low %v4347_v60, %v4363_v46  ;;  %v4372_v35 = vcombine.high %v4347_v60, %v4363_v46  ;;  %v4373_v10 = vcombine.low %v4354_v58, %v4370_v59  ;;  %v4374_v62 = vcombine.high %v4354_v58, %v4370_v59 }
 0xd40   :  { %7058 = vmatpush3.msra.mxu0 %v4371_v9  ;;  %7063 = vmatpush3.msra.mxu1 %v4372_v35 }
 0xd41   :  { %7060 = vmatmul.mubr.msk.f32.vlgmr.msra.gmra.mxu0 %vm1278_vm2, %v5067_v55  ;;  %7065 = vmatmul.mubr.msk.f32.vlgmr.msra.gmra.mxu1 %vm1278_vm2, %v5068_v41 }
 0xd42   :  { %7067 = vmatprep.subr.mxu0 %v7379_v56  ;;  %7072 = vmatprep.subr.mxu1 %v7379_v56 }
 0xd43   :  { %7068 = vmatpush3.msra.mxu0 %v4373_v10  ;;  %7073 = vmatpush3.msra.mxu1 %v4374_v62 }
 0xd44   :  { %7069 = vmatprep.mubr.msk.f32.mxu0 %vm7380_vm1, %v7379_v56  ;;  %7074 = vmatprep.mubr.msk.f32.mxu1 %vm7380_vm1, %v7379_v56 }
 0xd45   :  { %7070 = vmatmul.mubr.msk.f32.vlgmr.msra.gmra.mxu0 %vm1278_vm2, %v5069_v63  ;;  %7075 = vmatmul.mubr.msk.f32.vlgmr.msra.gmra.mxu1 %vm1278_vm2, %v5070_v37 }
 0xdbc   :  { %v5140_v8 = vpop.f32.mrf.mxu0 }
 0xdbe   :  { %v7041_v4 = vpop.f32.mrf.mxu0 }
 0xdc0   :  { %v5286_v0 = vpop.f32.mrf.mxu0 }
 0xdc1   :  { %v5213_v3 = vpop.f32.mrf.mxu1  ;;  %v5655_v29 = vcombine.low %v5140_v8, %v5286_v0  ;;  %v5656_v38 = vcombine.high %v5140_v8, %v5286_v0 }
 0xdc2   :  { %v7051_v57 = vpop.f32.mrf.mxu0 }
 0xdc3   :  { %v7046_v30 = vpop.f32.mrf.mxu1  ;;  %v5663_v14 = vrot.slane %v5655_v29, %v7575_v6  ;;  %v5670_v49 = vrot.slane %v5656_v38, %v7575_v6  ;;  %v6593_v29 = vld [vmem:[%s8555_s5 + $0x30] sm:$0xff] }
 0xdc4   :  { %v6594_v30 = vld [vmem:[%s8555_s5 + $0x38] sm:$0xff] }
 0xdc5   :  { %v5359_v32 = vpop.f32.mrf.mxu1  ;;  %7077 = vmatprep.subr.mxu0 %v6594_v30 }
 0xdc6   :  { %v5671_v26 = vcombine.low %v5213_v3, %v5359_v32  ;;  %v5672_v11 = vcombine.high %v5213_v3, %v5359_v32  ;;  %7078 = vmatpush3.msra.mxu0 %v6594_v30 }
 0xdc7   :  { %v7056_v12 = vpop.f32.mrf.mxu1  ;;  %7079 = vmatprep.subr.mxu0 %v6593_v29 }
 0xdc8   :  { %v5679_v50 = vrot.slane %v5671_v26, %v7575_v6  ;;  %v5686_v54 = vrot.slane %v5672_v11, %v7575_v6  ;;  %7080 = vmatpush3.msra.mxu0 %v6593_v29 }
 0xdca   :  { %v5687_v52 = vcombine.low %v5663_v14, %v5679_v50  ;;  %v5688_v34 = vcombine.high %v5663_v14, %v5679_v50  ;;  %v5703_v15 = vcombine.low %v5670_v49, %v5686_v54  ;;  %v5704_v47 = vcombine.high %v5670_v49, %v5686_v54  ;;  %v6592_v54 = vld [vmem:[%s8555_s5 + $0x28] sm:$0xff] }
 0xdcb   :  { %7081 = vmatprep.subr.mxu0 %v6592_v54 }
 0xdcc   :  { %v5695_v48 = vrot.slane %v5687_v52, %v7577_v13  ;;  %v5702_v39 = vrot.slane %v5688_v34, %v7577_v13  ;;  %v5711_v1 = vrot.slane %v5703_v15, %v7577_v13  ;;  %v5718_v51 = vrot.slane %v5704_v47, %v7577_v13  ;;  %v6591_v52 = vld [vmem:[%s8555_s5 + $0x20] sm:$0xff]  ;;  %7082 = vmatpush3.msra.mxu0 %v6592_v54 }
 0xdcd   :  { %7083 = vmatprep.subr.mxu0 %v6591_v52 }
 0xdce   :  { %v5791_v16 = vcombine.low %v5695_v48, %v5702_v39  ;;  %v6587_v43 = vcombine.high %v5695_v48, %v5702_v39  ;;  %v5807_v31 = vcombine.low %v5711_v1, %v5718_v51  ;;  %v6588_v44 = vcombine.high %v5711_v1, %v5718_v51  ;;  %7084 = vmatpush3.msra.mxu0 %v6591_v52 }
 0xdd0   :  { %v5798_v40 = vrot.slane %v5791_v16, %v7575_v6  ;;  %v5806_v2 = vrot.slane %v6587_v43, %v7575_v6  ;;  %v5814_v21 = vrot.slane %v5807_v31, %v7575_v6  ;;  %v5822_v22 = vrot.slane %v6588_v44, %v7575_v6 }
 0xdd2   :  { %v5823_v45 = vcombine.low %v5798_v40, %v5806_v2  ;;  %v5839_v17 = vcombine.low %v5814_v21, %v5822_v22  ;;  %v5824_v23 = vcombine.high %v5798_v40, %v5806_v2  ;;  %v5840_v18 = vcombine.high %v5814_v21, %v5822_v22 }
 0xdd4   :  { %v8390_v24 = vrot.slane %v5823_v45, %v7577_v13  ;;  %v8393_v61 = vrot.slane %v5839_v17, %v7577_v13  ;;  %v5838_v25 = vrot.slane %v5824_v23, %v7577_v13  ;;  %v5854_v20 = vrot.slane %v5840_v18, %v7577_v13 }
 0xdd6   :  { %v5856_v36 = vcombine.high %v8390_v24, %v8393_v61  ;;  %v5855_v19 = vcombine.low %v8390_v24, %v8393_v61  ;;  %v5857_v27 = vcombine.low %v5838_v25, %v5854_v20  ;;  %v5858_v28 = vcombine.high %v5838_v25, %v5854_v20  ;;  %v6598_v61 = vld [vmem:[%s8556_s6 + $0x1] ss:$0 sm:$0xff] }
 0xdd8   :  { %5929 = vrot.lane.b32.xlu0 %v5856_v36, %s7373_s17 }
 0xddc   :  { %5937 = vrot.lane.b32.xlu0 %v5857_v27, %s7383_s23 }
 0xde0   :  { %5945 = vrot.lane.b32.xlu0 %v5858_v28, %s7384_s1 }
 0xe01   :  { %v5432_v53 = vpop.f32.mrf.mxu0  ;;  %v5505_v60 = vpop.f32.mrf.mxu1 }
 0xe03   :  { %v7061_v46 = vpop.f32.mrf.mxu0  ;;  %v7066_v58 = vpop.f32.mrf.mxu1 }
 0xe05   :  { %v5578_v59 = vpop.f32.mrf.mxu0  ;;  %v5651_v33 = vpop.f32.mrf.mxu1 }
 0xe06   :  { %v5723_v9 = vcombine.low %v5432_v53, %v5578_v59  ;;  %v5724_v35 = vcombine.high %v5432_v53, %v5578_v59  ;;  %v5739_v55 = vcombine.low %v5505_v60, %v5651_v33  ;;  %v5740_v41 = vcombine.high %v5505_v60, %v5651_v33 }
 0xe07   :  { %v7071_v7 = vpop.f32.mrf.mxu0  ;;  %v7076_v10 = vpop.f32.mrf.mxu1 }
 0xe08   :  { %v5731_v62 = vrot.slane %v5723_v9, %v7575_v6  ;;  %v5738_v63 = vrot.slane %v5724_v35, %v7575_v6  ;;  %v5747_v37 = vrot.slane %v5739_v55, %v7575_v6  ;;  %v5754_v8 = vrot.slane %v5740_v41, %v7575_v6  ;;  %v6602_v7 = vld [vmem:[%s8557_s7 + $0x38] sm:$0xff]  ;;  %v6601_v10 = vld [vmem:[%s8557_s7 + $0x30] sm:$0xff] }
 0xe09   :  { %7088 = vmatprep.subr.mxu1 %v6602_v7 }
 0xe0a   :  { %v5755_v4 = vcombine.low %v5731_v62, %v5747_v37  ;;  %v5756_v0 = vcombine.high %v5731_v62, %v5747_v37  ;;  %v5771_v3 = vcombine.low %v5738_v63, %v5754_v8  ;;  %v5772_v57 = vcombine.high %v5738_v63, %v5754_v8  ;;  %7089 = vmatpush3.msra.mxu1 %v6602_v7  ;;  %v6600_v62 = vld [vmem:[%s8557_s7 + $0x28] sm:$0xff]  ;;  %v6599_v63 = vld [vmem:[%s8557_s7 + $0x20] sm:$0xff] }
 0xe0b   :  { %7090 = vmatprep.subr.mxu1 %v6601_v10 }
 0xe0c   :  { %v5763_v38 = vrot.slane %v5755_v4, %v7577_v13  ;;  %v5770_v32 = vrot.slane %v5756_v0, %v7577_v13  ;;  %v5779_v26 = vrot.slane %v5771_v3, %v7577_v13  ;;  %v5786_v11 = vrot.slane %v5772_v57, %v7577_v13  ;;  %7091 = vmatpush3.msra.mxu1 %v6601_v10 }
 0xe0d   :  { %7092 = vmatprep.subr.mxu1 %v6600_v62 }
 0xe0e   :  { %v5859_v12 = vcombine.low %v5763_v38, %v5770_v32  ;;  %v6589_v14 = vcombine.high %v5763_v38, %v5770_v32  ;;  %v5875_v49 = vcombine.low %v5779_v26, %v5786_v11  ;;  %v6590_v50 = vcombine.high %v5779_v26, %v5786_v11  ;;  %7093 = vmatpush3.msra.mxu1 %v6600_v62 }
 0xe0f   :  { %7094 = vmatprep.subr.mxu1 %v6599_v63 }
 0xe10   :  { %v5866_v34 = vrot.slane %v5859_v12, %v7575_v6  ;;  %v5874_v15 = vrot.slane %v6589_v14, %v7575_v6  ;;  %v5882_v47 = vrot.slane %v5875_v49, %v7575_v6  ;;  %v5890_v48 = vrot.slane %v6590_v50, %v7575_v6  ;;  %7095 = vmatpush3.msra.mxu1 %v6599_v63 }
 0xe11   :  { %7134 = vmatprep.subr.mxu1 %v7379_v56 }
 0xe12   :  { %v5891_v39 = vcombine.low %v5866_v34, %v5874_v15  ;;  %v5907_v1 = vcombine.low %v5882_v47, %v5890_v48  ;;  %v5892_v51 = vcombine.high %v5866_v34, %v5874_v15  ;;  %v5908_v16 = vcombine.high %v5882_v47, %v5890_v48  ;;  %v6624_v47 = vld [vmem:[%s8559_s9 + $0xf8] sm:$0xff]  ;;  %v6623_v48 = vld [vmem:[%s8559_s9 + $0xf0] sm:$0xff] }
 0xe13   :  { %7099 = vmatprep.subr.mxu0 %v6624_v47 }
 0xe14   :  { %v5899_v43 = vrot.slane %v5891_v39, %v7577_v13  ;;  %v5915_v31 = vrot.slane %v5907_v1, %v7577_v13  ;;  %v5906_v2 = vrot.slane %v5892_v51, %v7577_v13  ;;  %v5922_v21 = vrot.slane %v5908_v16, %v7577_v13  ;;  %v6622_v39 = vld [vmem:[%s8559_s9 + $0xe8] sm:$0xff]  ;;  %v6621_v1 = vld [vmem:[%s8559_s9 + $0xe0] sm:$0xff]  ;;  %v6620_v51 = vld [vmem:[%s8559_s9 + $0xd8] sm:$0xff] }
 0xe15   :  { %v6619_v16 = vld [vmem:[%s8559_s9 + $0xd0] sm:$0xff] }
 0xe16   :  { %v5924_v44 = vcombine.high %v5899_v43, %v5915_v31  ;;  %v5923_v40 = vcombine.low %v5899_v43, %v5915_v31  ;;  %v5925_v6 = vcombine.low %v5906_v2, %v5922_v21  ;;  %v5926_v22 = vcombine.high %v5906_v2, %v5922_v21  ;;  %v6618_v43 = vld [vmem:[%s8559_s9 + $0xc8] sm:$0xff]  ;;  %v6617_v31 = vld [vmem:[%s8559_s9 + $0xc0] sm:$0xff] }
 0xe17   :  { %v6614_v2 = vld [vmem:[%s8559_s9 + $0xa8] sm:$0xff]  ;;  %v6613_v21 = vld [vmem:[%s8559_s9 + $0xa0] sm:$0xff] }
 0xe18   :  { %5931 = vrot.lane.b32.xlu1 %v5924_v44, %s7373_s17  ;;  %v6616_v44 = vld [vmem:[%s8559_s9 + $0xb8] sm:$0xff] }
 0xe1c   :  { %5939 = vrot.lane.b32.xlu1 %v5925_v6, %s7383_s23  ;;  %v6612_v6 = vld [vmem:[%s8559_s9 + $0x98] sm:$0xff] }
 0xe20   :  { %5947 = vrot.lane.b32.xlu1 %v5926_v22, %s7384_s1  ;;  %v6611_v22 = vld [vmem:[%s8559_s9 + $0x90] sm:$0xff] }
 0xe4a   :  { %v5930_v45 = vpop.permute.xlu0 %5929 }
 0xe4b   :  { %v5951_v23 = vsel %vm1278_vm2, %v5855_v19, %v5930_v45  ;;  %v6610_v45 = vld [vmem:[%s8559_s9 + $0x88] sm:$0xff] }
 0xe4e   :  { %v5938_v17 = vpop.permute.xlu0 %5937 }
 0xe4f   :  { %v5953_v18 = vsel %vm2857_vm3, %v5951_v23, %v5938_v17  ;;  %v6609_v17 = vld [vmem:[%s8559_s9 + $0x80] sm:$0xff] }
 0xe50   :  { %v6604_v23 = vld [vmem:[%s8558_s8 + $0x1] ss:$0 sm:$0xff] }
 0xe52   :  { %v5946_v36 = vpop.permute.xlu0 %5945 }
 0xe53   :  { %v5955_v13 = vsel %vm2860_vm4, %v5953_v18, %v5946_v36 }
 0xe54   :  { %7085 = vmatprep.mubr.msk.f32.mxu0 %vm102_vm0, %v5955_v13 }
 0xe8a   :  { %v5932_v25 = vpop.permute.xlu1 %5931 }
 0xe8b   :  { %v5952_v27 = vsel %vm1278_vm2, %v5923_v40, %v5932_v25  ;;  %v6615_v40 = vld [vmem:[%s8559_s9 + $0xb0] sm:$0xff] }
 0xe8e   :  { %v5940_v20 = vpop.permute.xlu1 %5939 }
 0xe8f   :  { %v5954_v28 = vsel %vm2857_vm3, %v5952_v27, %v5940_v20 }
 0xe92   :  { %v5948_v53 = vpop.permute.xlu1 %5947 }
 0xe93   :  { %v5956_v60 = vsel %vm2860_vm4, %v5954_v28, %v5948_v53 }
 0xe94   :  { %7086 = vmatmul.mubr.msk.f32.vlgmr.msra.gmra.mxu0 %vm102_vm0, %v5956_v60 }
 0xe95   :  { %7100 = vmatpush3.msra.mxu0 %v6624_v47 }
 0xe96   :  { %7101 = vmatprep.subr.mxu0 %v6623_v48 }
 0xe97   :  { %7102 = vmatpush3.msra.mxu0 %v6623_v48 }
 0xe98   :  { %7103 = vmatprep.subr.mxu0 %v6622_v39 }
 0xe99   :  { %7104 = vmatpush3.msra.mxu0 %v6622_v39 }
 0xe9a   :  { %7105 = vmatprep.subr.mxu0 %v6621_v1 }
 0xe9b   :  { %7106 = vmatpush3.msra.mxu0 %v6621_v1 }
 0xe9c   :  { %7107 = vmatprep.subr.mxu0 %v6620_v51 }
 0xe9d   :  { %7108 = vmatpush3.msra.mxu0 %v6620_v51 }
 0xe9e   :  { %7109 = vmatprep.subr.mxu0 %v6619_v16 }
 0xe9f   :  { %7110 = vmatpush3.msra.mxu0 %v6619_v16 }
 0xea0   :  { %7111 = vmatprep.subr.mxu0 %v6618_v43 }
 0xea1   :  { %7112 = vmatpush3.msra.mxu0 %v6618_v43 }
 0xea2   :  { %7113 = vmatprep.subr.mxu0 %v6617_v31 }
 0xea3   :  { %7114 = vmatpush3.msra.mxu0 %v6617_v31 }
 0xea4   :  { %7115 = vmatprep.subr.mxu0 %v6616_v44 }
 0xea5   :  { %7116 = vmatpush3.msra.mxu0 %v6616_v44 }
 0xea6   :  { %7117 = vmatprep.subr.mxu0 %v6615_v40 }
 0xea7   :  { %7118 = vmatpush3.msra.mxu0 %v6615_v40 }
 0xea8   :  { %7119 = vmatprep.subr.mxu0 %v6614_v2 }
 0xea9   :  { %7120 = vmatpush3.msra.mxu0 %v6614_v2 }
 0xeaa   :  { %7121 = vmatprep.subr.mxu0 %v6613_v21 }
 0xeab   :  { %7122 = vmatpush3.msra.mxu0 %v6613_v21 }
 0xeac   :  { %7123 = vmatprep.subr.mxu0 %v6612_v6 }
 0xead   :  { %7124 = vmatpush3.msra.mxu0 %v6612_v6 }
 0xeae   :  { %7125 = vmatprep.subr.mxu0 %v6611_v22 }
 0xeaf   :  { %7126 = vmatpush3.msra.mxu0 %v6611_v22  ;;  %v6627_v22 = vld [vmem:[%s8562_s12] ss:$0 sm:$0xff] }
 0xeb0   :  { %7127 = vmatprep.subr.mxu0 %v6610_v45 }
 0xeb1   :  { %7128 = vmatpush3.msra.mxu0 %v6610_v45 }
 0xeb2   :  { %7129 = vmatprep.subr.mxu0 %v6609_v17 }
 0xeb3   :  { %7130 = vmatpush3.msra.mxu0 %v6609_v17 }
 0xf54   :  { %v7087_v24 = vpop.f32.mrf.mxu0 }
 0xf55   :  { %v6044_v19 = vadd.f32 %v7087_v24, %v8008_v42 }
 0xf56   :  { %v6034_v46 = vpop.f32.mrf.mxu0 }
 0xf57   :  { %v8450_v58 = vadd.f32 %v6598_v61, %v6044_v19  ;;  %v6043_v59 = vadd.f32 %v6034_v46, %v8011_v5 }
 0xf59   :  { %v8453_v33 = vadd.f32 %v6598_v61, %v6043_v59  ;;  %v6058_v9 = vsel %vm102_vm0, %v8450_v58, 0.0  ;;  %v6064_v41 = vmul.f32 %v8450_v58, %v8450_v58 }
 0xf5a   :  { %6059 = vadd.xlane.f32.xlu1 %v6058_v9 }
 0xf5b   :  { %v6055_v35 = vsel %vm102_vm0, %v8453_v33, 0.0  ;;  %v6063_v55 = vmul.f32 %v8453_v33, %v8453_v33  ;;  %v6068_v5 = vsel %vm102_vm0, %v6064_v41, 0.0 }
 0xf5c   :  { %6056 = vadd.xlane.f32.xlu0 %v6055_v35 }
 0xf5d   :  { %v6065_v42 = vsel %vm102_vm0, %v6063_v55, 0.0 }
 0xf60   :  { %6066 = vadd.xlane.f32.xlu0 %v6065_v42  ;;  %v6626_v42 = vld [vmem:[%s8560_s10 + $0x1] ss:$0 sm:$0xff] }
 0xf64   :  { %6069 = vadd.xlane.f32.xlu0 %v6068_v5 }
 0xfe3   :  { %v6060_v4 = vpop.xlane.xlu1 %6059 }
 0xfe4   :  { %v6062_v3 = vmul.f32 0.03125, %v6060_v4 }
 0xfe5   :  { %v6057_v37 = vpop.xlane.xlu0 %6056 }
 0xfe6   :  { %v6061_v8 = vmul.f32 0.03125, %v6057_v37  ;;  %v6074_v32 = vmul.f32 %v6062_v3, %v6062_v3  ;;  %v6078_v52 = vsub.f32 %v8450_v58, %v6062_v3 }
 0xfe8   :  { %v6073_v57 = vmul.f32 %v6061_v8, %v6061_v8  ;;  %v6077_v49 = vsub.f32 %v8453_v33, %v6061_v8 }
 0xfe9   :  { %v6067_v0 = vpop.xlane.xlu0 %6066 }
 0xfea   :  { %v6071_v30 = vmul.f32 0.03125, %v6067_v0 }
 0xfec   :  { %v6075_v29 = vsub.f32 %v6071_v30, %v6073_v57 }
 0xfed   :  { %v6070_v38 = vpop.xlane.xlu0 %6069 }
 0xfee   :  { %v6079_v26 = vadd.f32 1e-05, %v6075_v29  ;;  %v6072_v11 = vmul.f32 0.03125, %v6070_v38  ;;  %v6352_v29 = vld [vmem:[#allocation8 + $0x8] sm:$0xff]  ;;  %v6351_v38 = vld [vmem:[#allocation8] sm:$0xff] }
 0xff0   :  { %7245 = vrsqrt.f32 %v6079_v26  ;;  %v6076_v12 = vsub.f32 %v6072_v11, %v6074_v32 }
 0xff2   :  { %v6080_v14 = vadd.f32 1e-05, %v6076_v12 }
 0xff4   :  { %7247 = vrsqrt.f32 %v6080_v14 }
 0xffd   :  { %v7246_v50 = vpop.eup %7245 }
 0xffe   :  { %v6083_v54 = vmul.f32 %v7246_v50, %v6077_v49 }
0x1000   :  { %7096 = vmatprep.mubr.msk.f32.mxu1 %vm102_vm0, %v6083_v54 }
0x1001   :  { %v7248_v34 = vpop.eup %7247 }
0x1002   :  { %v6084_v15 = vmul.f32 %v7248_v34, %v6078_v52 }
0x1004   :  { %7097 = vmatmul.mubr.msk.f32.vlgmr.msra.gmra.mxu1 %vm102_vm0, %v6084_v15 }
0x1005   :  { %7142 = vmatprep.mubr.msk.f32.mxu1 %vm7380_vm1, %v7379_v56 }
0x10c4   :  { %v7098_v18 = vpop.f32.mrf.mxu1 }
0x10c5   :  { %v6176_v36 = vadd.f32 %v7098_v18, %v6604_v23 }
0x10c6   :  { %v6170_v13 = vpop.f32.mrf.mxu1 }
0x10c7   :  { %v6608_v25 = vmul.f32 -1.702, %v6176_v36  ;;  %v6171_v20 = vadd.f32 %v6604_v23, %v6170_v13 }
0x10c9   :  { %v6185_v27 = vmul.f32 1.442695, %v6608_v25  ;;  %v6607_v28 = vmul.f32 -1.702, %v6171_v20 }
0x10cb   :  { %7249 = vpow2.f32 %v6185_v27  ;;  %v6183_v53 = vmul.f32 1.442695, %v6607_v28 }
0x10cd   :  { %7251 = vpow2.f32 %v6183_v53 }
0x10d8   :  { %v7250_v60 = vpop.eup %7249 }
0x10d9   :  { %v6188_v24 = vadd.f32 1.0, %v7250_v60 }
0x10da   :  { %v7252_v61 = vpop.eup %7251 }
0x10db   :  { %v6187_v19 = vadd.f32 1.0, %v7252_v61  ;;  %7253 = vrcp.f32 %v6188_v24 }
0x10dd   :  { %7255 = vrcp.f32 %v6187_v19 }
0x10e8   :  { %v7254_v46 = vpop.eup %7253 }
0x10e9   :  { %v6194_v35 = vmul.f32 %v7254_v46, %v6176_v36 }
0x10ea   :  { %v7256_v59 = vpop.eup %7255 }
0x10eb   :  { %v6193_v9 = vmul.f32 %v7256_v59, %v6171_v20 }
0x10ed   :  { %7131 = vmatprep.mubr.f32.mxu0 %v6193_v9 }
0x10ee   :  { %7132 = vmatmul.mubr.f32.vlgmr.msra.gmra.mxu0 %v6194_v35 }
0x11ae   :  { %v7133_v55 = vpop.f32.mrf.mxu0 }
0x11af   :  { %v6288_v41 = vadd.f32 %v7133_v55, %v8450_v58  ;;  %v6354_v58 = vld [vmem:[#allocation8 + $0x18] sm:$0xff] }
0x11b0   :  { %v6278_v5 = vpop.f32.mrf.mxu0  ;;  %7135 = vmatpush3.msra.mxu1 %v6354_v58 }
0x11b1   :  { %v6298_v7 = vadd.f32 %v6626_v42, %v6288_v41  ;;  %v6287_v10 = vadd.f32 %v6278_v5, %v8453_v33  ;;  %7136 = vmatprep.subr.mxu1 %v7379_v56  ;;  %v6353_v33 = vld [vmem:[#allocation8 + $0x10] sm:$0xff] }
0x11b2   :  { %7137 = vmatpush3.msra.mxu1 %v6353_v33 }
0x11b3   :  { %v6297_v62 = vadd.f32 %v6626_v42, %v6287_v10  ;;  %v6301_v63 = vrot.slane %v6298_v7, 7  ;;  %v6315_v37 = vmul.f32 %v6298_v7, %v6298_v7  ;;  %7138 = vmatprep.subr.mxu1 %v7379_v56 }
0x11b4   :  { %7139 = vmatpush3.msra.mxu1 %v6352_v29 }
0x11b5   :  { %v6309_v8 = vsel %vm6308_vm5, %v6301_v63, 0.0  ;;  %v6305_v4 = vsel %vm6304_vm6, %v6297_v62, 0.0  ;;  %v6318_v0 = vrot.slane %v6315_v37, 7  ;;  %v6314_v3 = vmul.f32 %v6297_v62, %v6297_v62  ;;  %7140 = vmatprep.subr.mxu1 %v7379_v56 }
0x11b6   :  { %6310 = vadd.xlane.f32.xlu0 %v6309_v8  ;;  %6306 = vadd.xlane.f32.xlu1 %v6305_v4 }
0x11b7   :  { %v6324_v57 = vsel %vm6308_vm5, %v6318_v0, 0.0  ;;  %v6321_v30 = vsel %vm6304_vm6, %v6314_v3, 0.0  ;;  %7141 = vmatpush3.msra.mxu1 %v6351_v38 }
0x11ba   :  { %6325 = vadd.xlane.f32.xlu0 %v6324_v57  ;;  %6322 = vadd.xlane.f32.xlu1 %v6321_v30 }
0x123f   :  { %v6311_v32 = vpop.xlane.xlu0 %6310  ;;  %v6307_v26 = vpop.xlane.xlu1 %6306 }
0x1240   :  { %v6313_v11 = vmul.f32 0.03125, %v6311_v32  ;;  %v6312_v12 = vmul.f32 0.03125, %v6307_v26 }
0x1242   :  { %v6330_v50 = vmul.f32 %v6313_v11, %v6313_v11  ;;  %v6329_v54 = vmul.f32 %v6312_v12, %v6312_v12  ;;  %v6335_v1 = vrot.slane %v6313_v11, 1  ;;  %v6338_v56 = vsub.f32 %v6297_v62, %v6312_v12 }
0x1243   :  { %v6326_v14 = vpop.xlane.xlu0 %6325  ;;  %v6323_v49 = vpop.xlane.xlu1 %6322 }
0x1244   :  { %v6328_v52 = vmul.f32 0.03125, %v6326_v14  ;;  %v6327_v34 = vmul.f32 0.03125, %v6323_v49  ;;  %v6339_v43 = vsub.f32 %v6298_v7, %v6335_v1 }
0x1246   :  { %v6332_v15 = vsub.f32 %v6328_v52, %v6330_v50  ;;  %v6331_v47 = vsub.f32 %v6327_v34, %v6329_v54 }
0x1248   :  { %v6341_v48 = vadd.f32 1e-05, %v6332_v15  ;;  %v6340_v39 = vadd.f32 1e-05, %v6331_v47 }
0x124a   :  { %7257 = vrsqrt.f32 %v6341_v48 }
0x124b   :  { %7259 = vrsqrt.f32 %v6340_v39 }
0x1257   :  { %v7258_v51 = vpop.eup %7257 }
0x1258   :  { %v7260_v16 = vpop.eup %7259  ;;  %v6346_v31 = vrot.slane %v7258_v51, 1 }
0x1259   :  { %v6349_v44 = vmul.f32 %v7260_v16, %v6338_v56 }
0x125a   :  { %v6350_v40 = vmul.f32 %v6346_v31, %v6339_v43 }
0x125b   :  { %v6364_v21 = vrot.slane %v6349_v44, 7 }
0x125c   :  { %v6365_v2 = vrot.slane %v6350_v40, 6 }
0x125e   :  { %v6367_v6 = vsel %vm6366_vm7, %v6365_v2, %v6364_v21 }
0x125f   :  { %7143 = vmatmul.mubr.msk.f32.vlgmr.msra.gmra.mxu1 %vm102_vm0, %v6367_v6 }
0x131f   :  { %v6436_v45 = vpop.f32.mrf.mxu1 }
0x1320   :  { %v6437_v17 = vadd.f32 %v6627_v22, %v6436_v45 }
0x1321   :  { %v7144_v23 = vpop.f32.mrf.mxu1 }
0x1322   :  { %6441 = vst.msk [vmem:[#allocation10] sm:$0x3] %vm6440_vm8, %v6437_v17 }
0x1323   :  { %7353 = shalt.err (!%p7350_p10)
}
0x1324   :  { %6451 = dma.vmem_to_hbm [thread:$0]  %s6449_s21, 32, %s8563_s13, [#allocation4]  }
0x1325   :  { %7368 = dma.done.wait [#allocation4], 32  }
0x1326   :  { %7369 = vsyncadd [#allocation4], 4294967264 }
0x1327   :  { %6455 = vsyncpa [#allocation3], 1 }
0x1328   :  { %6456 = vsyncpa [#allocation6], 1 }
0x1329   :  { %6457 = vsyncpa [#allocation9], 1 }
0x132a   :  { %6458 = vsyncpa [#allocation4], 1 }

</bundles_post_ra>
